<compile_context>
chip_gen: v6e
topology: v6e:2x2x1
jax: 0.10.0
libtpu: 0.0.40
codegen_flags: <defaults>
</compile_context>

<pallas_src>
import numpy as np

import jax
import jax.numpy as jnp
from jax.experimental import pallas as pl
from jax.experimental.pallas import tpu as pltpu


# ----------------------------------------------------------------------------
# Parameter preparation (done ONCE, outside jit)
# ----------------------------------------------------------------------------

def _banded_conv_weights(w, in_w, out_w):
    """w: (C_out, C_in, k, k) -> band (k, in_w*C_in, out_w*C_out) f32.

    band[kh, j*C_in + ci, wo*C_out + co] = w[co, ci, kh, j - wo]  (0<=j-wo<k)
    so that  sum_kh  X[kh:kh+Ho, :] @ band[kh]  equals the VALID conv with the
    output laid out lane-dense as (h, wo*C_out + co).
    """
    c_out, c_in, k, _ = w.shape
    band = np.zeros((k, in_w * c_in, out_w * c_out), np.float32)
    for kh in range(k):
        for kw in range(k):
            wt = w[:, :, kh, kw].T                       # (C_in, C_out)
            for wo in range(out_w):
                j = wo + kw
                band[kh, j * c_in:(j + 1) * c_in,
                     wo * c_out:(wo + 1) * c_out] = wt
    return band


def _pool_selectors(hw, c):
    """Constant 0/1 selection matrices for a 2x2 max-pool of a (hw, hw*c)
    activation whose lane index is w*c + ch.

    rp: (2, hw//2, hw)      rp[0] selects even rows, rp[1] odd rows.
    cp: (2, hw*c, hw//2*c)  cp[0] selects even-w lanes, cp[1] odd-w lanes.
    """
    h2 = hw // 2
    rp = np.zeros((2, h2, hw), np.float32)
    rp[0, np.arange(h2), 2 * np.arange(h2)] = 1.0
    rp[1, np.arange(h2), 2 * np.arange(h2) + 1] = 1.0
    cp = np.zeros((2, hw * c, h2 * c), np.float32)
    for wp in range(h2):
        for ch in range(c):
            cp[0, (2 * wp) * c + ch, wp * c + ch] = 1.0
            cp[1, (2 * wp + 1) * c + ch, wp * c + ch] = 1.0
    return rp, cp


def prepare_params(params):
    """Convert PyTorch-layout parameters into the kernel-ready layout.

    Call once, outside jit (uses numpy): banded lane-dense conv weights, tiled
    biases, constant pool selectors and pre-transposed / pre-permuted FC
    weights (no per-call .T in the jitted graph).
    """
    w1 = np.asarray(params["conv1_w"], np.float32)      # (6, 1, 5, 5)
    b1 = np.asarray(params["conv1_b"], np.float32)      # (6,)
    w2 = np.asarray(params["conv2_w"], np.float32)      # (16, 6, 5, 5)
    b2 = np.asarray(params["conv2_b"], np.float32)      # (16,)
    fc1_w = np.asarray(params["fc1_w"], np.float32)     # (120, 256)
    fc1_b = np.asarray(params["fc1_b"], np.float32)
    fc2_w = np.asarray(params["fc2_w"], np.float32)     # (84, 120)
    fc2_b = np.asarray(params["fc2_b"], np.float32)
    fc3_w = np.asarray(params["fc3_w"], np.float32)     # (10, 84)
    fc3_b = np.asarray(params["fc3_b"], np.float32)

    rp1, cp1 = _pool_selectors(24, 6)                   # pool1: (24,144)->(12,72)
    rp2, cp2 = _pool_selectors(8, 16)                   # pool2: (8,128)->(4,64)

    # fc1 expects torch.flatten(NCHW) ordering: feature index = c*16 + h*4 + w.
    # The kernel's pooled activation is (h, w*16 + c), so permute fc1's
    # columns once:  w1fc[h, w*16+c, n] = fc1_w[n, c*16 + h*4 + w].
    w1fc = fc1_w.reshape(120, 16, 4, 4).transpose(2, 3, 1, 0).reshape(4, 64, 120)

    return {
        "w1b": jnp.asarray(_banded_conv_weights(w1, in_w=28, out_w=24)),  # (5,28,144)
        "b1t": jnp.asarray(np.tile(b1, 24).reshape(1, 144)),
        "rp1": jnp.asarray(rp1),                                          # (2,12,24)
        "cp1": jnp.asarray(cp1),                                          # (2,144,72)
        "w2b": jnp.asarray(_banded_conv_weights(w2, in_w=12, out_w=8)),   # (5,72,128)
        "b2t": jnp.asarray(np.tile(b2, 8).reshape(1, 128)),
        "rp2": jnp.asarray(rp2),                                          # (2,4,8)
        "cp2": jnp.asarray(cp2),                                          # (2,128,64)
        "w1fc": jnp.asarray(w1fc),                                        # (4,64,120)
        "b1fc": jnp.asarray(fc1_b.reshape(1, 120)),
        "w2fc": jnp.asarray(fc2_w.T.copy()),                              # (120,84)
        "b2fc": jnp.asarray(fc2_b.reshape(1, 84)),
        "w3fc": jnp.asarray(fc3_w.T.copy()),                              # (84,10)
        "b3fc": jnp.asarray(fc3_b.reshape(1, 10)),
    }


# ----------------------------------------------------------------------------
# The fused Pallas kernel (TB images per grid step, statically unrolled)
# ----------------------------------------------------------------------------

def _make_lenet_kernel(tb):
    def kernel(x_ref, w1b_ref, b1t_ref, rp1_ref, cp1_ref,
               w2b_ref, b2t_ref, rp2_ref, cp2_ref,
               w1fc_ref, b1fc_ref, w2fc_ref, b2fc_ref, w3fc_ref, b3fc_ref,
               out_ref):
        f32 = jnp.float32

        # Load the (VMEM-resident) weights once per grid step; shared by all
        # tb images of this batch tile.
        w1b, b1t = w1b_ref[...], b1t_ref[...]
        rp1, cp1 = rp1_ref[...], cp1_ref[...]
        w2b, b2t = w2b_ref[...], b2t_ref[...]
        rp2, cp2 = rp2_ref[...], cp2_ref[...]
        w1fc, b1fc = w1fc_ref[...], b1fc_ref[...]
        w2fc, b2fc = w2fc_ref[...], b2fc_ref[...]
        w3fc, b3fc = w3fc_ref[...], b3fc_ref[...]

        def maxpool2x2(y, rp, cp):
            """Exact 2x2 max-pool of y[(h, w*c+ch)] via 0/1 selection matmuls."""
            rmax = jnp.maximum(jnp.dot(rp[0], y, preferred_element_type=f32),
                               jnp.dot(rp[1], y, preferred_element_type=f32))
            return jnp.maximum(jnp.dot(rmax, cp[0], preferred_element_type=f32),
                               jnp.dot(rmax, cp[1], preferred_element_type=f32))

        for t in range(tb):                              # static unroll
            x = x_ref[t]                                 # (28, 28), C_in == 1

            # conv1 (5x5, 1->6): 5 banded matmuls; output lanes = w*6 + c_out.
            y1 = jnp.dot(x[0:24, :], w1b[0], preferred_element_type=f32)
            for kh in range(1, 5):
                y1 = y1 + jnp.dot(x[kh:kh + 24, :], w1b[kh],
                                  preferred_element_type=f32)    # (24, 144)
            y1 = jnp.maximum(y1 + b1t, 0.0)

            p1 = maxpool2x2(y1, rp1, cp1)                # (12, 72), lanes w*6+ci

            # conv2 (5x5, 6->16): 5 banded matmuls; output lanes = w*16 + c_out.
            y2 = jnp.dot(p1[0:8, :], w2b[0], preferred_element_type=f32)
            for kh in range(1, 5):
                y2 = y2 + jnp.dot(p1[kh:kh + 8, :], w2b[kh],
                                  preferred_element_type=f32)    # (8, 128)
            y2 = jnp.maximum(y2 + b2t, 0.0)

            p2 = maxpool2x2(y2, rp2, cp2)                # (4, 64), lanes w*16+co

            # fc1: torch.flatten ordering absorbed into the pre-permuted w1fc.
            z = jnp.dot(p2[0:1, :], w1fc[0], preferred_element_type=f32)
            for h in range(1, 4):
                z = z + jnp.dot(p2[h:h + 1, :], w1fc[h],
                                preferred_element_type=f32)      # (1, 120)
            z = jnp.maximum(z + b1fc, 0.0)

            z = jnp.maximum(jnp.dot(z, w2fc, preferred_element_type=f32)
                            + b2fc, 0.0)                         # (1, 84)
            logits = (jnp.dot(z, w3fc, preferred_element_type=f32)
                      + b3fc)                                    # (1, 10)

            out_ref[t] = logits.astype(out_ref.dtype)
    return kernel


def _full_spec(shape):
    """Index-invariant BlockSpec: whole array, VMEM-resident across the grid."""
    if len(shape) == 2:
        return pl.BlockSpec(shape, lambda b: (0, 0))
    return pl.BlockSpec(shape, lambda b: (0, 0, 0))


def lenet_forward(prepared, x_nchw, *, images_per_step=8):
    """x_nchw: (B, 1, 28, 28) f32 -> logits (B, 10) f32 in one pallas_call."""
    B = x_nchw.shape[0]
    assert x_nchw.shape[1:] == (1, 28, 28)

    tb = min(images_per_step, B)                        # images per grid step
    b_pad = ((B + tb - 1) // tb) * tb                   # pad batch to a tile
    x = x_nchw.reshape(B, 28, 28)                       # drop the C_in=1 dim
    if b_pad != B:
        x = jnp.pad(x, ((0, b_pad - B), (0, 0), (0, 0)))

    operand_names = ("w1b", "b1t", "rp1", "cp1", "w2b", "b2t", "rp2", "cp2",
                     "w1fc", "b1fc", "w2fc", "b2fc", "w3fc", "b3fc")
    operands = tuple(prepared[n] for n in operand_names)

    in_specs = [pl.BlockSpec((tb, 28, 28), lambda b: (b, 0, 0))]
    in_specs += [_full_spec(op.shape) for op in operands]

    out = pl.pallas_call(
        _make_lenet_kernel(tb),
        out_shape=jax.ShapeDtypeStruct((b_pad, 1, 10), jnp.float32),
        grid_spec=pltpu.PrefetchScalarGridSpec(
            num_scalar_prefetch=0,
            grid=(b_pad // tb,),
            in_specs=in_specs,
            out_specs=pl.BlockSpec((tb, 1, 10), lambda b: (b, 0, 0)),
        ),
        compiler_params=pltpu.CompilerParams(
            dimension_semantics=("parallel",)),
    )(x, *operands)
    return out.reshape(b_pad, 10)[:B]


# ----------------------------------------------------------------------------
# Parameter init (PyTorch shapes) and a pure-JAX reference for sanity checking
# ----------------------------------------------------------------------------

def init_lenet_params(key):
    """Deterministic synthetic parameters with PyTorch LeNet shapes."""
    ks = jax.random.split(key, 10)

    def init(kw, kb, shape, fan_in):
        bound = 1.0 / jnp.sqrt(float(fan_in))
        w = jax.random.uniform(kw, shape, jnp.float32, -bound, bound)
        b = jax.random.uniform(kb, (shape[0],), jnp.float32, -bound, bound)
        return w, b

    p = {}
    p["conv1_w"], p["conv1_b"] = init(ks[0], ks[1], (6, 1, 5, 5), 1 * 5 * 5)
    p["conv2_w"], p["conv2_b"] = init(ks[2], ks[3], (16, 6, 5, 5), 6 * 5 * 5)
    p["fc1_w"], p["fc1_b"] = init(ks[4], ks[5], (120, 256), 256)
    p["fc2_w"], p["fc2_b"] = init(ks[6], ks[7], (84, 120), 120)
    p["fc3_w"], p["fc3_b"] = init(ks[8], ks[9], (10, 84), 84)
    return p


def lenet_reference(params, x_nchw):
    """Plain-JAX replica of the PyTorch module (numerical sanity check)."""
    dn = ("NCHW", "OIHW", "NCHW")

    def pool(y):
        return jnp.maximum(
            jnp.maximum(y[:, :, 0::2, 0::2], y[:, :, 0::2, 1::2]),
            jnp.maximum(y[:, :, 1::2, 0::2], y[:, :, 1::2, 1::2]))

    y = jax.lax.conv_general_dilated(x_nchw, params["conv1_w"], (1, 1), "VALID",
                                     dimension_numbers=dn)
    y = pool(jax.nn.relu(y + params["conv1_b"].reshape(1, -1, 1, 1)))
    y = jax.lax.conv_general_dilated(y, params["conv2_w"], (1, 1), "VALID",
                                     dimension_numbers=dn)
    y = pool(jax.nn.relu(y + params["conv2_b"].reshape(1, -1, 1, 1)))
    y = y.reshape(y.shape[0], -1)                         # torch.flatten(x, 1)
    y = jax.nn.relu(y @ params["fc1_w"].T + params["fc1_b"])
    y = jax.nn.relu(y @ params["fc2_w"].T + params["fc2_b"])
    return y @ params["fc3_w"].T + params["fc3_b"]


if __name__ == "__main__":
    key = jax.random.PRNGKey(0)
    k_params, k_x = jax.random.split(key)

    params = init_lenet_params(k_params)
    prepared = prepare_params(params)                     # one-time, outside jit
    # LeNet's fc1 (16*4*4) implies 28x28 inputs; batch kept small.
    x = jax.random.normal(k_x, (2, 1, 28, 28), dtype=jnp.float32)

    logits = jax.jit(lenet_forward)(prepared, x)
    jax.block_until_ready(logits)

    assert logits.shape == (2, 10)
    assert logits.dtype == jnp.float32

    # Numerical sanity check against the pure-JAX reference (tolerance covers
    # the MXU's reduced-precision f32 matmul passes).
    ref = jax.jit(lenet_reference)(params, x)
    assert jnp.allclose(logits, ref, rtol=1e-1, atol=1e-1)

    print("KERNEL_OK")
</pallas_src>

<mosaic_0001>
module attributes {stable_mosaic.version = 11 : i64} {
  func.func @kernel(%arg0: i32, %arg1: memref<2x28x28xf32, #tpu.memory_space<vmem>>, %arg2: memref<5x28x144xf32, #tpu.memory_space<vmem>>, %arg3: memref<1x144xf32, #tpu.memory_space<vmem>>, %arg4: memref<2x12x24xf32, #tpu.memory_space<vmem>>, %arg5: memref<2x144x72xf32, #tpu.memory_space<vmem>>, %arg6: memref<5x72x128xf32, #tpu.memory_space<vmem>>, %arg7: memref<1x128xf32, #tpu.memory_space<vmem>>, %arg8: memref<2x4x8xf32, #tpu.memory_space<vmem>>, %arg9: memref<2x128x64xf32, #tpu.memory_space<vmem>>, %arg10: memref<4x64x120xf32, #tpu.memory_space<vmem>>, %arg11: memref<1x120xf32, #tpu.memory_space<vmem>>, %arg12: memref<120x84xf32, #tpu.memory_space<vmem>>, %arg13: memref<1x84xf32, #tpu.memory_space<vmem>>, %arg14: memref<84x10xf32, #tpu.memory_space<vmem>>, %arg15: memref<1x10xf32, #tpu.memory_space<vmem>>, %arg16: memref<2x1x10xf32, #tpu.memory_space<vmem>>) attributes {dimension_semantics = [#tpu.dimension_semantics<parallel>], iteration_bounds = array<i64: 1>, scalar_prefetch = 0 : i64, scratch_operands = 0 : i64, tpu.core_type = #tpu.core_type<tc>, window_params = [{transform_indices = @transform_0, window_bounds = array<i64: 2, 28, 28>}, {pipeline_mode = #tpu.pipeline_mode<synchronous>, transform_indices = @transform_1, window_bounds = array<i64: 5, 28, 144>}, {pipeline_mode = #tpu.pipeline_mode<synchronous>, transform_indices = @transform_2, window_bounds = array<i64: 1, 144>}, {pipeline_mode = #tpu.pipeline_mode<synchronous>, transform_indices = @transform_3, window_bounds = array<i64: 2, 12, 24>}, {pipeline_mode = #tpu.pipeline_mode<synchronous>, transform_indices = @transform_4, window_bounds = array<i64: 2, 144, 72>}, {pipeline_mode = #tpu.pipeline_mode<synchronous>, transform_indices = @transform_5, window_bounds = array<i64: 5, 72, 128>}, {pipeline_mode = #tpu.pipeline_mode<synchronous>, transform_indices = @transform_6, window_bounds = array<i64: 1, 128>}, {pipeline_mode = #tpu.pipeline_mode<synchronous>, transform_indices = @transform_7, window_bounds = array<i64: 2, 4, 8>}, {pipeline_mode = #tpu.pipeline_mode<synchronous>, transform_indices = @transform_8, window_bounds = array<i64: 2, 128, 64>}, {pipeline_mode = #tpu.pipeline_mode<synchronous>, transform_indices = @transform_9, window_bounds = array<i64: 4, 64, 120>}, {pipeline_mode = #tpu.pipeline_mode<synchronous>, transform_indices = @transform_10, window_bounds = array<i64: 1, 120>}, {pipeline_mode = #tpu.pipeline_mode<synchronous>, transform_indices = @transform_11, window_bounds = array<i64: 120, 84>}, {pipeline_mode = #tpu.pipeline_mode<synchronous>, transform_indices = @transform_12, window_bounds = array<i64: 1, 84>}, {pipeline_mode = #tpu.pipeline_mode<synchronous>, transform_indices = @transform_13, window_bounds = array<i64: 84, 10>}, {pipeline_mode = #tpu.pipeline_mode<synchronous>, transform_indices = @transform_14, window_bounds = array<i64: 1, 10>}, {transform_indices = @transform_15, window_bounds = array<i64: 2, 1, 10>}]} {
    %c0 = arith.constant 0 : index
    %c0_0 = arith.constant 0 : index
    %c0_1 = arith.constant 0 : index
    %0 = vector.load %arg2[%c0, %c0_0, %c0_1] : memref<5x28x144xf32, #tpu.memory_space<vmem>>, vector<5x28x144xf32>
    %c0_2 = arith.constant 0 : index
    %c0_3 = arith.constant 0 : index
    %1 = vector.load %arg3[%c0_2, %c0_3] : memref<1x144xf32, #tpu.memory_space<vmem>>, vector<1x144xf32>
    %c0_4 = arith.constant 0 : index
    %c0_5 = arith.constant 0 : index
    %c0_6 = arith.constant 0 : index
    %2 = vector.load %arg4[%c0_4, %c0_5, %c0_6] : memref<2x12x24xf32, #tpu.memory_space<vmem>>, vector<2x12x24xf32>
    %c0_7 = arith.constant 0 : index
    %c0_8 = arith.constant 0 : index
    %c0_9 = arith.constant 0 : index
    %3 = vector.load %arg5[%c0_7, %c0_8, %c0_9] : memref<2x144x72xf32, #tpu.memory_space<vmem>>, vector<2x144x72xf32>
    %c0_10 = arith.constant 0 : index
    %c0_11 = arith.constant 0 : index
    %c0_12 = arith.constant 0 : index
    %4 = vector.load %arg6[%c0_10, %c0_11, %c0_12] : memref<5x72x128xf32, #tpu.memory_space<vmem>>, vector<5x72x128xf32>
    %c0_13 = arith.constant 0 : index
    %c0_14 = arith.constant 0 : index
    %5 = vector.load %arg7[%c0_13, %c0_14] : memref<1x128xf32, #tpu.memory_space<vmem>>, vector<1x128xf32>
    %c0_15 = arith.constant 0 : index
    %c0_16 = arith.constant 0 : index
    %c0_17 = arith.constant 0 : index
    %6 = vector.load %arg8[%c0_15, %c0_16, %c0_17] : memref<2x4x8xf32, #tpu.memory_space<vmem>>, vector<2x4x8xf32>
    %c0_18 = arith.constant 0 : index
    %c0_19 = arith.constant 0 : index
    %c0_20 = arith.constant 0 : index
    %7 = vector.load %arg9[%c0_18, %c0_19, %c0_20] : memref<2x128x64xf32, #tpu.memory_space<vmem>>, vector<2x128x64xf32>
    %c0_21 = arith.constant 0 : index
    %c0_22 = arith.constant 0 : index
    %c0_23 = arith.constant 0 : index
    %8 = vector.load %arg10[%c0_21, %c0_22, %c0_23] : memref<4x64x120xf32, #tpu.memory_space<vmem>>, vector<4x64x120xf32>
    %c0_24 = arith.constant 0 : index
    %c0_25 = arith.constant 0 : index
    %9 = vector.load %arg11[%c0_24, %c0_25] : memref<1x120xf32, #tpu.memory_space<vmem>>, vector<1x120xf32>
    %c0_26 = arith.constant 0 : index
    %c0_27 = arith.constant 0 : index
    %10 = vector.load %arg12[%c0_26, %c0_27] : memref<120x84xf32, #tpu.memory_space<vmem>>, vector<120x84xf32>
    %c0_28 = arith.constant 0 : index
    %c0_29 = arith.constant 0 : index
    %11 = vector.load %arg13[%c0_28, %c0_29] : memref<1x84xf32, #tpu.memory_space<vmem>>, vector<1x84xf32>
    %c0_30 = arith.constant 0 : index
    %c0_31 = arith.constant 0 : index
    %12 = vector.load %arg14[%c0_30, %c0_31] : memref<84x10xf32, #tpu.memory_space<vmem>>, vector<84x10xf32>
    %c0_32 = arith.constant 0 : index
    %c0_33 = arith.constant 0 : index
    %13 = vector.load %arg15[%c0_32, %c0_33] : memref<1x10xf32, #tpu.memory_space<vmem>>, vector<1x10xf32>
    %c0_34 = arith.constant 0 : index
    %c0_35 = arith.constant 0 : index
    %c0_36 = arith.constant 0 : index
    %14 = vector.load %arg1[%c0_34, %c0_35, %c0_36] : memref<2x28x28xf32, #tpu.memory_space<vmem>>, vector<1x28x28xf32>
    %15 = vector.shape_cast %14 : vector<1x28x28xf32> to vector<28x28xf32>
    %16 = vector.extract_strided_slice %15 {offsets = [0, 0], sizes = [24, 28], strides = [1, 1]} : vector<28x28xf32> to vector<24x28xf32>
    %17 = vector.extract_strided_slice %0 {offsets = [0, 0, 0], sizes = [1, 28, 144], strides = [1, 1, 1]} : vector<5x28x144xf32> to vector<1x28x144xf32>
    %18 = vector.shape_cast %17 : vector<1x28x144xf32> to vector<28x144xf32>
    %cst = arith.constant dense<0.000000e+00> : vector<24x144xf32>
    %19 = tpu.matmul %16, %18, %cst {dimension_numbers = #tpu.dot_dimension_numbers<[1], [0], [0], [1], [0, 0, 1, 1], [], []>} : vector<24x28xf32>, vector<28x144xf32>, vector<24x144xf32> -> vector<24x144xf32>
    %20 = vector.extract_strided_slice %15 {offsets = [1, 0], sizes = [24, 28], strides = [1, 1]} : vector<28x28xf32> to vector<24x28xf32>
    %21 = vector.extract_strided_slice %0 {offsets = [1, 0, 0], sizes = [1, 28, 144], strides = [1, 1, 1]} : vector<5x28x144xf32> to vector<1x28x144xf32>
    %22 = vector.shape_cast %21 : vector<1x28x144xf32> to vector<28x144xf32>
    %cst_37 = arith.constant dense<0.000000e+00> : vector<24x144xf32>
    %23 = tpu.matmul %20, %22, %cst_37 {dimension_numbers = #tpu.dot_dimension_numbers<[1], [0], [0], [1], [0, 0, 1, 1], [], []>} : vector<24x28xf32>, vector<28x144xf32>, vector<24x144xf32> -> vector<24x144xf32>
    %24 = arith.addf %19, %23 : vector<24x144xf32>
    %25 = vector.extract_strided_slice %15 {offsets = [2, 0], sizes = [24, 28], strides = [1, 1]} : vector<28x28xf32> to vector<24x28xf32>
    %26 = vector.extract_strided_slice %0 {offsets = [2, 0, 0], sizes = [1, 28, 144], strides = [1, 1, 1]} : vector<5x28x144xf32> to vector<1x28x144xf32>
    %27 = vector.shape_cast %26 : vector<1x28x144xf32> to vector<28x144xf32>
    %cst_38 = arith.constant dense<0.000000e+00> : vector<24x144xf32>
    %28 = tpu.matmul %25, %27, %cst_38 {dimension_numbers = #tpu.dot_dimension_numbers<[1], [0], [0], [1], [0, 0, 1, 1], [], []>} : vector<24x28xf32>, vector<28x144xf32>, vector<24x144xf32> -> vector<24x144xf32>
    %29 = arith.addf %24, %28 : vector<24x144xf32>
    %30 = vector.extract_strided_slice %15 {offsets = [3, 0], sizes = [24, 28], strides = [1, 1]} : vector<28x28xf32> to vector<24x28xf32>
    %31 = vector.extract_strided_slice %0 {offsets = [3, 0, 0], sizes = [1, 28, 144], strides = [1, 1, 1]} : vector<5x28x144xf32> to vector<1x28x144xf32>
    %32 = vector.shape_cast %31 : vector<1x28x144xf32> to vector<28x144xf32>
    %cst_39 = arith.constant dense<0.000000e+00> : vector<24x144xf32>
    %33 = tpu.matmul %30, %32, %cst_39 {dimension_numbers = #tpu.dot_dimension_numbers<[1], [0], [0], [1], [0, 0, 1, 1], [], []>} : vector<24x28xf32>, vector<28x144xf32>, vector<24x144xf32> -> vector<24x144xf32>
    %34 = arith.addf %29, %33 : vector<24x144xf32>
    %35 = vector.extract_strided_slice %15 {offsets = [4, 0], sizes = [24, 28], strides = [1, 1]} : vector<28x28xf32> to vector<24x28xf32>
    %36 = vector.extract_strided_slice %0 {offsets = [4, 0, 0], sizes = [1, 28, 144], strides = [1, 1, 1]} : vector<5x28x144xf32> to vector<1x28x144xf32>
    %37 = vector.shape_cast %36 : vector<1x28x144xf32> to vector<28x144xf32>
    %cst_40 = arith.constant dense<0.000000e+00> : vector<24x144xf32>
    %38 = tpu.matmul %35, %37, %cst_40 {dimension_numbers = #tpu.dot_dimension_numbers<[1], [0], [0], [1], [0, 0, 1, 1], [], []>} : vector<24x28xf32>, vector<28x144xf32>, vector<24x144xf32> -> vector<24x144xf32>
    %39 = arith.addf %34, %38 : vector<24x144xf32>
    %40 = vector.broadcast %1 : vector<1x144xf32> to vector<24x144xf32>
    %41 = arith.addf %39, %40 : vector<24x144xf32>
    %cst_41 = arith.constant 0.000000e+00 : f32
    %42 = vector.broadcast %cst_41 : f32 to vector<24x144xf32>
    %43 = arith.maximumf %41, %42 : vector<24x144xf32>
    %44 = vector.extract_strided_slice %2 {offsets = [0, 0, 0], sizes = [1, 12, 24], strides = [1, 1, 1]} : vector<2x12x24xf32> to vector<1x12x24xf32>
    %45 = vector.shape_cast %44 : vector<1x12x24xf32> to vector<12x24xf32>
    %cst_42 = arith.constant dense<0.000000e+00> : vector<12x144xf32>
    %46 = tpu.matmul %45, %43, %cst_42 {dimension_numbers = #tpu.dot_dimension_numbers<[1], [0], [0], [1], [0, 0, 1, 1], [], []>} : vector<12x24xf32>, vector<24x144xf32>, vector<12x144xf32> -> vector<12x144xf32>
    %47 = vector.extract_strided_slice %2 {offsets = [1, 0, 0], sizes = [1, 12, 24], strides = [1, 1, 1]} : vector<2x12x24xf32> to vector<1x12x24xf32>
    %48 = vector.shape_cast %47 : vector<1x12x24xf32> to vector<12x24xf32>
    %cst_43 = arith.constant dense<0.000000e+00> : vector<12x144xf32>
    %49 = tpu.matmul %48, %43, %cst_43 {dimension_numbers = #tpu.dot_dimension_numbers<[1], [0], [0], [1], [0, 0, 1, 1], [], []>} : vector<12x24xf32>, vector<24x144xf32>, vector<12x144xf32> -> vector<12x144xf32>
    %50 = arith.maximumf %46, %49 : vector<12x144xf32>
    %51 = vector.extract_strided_slice %3 {offsets = [0, 0, 0], sizes = [1, 144, 72], strides = [1, 1, 1]} : vector<2x144x72xf32> to vector<1x144x72xf32>
    %52 = vector.shape_cast %51 : vector<1x144x72xf32> to vector<144x72xf32>
    %cst_44 = arith.constant dense<0.000000e+00> : vector<12x72xf32>
    %53 = tpu.matmul %50, %52, %cst_44 {dimension_numbers = #tpu.dot_dimension_numbers<[1], [0], [0], [1], [0, 0, 1, 1], [], []>} : vector<12x144xf32>, vector<144x72xf32>, vector<12x72xf32> -> vector<12x72xf32>
    %54 = vector.extract_strided_slice %3 {offsets = [1, 0, 0], sizes = [1, 144, 72], strides = [1, 1, 1]} : vector<2x144x72xf32> to vector<1x144x72xf32>
    %55 = vector.shape_cast %54 : vector<1x144x72xf32> to vector<144x72xf32>
    %cst_45 = arith.constant dense<0.000000e+00> : vector<12x72xf32>
    %56 = tpu.matmul %50, %55, %cst_45 {dimension_numbers = #tpu.dot_dimension_numbers<[1], [0], [0], [1], [0, 0, 1, 1], [], []>} : vector<12x144xf32>, vector<144x72xf32>, vector<12x72xf32> -> vector<12x72xf32>
    %57 = arith.maximumf %53, %56 : vector<12x72xf32>
    %58 = vector.extract_strided_slice %57 {offsets = [0, 0], sizes = [8, 72], strides = [1, 1]} : vector<12x72xf32> to vector<8x72xf32>
    %59 = vector.extract_strided_slice %4 {offsets = [0, 0, 0], sizes = [1, 72, 128], strides = [1, 1, 1]} : vector<5x72x128xf32> to vector<1x72x128xf32>
    %60 = vector.shape_cast %59 : vector<1x72x128xf32> to vector<72x128xf32>
    %cst_46 = arith.constant dense<0.000000e+00> : vector<8x128xf32>
    %61 = tpu.matmul %58, %60, %cst_46 {dimension_numbers = #tpu.dot_dimension_numbers<[1], [0], [0], [1], [0, 0, 1, 1], [], []>} : vector<8x72xf32>, vector<72x128xf32>, vector<8x128xf32> -> vector<8x128xf32>
    %62 = vector.extract_strided_slice %57 {offsets = [1, 0], sizes = [8, 72], strides = [1, 1]} : vector<12x72xf32> to vector<8x72xf32>
    %63 = vector.extract_strided_slice %4 {offsets = [1, 0, 0], sizes = [1, 72, 128], strides = [1, 1, 1]} : vector<5x72x128xf32> to vector<1x72x128xf32>
    %64 = vector.shape_cast %63 : vector<1x72x128xf32> to vector<72x128xf32>
    %cst_47 = arith.constant dense<0.000000e+00> : vector<8x128xf32>
    %65 = tpu.matmul %62, %64, %cst_47 {dimension_numbers = #tpu.dot_dimension_numbers<[1], [0], [0], [1], [0, 0, 1, 1], [], []>} : vector<8x72xf32>, vector<72x128xf32>, vector<8x128xf32> -> vector<8x128xf32>
    %66 = arith.addf %61, %65 : vector<8x128xf32>
    %67 = vector.extract_strided_slice %57 {offsets = [2, 0], sizes = [8, 72], strides = [1, 1]} : vector<12x72xf32> to vector<8x72xf32>
    %68 = vector.extract_strided_slice %4 {offsets = [2, 0, 0], sizes = [1, 72, 128], strides = [1, 1, 1]} : vector<5x72x128xf32> to vector<1x72x128xf32>
    %69 = vector.shape_cast %68 : vector<1x72x128xf32> to vector<72x128xf32>
    %cst_48 = arith.constant dense<0.000000e+00> : vector<8x128xf32>
    %70 = tpu.matmul %67, %69, %cst_48 {dimension_numbers = #tpu.dot_dimension_numbers<[1], [0], [0], [1], [0, 0, 1, 1], [], []>} : vector<8x72xf32>, vector<72x128xf32>, vector<8x128xf32> -> vector<8x128xf32>
    %71 = arith.addf %66, %70 : vector<8x128xf32>
    %72 = vector.extract_strided_slice %57 {offsets = [3, 0], sizes = [8, 72], strides = [1, 1]} : vector<12x72xf32> to vector<8x72xf32>
    %73 = vector.extract_strided_slice %4 {offsets = [3, 0, 0], sizes = [1, 72, 128], strides = [1, 1, 1]} : vector<5x72x128xf32> to vector<1x72x128xf32>
    %74 = vector.shape_cast %73 : vector<1x72x128xf32> to vector<72x128xf32>
    %cst_49 = arith.constant dense<0.000000e+00> : vector<8x128xf32>
    %75 = tpu.matmul %72, %74, %cst_49 {dimension_numbers = #tpu.dot_dimension_numbers<[1], [0], [0], [1], [0, 0, 1, 1], [], []>} : vector<8x72xf32>, vector<72x128xf32>, vector<8x128xf32> -> vector<8x128xf32>
    %76 = arith.addf %71, %75 : vector<8x128xf32>
    %77 = vector.extract_strided_slice %57 {offsets = [4, 0], sizes = [8, 72], strides = [1, 1]} : vector<12x72xf32> to vector<8x72xf32>
    %78 = vector.extract_strided_slice %4 {offsets = [4, 0, 0], sizes = [1, 72, 128], strides = [1, 1, 1]} : vector<5x72x128xf32> to vector<1x72x128xf32>
    %79 = vector.shape_cast %78 : vector<1x72x128xf32> to vector<72x128xf32>
    %cst_50 = arith.constant dense<0.000000e+00> : vector<8x128xf32>
    %80 = tpu.matmul %77, %79, %cst_50 {dimension_numbers = #tpu.dot_dimension_numbers<[1], [0], [0], [1], [0, 0, 1, 1], [], []>} : vector<8x72xf32>, vector<72x128xf32>, vector<8x128xf32> -> vector<8x128xf32>
    %81 = arith.addf %76, %80 : vector<8x128xf32>
    %82 = vector.broadcast %5 : vector<1x128xf32> to vector<8x128xf32>
    %83 = arith.addf %81, %82 : vector<8x128xf32>
    %cst_51 = arith.constant 0.000000e+00 : f32
    %84 = vector.broadcast %cst_51 : f32 to vector<8x128xf32>
    %85 = arith.maximumf %83, %84 : vector<8x128xf32>
    %86 = vector.extract_strided_slice %6 {offsets = [0, 0, 0], sizes = [1, 4, 8], strides = [1, 1, 1]} : vector<2x4x8xf32> to vector<1x4x8xf32>
    %87 = vector.shape_cast %86 : vector<1x4x8xf32> to vector<4x8xf32>
    %cst_52 = arith.constant dense<0.000000e+00> : vector<4x128xf32>
    %88 = tpu.matmul %87, %85, %cst_52 {dimension_numbers = #tpu.dot_dimension_numbers<[1], [0], [0], [1], [0, 0, 1, 1], [], []>} : vector<4x8xf32>, vector<8x128xf32>, vector<4x128xf32> -> vector<4x128xf32>
    %89 = vector.extract_strided_slice %6 {offsets = [1, 0, 0], sizes = [1, 4, 8], strides = [1, 1, 1]} : vector<2x4x8xf32> to vector<1x4x8xf32>
    %90 = vector.shape_cast %89 : vector<1x4x8xf32> to vector<4x8xf32>
    %cst_53 = arith.constant dense<0.000000e+00> : vector<4x128xf32>
    %91 = tpu.matmul %90, %85, %cst_53 {dimension_numbers = #tpu.dot_dimension_numbers<[1], [0], [0], [1], [0, 0, 1, 1], [], []>} : vector<4x8xf32>, vector<8x128xf32>, vector<4x128xf32> -> vector<4x128xf32>
    %92 = arith.maximumf %88, %91 : vector<4x128xf32>
    %93 = vector.extract_strided_slice %7 {offsets = [0, 0, 0], sizes = [1, 128, 64], strides = [1, 1, 1]} : vector<2x128x64xf32> to vector<1x128x64xf32>
    %94 = vector.shape_cast %93 : vector<1x128x64xf32> to vector<128x64xf32>
    %cst_54 = arith.constant dense<0.000000e+00> : vector<4x64xf32>
    %95 = tpu.matmul %92, %94, %cst_54 {dimension_numbers = #tpu.dot_dimension_numbers<[1], [0], [0], [1], [0, 0, 1, 1], [], []>} : vector<4x128xf32>, vector<128x64xf32>, vector<4x64xf32> -> vector<4x64xf32>
    %96 = vector.extract_strided_slice %7 {offsets = [1, 0, 0], sizes = [1, 128, 64], strides = [1, 1, 1]} : vector<2x128x64xf32> to vector<1x128x64xf32>
    %97 = vector.shape_cast %96 : vector<1x128x64xf32> to vector<128x64xf32>
    %cst_55 = arith.constant dense<0.000000e+00> : vector<4x64xf32>
    %98 = tpu.matmul %92, %97, %cst_55 {dimension_numbers = #tpu.dot_dimension_numbers<[1], [0], [0], [1], [0, 0, 1, 1], [], []>} : vector<4x128xf32>, vector<128x64xf32>, vector<4x64xf32> -> vector<4x64xf32>
    %99 = arith.maximumf %95, %98 : vector<4x64xf32>
    %100 = vector.extract_strided_slice %99 {offsets = [0, 0], sizes = [1, 64], strides = [1, 1]} : vector<4x64xf32> to vector<1x64xf32>
    %101 = vector.extract_strided_slice %8 {offsets = [0, 0, 0], sizes = [1, 64, 120], strides = [1, 1, 1]} : vector<4x64x120xf32> to vector<1x64x120xf32>
    %102 = vector.shape_cast %101 : vector<1x64x120xf32> to vector<64x120xf32>
    %cst_56 = arith.constant dense<0.000000e+00> : vector<1x120xf32>
    %103 = tpu.matmul %100, %102, %cst_56 {dimension_numbers = #tpu.dot_dimension_numbers<[1], [0], [0], [1], [0, 0, 1, 1], [], []>} : vector<1x64xf32>, vector<64x120xf32>, vector<1x120xf32> -> vector<1x120xf32>
    %104 = vector.extract_strided_slice %99 {offsets = [1, 0], sizes = [1, 64], strides = [1, 1]} : vector<4x64xf32> to vector<1x64xf32>
    %105 = vector.extract_strided_slice %8 {offsets = [1, 0, 0], sizes = [1, 64, 120], strides = [1, 1, 1]} : vector<4x64x120xf32> to vector<1x64x120xf32>
    %106 = vector.shape_cast %105 : vector<1x64x120xf32> to vector<64x120xf32>
    %cst_57 = arith.constant dense<0.000000e+00> : vector<1x120xf32>
    %107 = tpu.matmul %104, %106, %cst_57 {dimension_numbers = #tpu.dot_dimension_numbers<[1], [0], [0], [1], [0, 0, 1, 1], [], []>} : vector<1x64xf32>, vector<64x120xf32>, vector<1x120xf32> -> vector<1x120xf32>
    %108 = arith.addf %103, %107 : vector<1x120xf32>
    %109 = vector.extract_strided_slice %99 {offsets = [2, 0], sizes = [1, 64], strides = [1, 1]} : vector<4x64xf32> to vector<1x64xf32>
    %110 = vector.extract_strided_slice %8 {offsets = [2, 0, 0], sizes = [1, 64, 120], strides = [1, 1, 1]} : vector<4x64x120xf32> to vector<1x64x120xf32>
    %111 = vector.shape_cast %110 : vector<1x64x120xf32> to vector<64x120xf32>
    %cst_58 = arith.constant dense<0.000000e+00> : vector<1x120xf32>
    %112 = tpu.matmul %109, %111, %cst_58 {dimension_numbers = #tpu.dot_dimension_numbers<[1], [0], [0], [1], [0, 0, 1, 1], [], []>} : vector<1x64xf32>, vector<64x120xf32>, vector<1x120xf32> -> vector<1x120xf32>
    %113 = arith.addf %108, %112 : vector<1x120xf32>
    %114 = vector.extract_strided_slice %99 {offsets = [3, 0], sizes = [1, 64], strides = [1, 1]} : vector<4x64xf32> to vector<1x64xf32>
    %115 = vector.extract_strided_slice %8 {offsets = [3, 0, 0], sizes = [1, 64, 120], strides = [1, 1, 1]} : vector<4x64x120xf32> to vector<1x64x120xf32>
    %116 = vector.shape_cast %115 : vector<1x64x120xf32> to vector<64x120xf32>
    %cst_59 = arith.constant dense<0.000000e+00> : vector<1x120xf32>
    %117 = tpu.matmul %114, %116, %cst_59 {dimension_numbers = #tpu.dot_dimension_numbers<[1], [0], [0], [1], [0, 0, 1, 1], [], []>} : vector<1x64xf32>, vector<64x120xf32>, vector<1x120xf32> -> vector<1x120xf32>
    %118 = arith.addf %113, %117 : vector<1x120xf32>
    %119 = arith.addf %118, %9 : vector<1x120xf32>
    %cst_60 = arith.constant 0.000000e+00 : f32
    %120 = vector.broadcast %cst_60 : f32 to vector<1x120xf32>
    %121 = arith.maximumf %119, %120 : vector<1x120xf32>
    %cst_61 = arith.constant dense<0.000000e+00> : vector<1x84xf32>
    %122 = tpu.matmul %121, %10, %cst_61 {dimension_numbers = #tpu.dot_dimension_numbers<[1], [0], [0], [1], [0, 0, 1, 1], [], []>} : vector<1x120xf32>, vector<120x84xf32>, vector<1x84xf32> -> vector<1x84xf32>
    %123 = arith.addf %122, %11 : vector<1x84xf32>
    %cst_62 = arith.constant 0.000000e+00 : f32
    %124 = vector.broadcast %cst_62 : f32 to vector<1x84xf32>
    %125 = arith.maximumf %123, %124 : vector<1x84xf32>
    %cst_63 = arith.constant dense<0.000000e+00> : vector<1x10xf32>
    %126 = tpu.matmul %125, %12, %cst_63 {dimension_numbers = #tpu.dot_dimension_numbers<[1], [0], [0], [1], [0, 0, 1, 1], [], []>} : vector<1x84xf32>, vector<84x10xf32>, vector<1x10xf32> -> vector<1x10xf32>
    %127 = arith.addf %126, %13 : vector<1x10xf32>
    %c0_64 = arith.constant 0 : index
    %c0_65 = arith.constant 0 : index
    %c0_66 = arith.constant 0 : index
    %128 = vector.load %arg16[%c0_64, %c0_65, %c0_66] : memref<2x1x10xf32, #tpu.memory_space<vmem>>, vector<1x1x10xf32>
    %129 = vector.shape_cast %128 : vector<1x1x10xf32> to vector<1x10xf32>
    %130 = vector.shape_cast %127 : vector<1x10xf32> to vector<1x1x10xf32>
    tpu.vector_store %arg16[%c0_64, %c0_65, %c0_66], %130 {strides = array<i32>} : memref<2x1x10xf32, #tpu.memory_space<vmem>>, vector<1x1x10xf32>,
    %c1 = arith.constant 1 : index
    %c0_67 = arith.constant 0 : index
    %c0_68 = arith.constant 0 : index
    %131 = vector.load %arg1[%c1, %c0_67, %c0_68] : memref<2x28x28xf32, #tpu.memory_space<vmem>>, vector<1x28x28xf32>
    %132 = vector.shape_cast %131 : vector<1x28x28xf32> to vector<28x28xf32>
    %133 = vector.extract_strided_slice %132 {offsets = [0, 0], sizes = [24, 28], strides = [1, 1]} : vector<28x28xf32> to vector<24x28xf32>
    %134 = vector.extract_strided_slice %0 {offsets = [0, 0, 0], sizes = [1, 28, 144], strides = [1, 1, 1]} : vector<5x28x144xf32> to vector<1x28x144xf32>
    %135 = vector.shape_cast %134 : vector<1x28x144xf32> to vector<28x144xf32>
    %cst_69 = arith.constant dense<0.000000e+00> : vector<24x144xf32>
    %136 = tpu.matmul %133, %135, %cst_69 {dimension_numbers = #tpu.dot_dimension_numbers<[1], [0], [0], [1], [0, 0, 1, 1], [], []>} : vector<24x28xf32>, vector<28x144xf32>, vector<24x144xf32> -> vector<24x144xf32>
    %137 = vector.extract_strided_slice %132 {offsets = [1, 0], sizes = [24, 28], strides = [1, 1]} : vector<28x28xf32> to vector<24x28xf32>
    %138 = vector.extract_strided_slice %0 {offsets = [1, 0, 0], sizes = [1, 28, 144], strides = [1, 1, 1]} : vector<5x28x144xf32> to vector<1x28x144xf32>
    %139 = vector.shape_cast %138 : vector<1x28x144xf32> to vector<28x144xf32>
    %cst_70 = arith.constant dense<0.000000e+00> : vector<24x144xf32>
    %140 = tpu.matmul %137, %139, %cst_70 {dimension_numbers = #tpu.dot_dimension_numbers<[1], [0], [0], [1], [0, 0, 1, 1], [], []>} : vector<24x28xf32>, vector<28x144xf32>, vector<24x144xf32> -> vector<24x144xf32>
    %141 = arith.addf %136, %140 : vector<24x144xf32>
    %142 = vector.extract_strided_slice %132 {offsets = [2, 0], sizes = [24, 28], strides = [1, 1]} : vector<28x28xf32> to vector<24x28xf32>
    %143 = vector.extract_strided_slice %0 {offsets = [2, 0, 0], sizes = [1, 28, 144], strides = [1, 1, 1]} : vector<5x28x144xf32> to vector<1x28x144xf32>
    %144 = vector.shape_cast %143 : vector<1x28x144xf32> to vector<28x144xf32>
    %cst_71 = arith.constant dense<0.000000e+00> : vector<24x144xf32>
    %145 = tpu.matmul %142, %144, %cst_71 {dimension_numbers = #tpu.dot_dimension_numbers<[1], [0], [0], [1], [0, 0, 1, 1], [], []>} : vector<24x28xf32>, vector<28x144xf32>, vector<24x144xf32> -> vector<24x144xf32>
    %146 = arith.addf %141, %145 : vector<24x144xf32>
    %147 = vector.extract_strided_slice %132 {offsets = [3, 0], sizes = [24, 28], strides = [1, 1]} : vector<28x28xf32> to vector<24x28xf32>
    %148 = vector.extract_strided_slice %0 {offsets = [3, 0, 0], sizes = [1, 28, 144], strides = [1, 1, 1]} : vector<5x28x144xf32> to vector<1x28x144xf32>
    %149 = vector.shape_cast %148 : vector<1x28x144xf32> to vector<28x144xf32>
    %cst_72 = arith.constant dense<0.000000e+00> : vector<24x144xf32>
    %150 = tpu.matmul %147, %149, %cst_72 {dimension_numbers = #tpu.dot_dimension_numbers<[1], [0], [0], [1], [0, 0, 1, 1], [], []>} : vector<24x28xf32>, vector<28x144xf32>, vector<24x144xf32> -> vector<24x144xf32>
    %151 = arith.addf %146, %150 : vector<24x144xf32>
    %152 = vector.extract_strided_slice %132 {offsets = [4, 0], sizes = [24, 28], strides = [1, 1]} : vector<28x28xf32> to vector<24x28xf32>
    %153 = vector.extract_strided_slice %0 {offsets = [4, 0, 0], sizes = [1, 28, 144], strides = [1, 1, 1]} : vector<5x28x144xf32> to vector<1x28x144xf32>
    %154 = vector.shape_cast %153 : vector<1x28x144xf32> to vector<28x144xf32>
    %cst_73 = arith.constant dense<0.000000e+00> : vector<24x144xf32>
    %155 = tpu.matmul %152, %154, %cst_73 {dimension_numbers = #tpu.dot_dimension_numbers<[1], [0], [0], [1], [0, 0, 1, 1], [], []>} : vector<24x28xf32>, vector<28x144xf32>, vector<24x144xf32> -> vector<24x144xf32>
    %156 = arith.addf %151, %155 : vector<24x144xf32>
    %157 = vector.broadcast %1 : vector<1x144xf32> to vector<24x144xf32>
    %158 = arith.addf %156, %157 : vector<24x144xf32>
    %cst_74 = arith.constant 0.000000e+00 : f32
    %159 = vector.broadcast %cst_74 : f32 to vector<24x144xf32>
    %160 = arith.maximumf %158, %159 : vector<24x144xf32>
    %161 = vector.extract_strided_slice %2 {offsets = [0, 0, 0], sizes = [1, 12, 24], strides = [1, 1, 1]} : vector<2x12x24xf32> to vector<1x12x24xf32>
    %162 = vector.shape_cast %161 : vector<1x12x24xf32> to vector<12x24xf32>
    %cst_75 = arith.constant dense<0.000000e+00> : vector<12x144xf32>
    %163 = tpu.matmul %162, %160, %cst_75 {dimension_numbers = #tpu.dot_dimension_numbers<[1], [0], [0], [1], [0, 0, 1, 1], [], []>} : vector<12x24xf32>, vector<24x144xf32>, vector<12x144xf32> -> vector<12x144xf32>
    %164 = vector.extract_strided_slice %2 {offsets = [1, 0, 0], sizes = [1, 12, 24], strides = [1, 1, 1]} : vector<2x12x24xf32> to vector<1x12x24xf32>
    %165 = vector.shape_cast %164 : vector<1x12x24xf32> to vector<12x24xf32>
    %cst_76 = arith.constant dense<0.000000e+00> : vector<12x144xf32>
    %166 = tpu.matmul %165, %160, %cst_76 {dimension_numbers = #tpu.dot_dimension_numbers<[1], [0], [0], [1], [0, 0, 1, 1], [], []>} : vector<12x24xf32>, vector<24x144xf32>, vector<12x144xf32> -> vector<12x144xf32>
    %167 = arith.maximumf %163, %166 : vector<12x144xf32>
    %168 = vector.extract_strided_slice %3 {offsets = [0, 0, 0], sizes = [1, 144, 72], strides = [1, 1, 1]} : vector<2x144x72xf32> to vector<1x144x72xf32>
    %169 = vector.shape_cast %168 : vector<1x144x72xf32> to vector<144x72xf32>
    %cst_77 = arith.constant dense<0.000000e+00> : vector<12x72xf32>
    %170 = tpu.matmul %167, %169, %cst_77 {dimension_numbers = #tpu.dot_dimension_numbers<[1], [0], [0], [1], [0, 0, 1, 1], [], []>} : vector<12x144xf32>, vector<144x72xf32>, vector<12x72xf32> -> vector<12x72xf32>
    %171 = vector.extract_strided_slice %3 {offsets = [1, 0, 0], sizes = [1, 144, 72], strides = [1, 1, 1]} : vector<2x144x72xf32> to vector<1x144x72xf32>
    %172 = vector.shape_cast %171 : vector<1x144x72xf32> to vector<144x72xf32>
    %cst_78 = arith.constant dense<0.000000e+00> : vector<12x72xf32>
    %173 = tpu.matmul %167, %172, %cst_78 {dimension_numbers = #tpu.dot_dimension_numbers<[1], [0], [0], [1], [0, 0, 1, 1], [], []>} : vector<12x144xf32>, vector<144x72xf32>, vector<12x72xf32> -> vector<12x72xf32>
    %174 = arith.maximumf %170, %173 : vector<12x72xf32>
    %175 = vector.extract_strided_slice %174 {offsets = [0, 0], sizes = [8, 72], strides = [1, 1]} : vector<12x72xf32> to vector<8x72xf32>
    %176 = vector.extract_strided_slice %4 {offsets = [0, 0, 0], sizes = [1, 72, 128], strides = [1, 1, 1]} : vector<5x72x128xf32> to vector<1x72x128xf32>
    %177 = vector.shape_cast %176 : vector<1x72x128xf32> to vector<72x128xf32>
    %cst_79 = arith.constant dense<0.000000e+00> : vector<8x128xf32>
    %178 = tpu.matmul %175, %177, %cst_79 {dimension_numbers = #tpu.dot_dimension_numbers<[1], [0], [0], [1], [0, 0, 1, 1], [], []>} : vector<8x72xf32>, vector<72x128xf32>, vector<8x128xf32> -> vector<8x128xf32>
    %179 = vector.extract_strided_slice %174 {offsets = [1, 0], sizes = [8, 72], strides = [1, 1]} : vector<12x72xf32> to vector<8x72xf32>
    %180 = vector.extract_strided_slice %4 {offsets = [1, 0, 0], sizes = [1, 72, 128], strides = [1, 1, 1]} : vector<5x72x128xf32> to vector<1x72x128xf32>
    %181 = vector.shape_cast %180 : vector<1x72x128xf32> to vector<72x128xf32>
    %cst_80 = arith.constant dense<0.000000e+00> : vector<8x128xf32>
    %182 = tpu.matmul %179, %181, %cst_80 {dimension_numbers = #tpu.dot_dimension_numbers<[1], [0], [0], [1], [0, 0, 1, 1], [], []>} : vector<8x72xf32>, vector<72x128xf32>, vector<8x128xf32> -> vector<8x128xf32>
    %183 = arith.addf %178, %182 : vector<8x128xf32>
    %184 = vector.extract_strided_slice %174 {offsets = [2, 0], sizes = [8, 72], strides = [1, 1]} : vector<12x72xf32> to vector<8x72xf32>
    %185 = vector.extract_strided_slice %4 {offsets = [2, 0, 0], sizes = [1, 72, 128], strides = [1, 1, 1]} : vector<5x72x128xf32> to vector<1x72x128xf32>
    %186 = vector.shape_cast %185 : vector<1x72x128xf32> to vector<72x128xf32>
    %cst_81 = arith.constant dense<0.000000e+00> : vector<8x128xf32>
    %187 = tpu.matmul %184, %186, %cst_81 {dimension_numbers = #tpu.dot_dimension_numbers<[1], [0], [0], [1], [0, 0, 1, 1], [], []>} : vector<8x72xf32>, vector<72x128xf32>, vector<8x128xf32> -> vector<8x128xf32>
    %188 = arith.addf %183, %187 : vector<8x128xf32>
    %189 = vector.extract_strided_slice %174 {offsets = [3, 0], sizes = [8, 72], strides = [1, 1]} : vector<12x72xf32> to vector<8x72xf32>
    %190 = vector.extract_strided_slice %4 {offsets = [3, 0, 0], sizes = [1, 72, 128], strides = [1, 1, 1]} : vector<5x72x128xf32> to vector<1x72x128xf32>
    %191 = vector.shape_cast %190 : vector<1x72x128xf32> to vector<72x128xf32>
    %cst_82 = arith.constant dense<0.000000e+00> : vector<8x128xf32>
    %192 = tpu.matmul %189, %191, %cst_82 {dimension_numbers = #tpu.dot_dimension_numbers<[1], [0], [0], [1], [0, 0, 1, 1], [], []>} : vector<8x72xf32>, vector<72x128xf32>, vector<8x128xf32> -> vector<8x128xf32>
    %193 = arith.addf %188, %192 : vector<8x128xf32>
    %194 = vector.extract_strided_slice %174 {offsets = [4, 0], sizes = [8, 72], strides = [1, 1]} : vector<12x72xf32> to vector<8x72xf32>
    %195 = vector.extract_strided_slice %4 {offsets = [4, 0, 0], sizes = [1, 72, 128], strides = [1, 1, 1]} : vector<5x72x128xf32> to vector<1x72x128xf32>
    %196 = vector.shape_cast %195 : vector<1x72x128xf32> to vector<72x128xf32>
    %cst_83 = arith.constant dense<0.000000e+00> : vector<8x128xf32>
    %197 = tpu.matmul %194, %196, %cst_83 {dimension_numbers = #tpu.dot_dimension_numbers<[1], [0], [0], [1], [0, 0, 1, 1], [], []>} : vector<8x72xf32>, vector<72x128xf32>, vector<8x128xf32> -> vector<8x128xf32>
    %198 = arith.addf %193, %197 : vector<8x128xf32>
    %199 = vector.broadcast %5 : vector<1x128xf32> to vector<8x128xf32>
    %200 = arith.addf %198, %199 : vector<8x128xf32>
    %cst_84 = arith.constant 0.000000e+00 : f32
    %201 = vector.broadcast %cst_84 : f32 to vector<8x128xf32>
    %202 = arith.maximumf %200, %201 : vector<8x128xf32>
    %203 = vector.extract_strided_slice %6 {offsets = [0, 0, 0], sizes = [1, 4, 8], strides = [1, 1, 1]} : vector<2x4x8xf32> to vector<1x4x8xf32>
    %204 = vector.shape_cast %203 : vector<1x4x8xf32> to vector<4x8xf32>
    %cst_85 = arith.constant dense<0.000000e+00> : vector<4x128xf32>
    %205 = tpu.matmul %204, %202, %cst_85 {dimension_numbers = #tpu.dot_dimension_numbers<[1], [0], [0], [1], [0, 0, 1, 1], [], []>} : vector<4x8xf32>, vector<8x128xf32>, vector<4x128xf32> -> vector<4x128xf32>
    %206 = vector.extract_strided_slice %6 {offsets = [1, 0, 0], sizes = [1, 4, 8], strides = [1, 1, 1]} : vector<2x4x8xf32> to vector<1x4x8xf32>
    %207 = vector.shape_cast %206 : vector<1x4x8xf32> to vector<4x8xf32>
    %cst_86 = arith.constant dense<0.000000e+00> : vector<4x128xf32>
    %208 = tpu.matmul %207, %202, %cst_86 {dimension_numbers = #tpu.dot_dimension_numbers<[1], [0], [0], [1], [0, 0, 1, 1], [], []>} : vector<4x8xf32>, vector<8x128xf32>, vector<4x128xf32> -> vector<4x128xf32>
    %209 = arith.maximumf %205, %208 : vector<4x128xf32>
    %210 = vector.extract_strided_slice %7 {offsets = [0, 0, 0], sizes = [1, 128, 64], strides = [1, 1, 1]} : vector<2x128x64xf32> to vector<1x128x64xf32>
    %211 = vector.shape_cast %210 : vector<1x128x64xf32> to vector<128x64xf32>
    %cst_87 = arith.constant dense<0.000000e+00> : vector<4x64xf32>
    %212 = tpu.matmul %209, %211, %cst_87 {dimension_numbers = #tpu.dot_dimension_numbers<[1], [0], [0], [1], [0, 0, 1, 1], [], []>} : vector<4x128xf32>, vector<128x64xf32>, vector<4x64xf32> -> vector<4x64xf32>
    %213 = vector.extract_strided_slice %7 {offsets = [1, 0, 0], sizes = [1, 128, 64], strides = [1, 1, 1]} : vector<2x128x64xf32> to vector<1x128x64xf32>
    %214 = vector.shape_cast %213 : vector<1x128x64xf32> to vector<128x64xf32>
    %cst_88 = arith.constant dense<0.000000e+00> : vector<4x64xf32>
    %215 = tpu.matmul %209, %214, %cst_88 {dimension_numbers = #tpu.dot_dimension_numbers<[1], [0], [0], [1], [0, 0, 1, 1], [], []>} : vector<4x128xf32>, vector<128x64xf32>, vector<4x64xf32> -> vector<4x64xf32>
    %216 = arith.maximumf %212, %215 : vector<4x64xf32>
    %217 = vector.extract_strided_slice %216 {offsets = [0, 0], sizes = [1, 64], strides = [1, 1]} : vector<4x64xf32> to vector<1x64xf32>
    %218 = vector.extract_strided_slice %8 {offsets = [0, 0, 0], sizes = [1, 64, 120], strides = [1, 1, 1]} : vector<4x64x120xf32> to vector<1x64x120xf32>
    %219 = vector.shape_cast %218 : vector<1x64x120xf32> to vector<64x120xf32>
    %cst_89 = arith.constant dense<0.000000e+00> : vector<1x120xf32>
    %220 = tpu.matmul %217, %219, %cst_89 {dimension_numbers = #tpu.dot_dimension_numbers<[1], [0], [0], [1], [0, 0, 1, 1], [], []>} : vector<1x64xf32>, vector<64x120xf32>, vector<1x120xf32> -> vector<1x120xf32>
    %221 = vector.extract_strided_slice %216 {offsets = [1, 0], sizes = [1, 64], strides = [1, 1]} : vector<4x64xf32> to vector<1x64xf32>
    %222 = vector.extract_strided_slice %8 {offsets = [1, 0, 0], sizes = [1, 64, 120], strides = [1, 1, 1]} : vector<4x64x120xf32> to vector<1x64x120xf32>
    %223 = vector.shape_cast %222 : vector<1x64x120xf32> to vector<64x120xf32>
    %cst_90 = arith.constant dense<0.000000e+00> : vector<1x120xf32>
    %224 = tpu.matmul %221, %223, %cst_90 {dimension_numbers = #tpu.dot_dimension_numbers<[1], [0], [0], [1], [0, 0, 1, 1], [], []>} : vector<1x64xf32>, vector<64x120xf32>, vector<1x120xf32> -> vector<1x120xf32>
    %225 = arith.addf %220, %224 : vector<1x120xf32>
    %226 = vector.extract_strided_slice %216 {offsets = [2, 0], sizes = [1, 64], strides = [1, 1]} : vector<4x64xf32> to vector<1x64xf32>
    %227 = vector.extract_strided_slice %8 {offsets = [2, 0, 0], sizes = [1, 64, 120], strides = [1, 1, 1]} : vector<4x64x120xf32> to vector<1x64x120xf32>
    %228 = vector.shape_cast %227 : vector<1x64x120xf32> to vector<64x120xf32>
    %cst_91 = arith.constant dense<0.000000e+00> : vector<1x120xf32>
    %229 = tpu.matmul %226, %228, %cst_91 {dimension_numbers = #tpu.dot_dimension_numbers<[1], [0], [0], [1], [0, 0, 1, 1], [], []>} : vector<1x64xf32>, vector<64x120xf32>, vector<1x120xf32> -> vector<1x120xf32>
    %230 = arith.addf %225, %229 : vector<1x120xf32>
    %231 = vector.extract_strided_slice %216 {offsets = [3, 0], sizes = [1, 64], strides = [1, 1]} : vector<4x64xf32> to vector<1x64xf32>
    %232 = vector.extract_strided_slice %8 {offsets = [3, 0, 0], sizes = [1, 64, 120], strides = [1, 1, 1]} : vector<4x64x120xf32> to vector<1x64x120xf32>
    %233 = vector.shape_cast %232 : vector<1x64x120xf32> to vector<64x120xf32>
    %cst_92 = arith.constant dense<0.000000e+00> : vector<1x120xf32>
    %234 = tpu.matmul %231, %233, %cst_92 {dimension_numbers = #tpu.dot_dimension_numbers<[1], [0], [0], [1], [0, 0, 1, 1], [], []>} : vector<1x64xf32>, vector<64x120xf32>, vector<1x120xf32> -> vector<1x120xf32>
    %235 = arith.addf %230, %234 : vector<1x120xf32>
    %236 = arith.addf %235, %9 : vector<1x120xf32>
    %cst_93 = arith.constant 0.000000e+00 : f32
    %237 = vector.broadcast %cst_93 : f32 to vector<1x120xf32>
    %238 = arith.maximumf %236, %237 : vector<1x120xf32>
    %cst_94 = arith.constant dense<0.000000e+00> : vector<1x84xf32>
    %239 = tpu.matmul %238, %10, %cst_94 {dimension_numbers = #tpu.dot_dimension_numbers<[1], [0], [0], [1], [0, 0, 1, 1], [], []>} : vector<1x120xf32>, vector<120x84xf32>, vector<1x84xf32> -> vector<1x84xf32>
    %240 = arith.addf %239, %11 : vector<1x84xf32>
    %cst_95 = arith.constant 0.000000e+00 : f32
    %241 = vector.broadcast %cst_95 : f32 to vector<1x84xf32>
    %242 = arith.maximumf %240, %241 : vector<1x84xf32>
    %cst_96 = arith.constant dense<0.000000e+00> : vector<1x10xf32>
    %243 = tpu.matmul %242, %12, %cst_96 {dimension_numbers = #tpu.dot_dimension_numbers<[1], [0], [0], [1], [0, 0, 1, 1], [], []>} : vector<1x84xf32>, vector<84x10xf32>, vector<1x10xf32> -> vector<1x10xf32>
    %244 = arith.addf %243, %13 : vector<1x10xf32>
    %c1_97 = arith.constant 1 : index
    %c0_98 = arith.constant 0 : index
    %c0_99 = arith.constant 0 : index
    %245 = vector.load %arg16[%c1_97, %c0_98, %c0_99] : memref<2x1x10xf32, #tpu.memory_space<vmem>>, vector<1x1x10xf32>
    %246 = vector.shape_cast %245 : vector<1x1x10xf32> to vector<1x10xf32>
    %247 = vector.shape_cast %244 : vector<1x10xf32> to vector<1x1x10xf32>
    tpu.vector_store %arg16[%c1_97, %c0_98, %c0_99], %247 {strides = array<i32>} : memref<2x1x10xf32, #tpu.memory_space<vmem>>, vector<1x1x10xf32>,
    return
  }
  func.func @transform_0(%arg0: i32) -> (i32, i32, i32) {
    %c0_i32 = arith.constant 0 : i32
    %c0_i32_0 = arith.constant 0 : i32
    %c0_i32_1 = arith.constant 0 : i32
    return %arg0, %c0_i32, %c0_i32_0 : i32, i32, i32
  }
  func.func @transform_1(%arg0: i32) -> (i32, i32, i32) {
    %c0_i32 = arith.constant 0 : i32
    %c0_i32_0 = arith.constant 0 : i32
    %c0_i32_1 = arith.constant 0 : i32
    %c0_i32_2 = arith.constant 0 : i32
    return %c0_i32, %c0_i32_0, %c0_i32_1 : i32, i32, i32
  }
  func.func @transform_2(%arg0: i32) -> (i32, i32) {
    %c0_i32 = arith.constant 0 : i32
    %c0_i32_0 = arith.constant 0 : i32
    %c0_i32_1 = arith.constant 0 : i32
    return %c0_i32, %c0_i32_0 : i32, i32
  }
  func.func @transform_3(%arg0: i32) -> (i32, i32, i32) {
    %c0_i32 = arith.constant 0 : i32
    %c0_i32_0 = arith.constant 0 : i32
    %c0_i32_1 = arith.constant 0 : i32
    %c0_i32_2 = arith.constant 0 : i32
    return %c0_i32, %c0_i32_0, %c0_i32_1 : i32, i32, i32
  }
  func.func @transform_4(%arg0: i32) -> (i32, i32, i32) {
    %c0_i32 = arith.constant 0 : i32
    %c0_i32_0 = arith.constant 0 : i32
    %c0_i32_1 = arith.constant 0 : i32
    %c0_i32_2 = arith.constant 0 : i32
    return %c0_i32, %c0_i32_0, %c0_i32_1 : i32, i32, i32
  }
  func.func @transform_5(%arg0: i32) -> (i32, i32, i32) {
    %c0_i32 = arith.constant 0 : i32
    %c0_i32_0 = arith.constant 0 : i32
    %c0_i32_1 = arith.constant 0 : i32
    %c0_i32_2 = arith.constant 0 : i32
    return %c0_i32, %c0_i32_0, %c0_i32_1 : i32, i32, i32
  }
  func.func @transform_6(%arg0: i32) -> (i32, i32) {
    %c0_i32 = arith.constant 0 : i32
    %c0_i32_0 = arith.constant 0 : i32
    %c0_i32_1 = arith.constant 0 : i32
    return %c0_i32, %c0_i32_0 : i32, i32
  }
  func.func @transform_7(%arg0: i32) -> (i32, i32, i32) {
    %c0_i32 = arith.constant 0 : i32
    %c0_i32_0 = arith.constant 0 : i32
    %c0_i32_1 = arith.constant 0 : i32
    %c0_i32_2 = arith.constant 0 : i32
    return %c0_i32, %c0_i32_0, %c0_i32_1 : i32, i32, i32
  }
  func.func @transform_8(%arg0: i32) -> (i32, i32, i32) {
    %c0_i32 = arith.constant 0 : i32
    %c0_i32_0 = arith.constant 0 : i32
    %c0_i32_1 = arith.constant 0 : i32
    %c0_i32_2 = arith.constant 0 : i32
    return %c0_i32, %c0_i32_0, %c0_i32_1 : i32, i32, i32
  }
  func.func @transform_9(%arg0: i32) -> (i32, i32, i32) {
    %c0_i32 = arith.constant 0 : i32
    %c0_i32_0 = arith.constant 0 : i32
    %c0_i32_1 = arith.constant 0 : i32
    %c0_i32_2 = arith.constant 0 : i32
    return %c0_i32, %c0_i32_0, %c0_i32_1 : i32, i32, i32
  }
  func.func @transform_10(%arg0: i32) -> (i32, i32) {
    %c0_i32 = arith.constant 0 : i32
    %c0_i32_0 = arith.constant 0 : i32
    %c0_i32_1 = arith.constant 0 : i32
    return %c0_i32, %c0_i32_0 : i32, i32
  }
  func.func @transform_11(%arg0: i32) -> (i32, i32) {
    %c0_i32 = arith.constant 0 : i32
    %c0_i32_0 = arith.constant 0 : i32
    %c0_i32_1 = arith.constant 0 : i32
    return %c0_i32, %c0_i32_0 : i32, i32
  }
  func.func @transform_12(%arg0: i32) -> (i32, i32) {
    %c0_i32 = arith.constant 0 : i32
    %c0_i32_0 = arith.constant 0 : i32
    %c0_i32_1 = arith.constant 0 : i32
    return %c0_i32, %c0_i32_0 : i32, i32
  }
  func.func @transform_13(%arg0: i32) -> (i32, i32) {
    %c0_i32 = arith.constant 0 : i32
    %c0_i32_0 = arith.constant 0 : i32
    %c0_i32_1 = arith.constant 0 : i32
    return %c0_i32, %c0_i32_0 : i32, i32
  }
  func.func @transform_14(%arg0: i32) -> (i32, i32) {
    %c0_i32 = arith.constant 0 : i32
    %c0_i32_0 = arith.constant 0 : i32
    %c0_i32_1 = arith.constant 0 : i32
    return %c0_i32, %c0_i32_0 : i32, i32
  }
  func.func @transform_15(%arg0: i32) -> (i32, i32, i32) {
    %c0_i32 = arith.constant 0 : i32
    %c0_i32_0 = arith.constant 0 : i32
    %c0_i32_1 = arith.constant 0 : i32
    return %arg0, %c0_i32, %c0_i32_0 : i32, i32, i32
  }
}

</mosaic_0001>

<bundles_post_ra>
// kernel: lenet_forward.1
= control target key start
LH: loop header
LB: loop body
LE: loop exit
PB: predicated region body
PF: predicated region fallthrough
CT: control target
= control target key end

     0   :  { %20 = vsyncpa [#allocation3], 0  ;;  %s7616_s0 = inlined_call_operand.vmem [shape: f32[2,28,28], index: 0, kind: input, shape index: {}]   ;;  %s7617_s1 = inlined_call_operand.vmem [shape: f32[5,28,144], index: 1, kind: input, shape index: {}]   ;;  %s7618_s2 = inlined_call_operand.vmem [shape: f32[1,144], index: 2, kind: input, shape index: {}]   ;;  %s7619_s3 = inlined_call_operand.vmem [shape: f32[2,12,24], index: 3, kind: input, shape index: {}]   ;;  %s7620_s4 = inlined_call_operand.vmem [shape: f32[2,144,72], index: 4, kind: input, shape index: {}]   ;;  %s7621_s5 = inlined_call_operand.vmem [shape: f32[5,72,128], index: 5, kind: input, shape index: {}]   ;;  %s7622_s6 = inlined_call_operand.hbm [shape: f32[1,128], index: 6, kind: input, shape index: {}]   ;;  %s7623_s7 = inlined_call_operand.vmem [shape: f32[2,4,8], index: 7, kind: input, shape index: {}]   ;;  %s7624_s8 = inlined_call_operand.vmem [shape: f32[2,128,64], index: 8, kind: input, shape index: {}]   ;;  %s7625_s9 = inlined_call_operand.hbm [shape: f32[4,64,120], index: 9, kind: input, shape index: {}]   ;;  %s7626_s10 = inlined_call_operand.hbm [shape: f32[1,120], index: 10, kind: input, shape index: {}]   ;;  %s7627_s11 = inlined_call_operand.vmem [shape: f32[120,84], index: 11, kind: input, shape index: {}]   ;;  %s7628_s12 = inlined_call_operand.hbm [shape: f32[1,84], index: 12, kind: input, shape index: {}]   ;;  %s7629_s13 = inlined_call_operand.vmem [shape: f32[84,10], index: 13, kind: input, shape index: {}]   ;;  %s7630_s14 = inlined_call_operand.hbm [shape: f32[1,10], index: 14, kind: input, shape index: {}]   ;;  %s7631_s15 = inlined_call_operand.hbm [shape: f32[2,1,10], index: 15, kind: output, shape index: {}]  }
   0x1   :  { %21 = vsyncpa [#allocation6], 0 }
   0x2   :  { %22 = vsyncpa [#allocation9], 0 }
   0x3   :  { %23 = vsyncpa [#allocation4], 0  ;;  %s5701_s18 = smov [#allocation5]  }
   0x4   :  { %s55_s19 = sshll.u32 %s5701_s18, 4  ;;  %s56_s19 = int_to_ptr.vmem [resolvable:$true] %s55_s19 }
   0x5   :  { %s5581_s20 = scalar_lea.vmem %s56_s19, 4096  ;;  %p5586_p1 = scmp.lt.s32.totalorder %s56_s19, %s56_s19 }
   0x6   :  { %p5582_p0 = scmp.ne.s32.totalorder %s56_s19, %s5581_s20  ;;  %p5587_p2 = scmp.lt.s32.totalorder %s5581_s20, %s5581_s20 }
   0x8   :  { %p5588_p3 = por %p5587_p2, %p5586_p1 }
   0xa   :  { %p5589_p4 = pnand %p5588_p3, %p5582_p0 }
   0xc   :  { %5592 = shalt.err (!%p5589_p4)
}
   0xd   :  { %s5702_s21 = smov 128   ;;  %s5703_s22 = smov 8  }
   0xe   :  { %61 = dma.hbm_to_vmem [thread:$0]  %s7625_s9, 4096, %s56_s19, [#allocation6], %s5702_s21, %s5702_s21, %s5703_s22  }
   0xf   :  { %s5704_s25 = smov [#allocation8]   ;;  %s5705_s27 = smov [#allocation2]  }
  0x10   :  { %s80_s26 = sshll.u32 %s5704_s25, 4  ;;  %s42_s28 = sshll.u32 %s5705_s27, 4  ;;  %s81_s26 = int_to_ptr.vmem [resolvable:$true] %s80_s26  ;;  %s43_s28 = int_to_ptr.vmem [resolvable:$true] %s42_s28 }
  0x11   :  { %s5601_s29 = scalar_lea.vmem %s81_s26, 16  ;;  %s5605_s30 = scalar_lea.vmem %s81_s26, 32 }
  0x12   :  { %p5602_p5 = scmp.ne.s32.totalorder %s81_s26, %s5601_s29  ;;  %p5606_p6 = scmp.lt.s32.totalorder %s81_s26, %s81_s26 }
  0x13   :  { %p5607_p7 = scmp.lt.s32.totalorder %s5605_s30, %s5601_s29 }
  0x15   :  { %p5608_p8 = por %p5607_p7, %p5606_p6 }
  0x17   :  { %p5609_p9 = pnand %p5608_p8, %p5602_p5 }
  0x19   :  { %5612 = shalt.err (!%p5609_p9)
}
  0x1a   :  { %83 = dma.hbm_to_vmem [thread:$0]  %s7628_s12, 16, %s81_s26, [#allocation9]  }
  0x1b   :  { %s5621_s18 = scalar_lea.vmem %s43_s28, 16  ;;  %s5625_s9 = scalar_lea.vmem %s43_s28, 32 }
  0x1c   :  { %p5622_p10 = scmp.ne.s32.totalorder %s43_s28, %s5621_s18  ;;  %p5626_p11 = scmp.lt.s32.totalorder %s43_s28, %s43_s28 }
  0x1d   :  { %p5627_p12 = scmp.lt.s32.totalorder %s5625_s9, %s5621_s18 }
  0x1f   :  { %p5628_p13 = por %p5627_p12, %p5626_p11 }
  0x21   :  { %p5629_p0 = pnand %p5628_p13, %p5622_p10 }
  0x23   :  { %5632 = shalt.err (!%p5629_p0)
}
  0x24   :  { %45 = dma.hbm_to_vmem [thread:$0]  %s7622_s6, 16, %s43_s28, [#allocation3]  }
  0x25   :  { %s5706_s21 = smov [#allocation7]   ;;  %s5707_s23 = smov [#allocation10]  }
  0x26   :  { %s68_s22 = sshll.u32 %s5706_s21, 4  ;;  %s92_s24 = sshll.u32 %s5707_s23, 4  ;;  %s69_s22 = int_to_ptr.vmem [resolvable:$true] %s68_s22  ;;  %s93_s24 = int_to_ptr.vmem [resolvable:$true] %s92_s24 }
  0x27   :  { %s5641_s25 = scalar_lea.vmem %s69_s22, 16  ;;  %s5645_s12 = scalar_lea.vmem %s69_s22, 32 }
  0x28   :  { %p5642_p1 = scmp.ne.s32.totalorder %s69_s22, %s5641_s25  ;;  %p5646_p2 = scmp.lt.s32.totalorder %s69_s22, %s69_s22 }
  0x29   :  { %p5647_p3 = scmp.lt.s32.totalorder %s5645_s12, %s5641_s25 }
  0x2b   :  { %p5648_p4 = por %p5647_p3, %p5646_p2 }
  0x2d   :  { %p5649_p5 = pnand %p5648_p4, %p5642_p1 }
  0x2f   :  { %5652 = shalt.err (!%p5649_p5)
}
  0x30   :  { %71 = dma.hbm_to_vmem [thread:$0]  %s7626_s10, 16, %s69_s22, [#allocation6]  }
  0x31   :  { %s5661_s29 = scalar_lea.vmem %s93_s24, 16  ;;  %s5665_s6 = scalar_lea.vmem %s93_s24, 32 }
  0x32   :  { %p5662_p6 = scmp.ne.s32.totalorder %s93_s24, %s5661_s29  ;;  %p5666_p7 = scmp.lt.s32.totalorder %s93_s24, %s93_s24 }
  0x33   :  { %p5667_p8 = scmp.lt.s32.totalorder %s5665_s6, %s5661_s29 }
  0x35   :  { %p5668_p9 = por %p5667_p8, %p5666_p7 }
  0x37   :  { %p5669_p10 = pnand %p5668_p9, %p5662_p6 }
  0x39   :  { %5672 = shalt.err (!%p5669_p10)
}
  0x3a   :  { %95 = dma.hbm_to_vmem [thread:$0]  %s7630_s14, 16, %s93_s24, [#allocation9]  }
  0x3b   :  { %5693 = dma.done.wait [#allocation3], 16  }
  0x3c   :  { %5694 = vsyncadd [#allocation3], 4294967280 }
  0x3d   :  { %5695 = dma.done.wait [#allocation6], 4112  }
  0x3e   :  { %5696 = vsyncadd [#allocation6], 4294963184 }
  0x3f   :  { %5697 = dma.done.wait [#allocation9], 32  }
  0x40   :  { %5698 = vsyncadd [#allocation9], 4294967264  ;;  %v5708_v0 = vmov 0.0   ;;  %vm356_vm0 = vcmask 1043456   ;;  %v126_v1 = vld [vmem:[%s7617_s1 + $0x78] sm:$0xf] }
  0x41   :  { %427 = vmatprep.mubr.f32.mxu0 %v5708_v0  ;;  %522 = vmatprep.mubr.f32.mxu1 %v5708_v0  ;;  %v118_v2 = vld [vmem:[%s7617_s1 + $0x38] sm:$0xf]  ;;  %v125_v3 = vld [vmem:[%s7617_s1 + $0x70] sm:$0xf]  ;;  %v124_v5 = vld [vmem:[%s7617_s1 + $0x68] sm:$0xff]  ;;  %vm341_vm1 = vcmask 1046528  }
  0x42   :  { %4299 = vmatprep.subr.msk.mxu0 %vm356_vm0, %v126_v1  ;;  %4304 = vmatprep.subr.msk.mxu1 %vm356_vm0, %v118_v2  ;;  %v117_v4 = vld [vmem:[%s7617_s1 + $0x30] sm:$0xf]  ;;  %v116_v6 = vld [vmem:[%s7617_s1 + $0x28] sm:$0xff]  ;;  %v123_v7 = vld [vmem:[%s7617_s1 + $0x60] sm:$0xff]  ;;  %vm349_vm2 = vcmask 228352   ;;  %vm541_vm3 = vcmask 1045504  }
  0x43   :  { %4300 = vmatpush1.msk.msra.mxu0 %vm356_vm0, %v125_v3  ;;  %4305 = vmatpush1.msk.msra.mxu1 %vm356_vm0, %v117_v4  ;;  %v115_v8 = vld [vmem:[%s7617_s1 + $0x20] sm:$0xff]  ;;  %v122_v9 = vld [vmem:[%s7617_s1 + $0x58] sm:$0xff]  ;;  %v121_v11 = vld [vmem:[%s7617_s1 + $0x50] sm:$0xff]  ;;  %vm650_vm4 = vcmask 1044480   ;;  %vm890_vm5 = vcmask 195584   ;;  %vm1061_vm6 = vcmask 130048  }
  0x44   :  { %389 = vmatprep.subr.mxu0 %v124_v5  ;;  %484 = vmatprep.subr.mxu1 %v116_v6  ;;  %v114_v10 = vld [vmem:[%s7617_s1 + $0x18] sm:$0xff]  ;;  %v113_v12 = vld [vmem:[%s7617_s1 + $0x10] sm:$0xff]  ;;  %v120_v13 = vld [vmem:[%s7617_s1 + $0x48] sm:$0xff]  ;;  %vm5709_vm7 = vmmov 0   ;;  %vm1225_vm8 = vcmask 588800   ;;  %vm1606_vm9 = vcmask 64512  }
  0x45   :  { %390 = vmatpush1.msra.mxu0 %v123_v7  ;;  %485 = vmatpush1.msra.mxu1 %v115_v8  ;;  %v112_v14 = vld [vmem:[%s7617_s1 + $0x8] sm:$0xff]  ;;  %v119_v15 = vld [vmem:[%s7617_s1 + $0x40] sm:$0xff]  ;;  %v5877_v21 = vld [vmem:[%s7616_s0 + $0x10] sm:$0xff]  ;;  %vm1897_vm10 = vcmask 523264   ;;  %vm2192_vm11 = vcmask 982016   ;;  %vm2267_vm12 = vcmask 687104  }
  0x46   :  { %391 = vmatprep.subr.mxu0 %v122_v9  ;;  %486 = vmatprep.subr.mxu1 %v114_v10  ;;  %v111_v16 = vld [vmem:[%s7617_s1] sm:$0xff]  ;;  %v5870_v18 = vld [vmem:[%s7616_s0 + $0x8] sm:$0xff]  ;;  %v345_v22 = vrot.slane %v5877_v21, 1  ;;  %v134_v24 = vld [vmem:[%s7617_s1 + $0xb8] sm:$0xf]  ;;  %v545_v47 = vrot.slane %v5877_v21, 2 }
  0x47   :  { %v5865_v17 = vld [vmem:[%s7616_s0] sm:$0xff]  ;;  %392 = vmatpush1.msra.mxu0 %v121_v11  ;;  %487 = vmatpush1.msra.mxu1 %v113_v12  ;;  %v343_v20 = vrot.slane %v5870_v18, 1  ;;  %v142_v25 = vld [vmem:[%s7617_s1 + $0xf8] sm:$0xf]  ;;  %v133_v27 = vld [vmem:[%s7617_s1 + $0xb0] sm:$0xf] }
  0x48   :  { %v342_v19 = vrot.slane %v5865_v17, 1  ;;  %393 = vmatprep.subr.mxu0 %v120_v13  ;;  %488 = vmatprep.subr.mxu1 %v112_v14  ;;  %v5890_v26 = vld [vmem:[%s7616_s0 + $0x18] sm:$0xf]  ;;  %v141_v28 = vld [vmem:[%s7617_s1 + $0xf0] sm:$0xf]  ;;  %v132_v31 = vld [vmem:[%s7617_s1 + $0xa8] sm:$0xff] }
  0x49   :  { %394 = vmatpush1.msra.mxu0 %v119_v15  ;;  %489 = vmatpush1.msra.mxu1 %v111_v16  ;;  %v346_v29 = vsel %vm341_vm1, %v343_v20, %v345_v22  ;;  %v347_v30 = vrot.slane %v5890_v26, 1  ;;  %v131_v32 = vld [vmem:[%s7617_s1 + $0xa0] sm:$0xff]  ;;  %v130_v33 = vld [vmem:[%s7617_s1 + $0x98] sm:$0xff]  ;;  %v140_v34 = vld [vmem:[%s7617_s1 + $0xe8] sm:$0xff]  ;;  %v542_v36 = vrot.slane %v5865_v17, 2  ;;  %v543_v37 = vrot.slane %v5870_v18, 2 }
  0x4a   :  { %v344_v23 = vsel %vm341_vm1, %v342_v19, %v343_v20  ;;  %4306 = vmatmul.mubr.msk.f32.vlgmr.msra.gmra.mxu1 %vm349_vm2, %v5865_v17  ;;  %4309 = vmatprep.subr.msk.mxu0 %vm356_vm0, %v134_v24  ;;  %v129_v38 = vld [vmem:[%s7617_s1 + $0x90] sm:$0xff]  ;;  %v139_v39 = vld [vmem:[%s7617_s1 + $0xe0] sm:$0xff]  ;;  %v128_v40 = vld [vmem:[%s7617_s1 + $0x88] sm:$0xff]  ;;  %v651_v43 = vrot.slane %v5865_v17, 3  ;;  %v652_v44 = vrot.slane %v5870_v18, 3  ;;  %v654_v52 = vrot.slane %v5877_v21, 3 }
  0x4b   :  { %4301 = vmatmul.mubr.msk.f32.vlgmr.msra.gmra.mxu0 %vm349_vm2, %v344_v23  ;;  %528 = vmatprep.mubr.f32.mxu1 %v5708_v0  ;;  %v348_v35 = vsel %vm341_vm1, %v345_v22, %v347_v30  ;;  %v138_v41 = vld [vmem:[%s7617_s1 + $0xd8] sm:$0xff]  ;;  %v127_v42 = vld [vmem:[%s7617_s1 + $0x80] sm:$0xff]  ;;  %v137_v45 = vld [vmem:[%s7617_s1 + $0xd0] sm:$0xff]  ;;  %v544_v46 = vsel %vm541_vm3, %v542_v36, %v543_v37  ;;  %v546_v53 = vsel %vm541_vm3, %v543_v37, %v545_v47  ;;  %v547_v54 = vrot.slane %v5890_v26, 2 }
  0x4c   :  { %433 = vmatprep.mubr.f32.mxu0 %v5708_v0  ;;  %4314 = vmatprep.subr.msk.mxu1 %vm356_vm0, %v142_v25  ;;  %v136_v48 = vld [vmem:[%s7617_s1 + $0xc8] sm:$0xff]  ;;  %v135_v49 = vld [vmem:[%s7617_s1 + $0xc0] sm:$0xff]  ;;  %v653_v50 = vsel %vm650_vm4, %v651_v43, %v652_v44  ;;  %v150_v51 = vld [vmem:[%s7617_s1 + $0x138] sm:$0xf]  ;;  %v655_v57 = vsel %vm650_vm4, %v652_v44, %v654_v52  ;;  %v656_v59 = vrot.slane %v5890_v26, 3  ;;  %v759_v62 = vrot.slane %v5865_v17, 4 }
  0x4d   :  { %4310 = vmatpush1.msk.msra.mxu0 %vm356_vm0, %v133_v27  ;;  %4315 = vmatpush1.msk.msra.mxu1 %vm356_vm0, %v141_v28  ;;  %v149_v55 = vld [vmem:[%s7617_s1 + $0x130] sm:$0xf]  ;;  %v148_v56 = vld [vmem:[%s7617_s1 + $0x128] sm:$0xff]  ;;  %v147_v58 = vld [vmem:[%s7617_s1 + $0x120] sm:$0xff]  ;;  %v548_v60 = vsel %vm541_vm3, %v545_v47, %v547_v54  ;;  %v760_v63 = vrot.slane %v5870_v18, 4  ;;  %v762_v6 = vrot.slane %v5877_v21, 4  ;;  %v868_v43 = vlaneseq }
  0x4e   :  { %4307 = vmatmul.mubr.msk.f32.gmra.mxu1 %vm349_vm2, %v5870_v18  ;;  %587 = vmatprep.subr.mxu0 %v132_v31  ;;  %v146_v61 = vld [vmem:[%s7617_s1 + $0x118] sm:$0xff]  ;;  %v145_v1 = vld [vmem:[%s7617_s1 + $0x110] sm:$0xff]  ;;  %v144_v2 = vld [vmem:[%s7617_s1 + $0x108] sm:$0xff]  ;;  %v657_v3 = vsel %vm650_vm4, %v654_v52, %v656_v59  ;;  %v764_v8 = vrot.slane %v5890_v26, 4  ;;  %vm2344_vm13 = vcmask 73728  }
  0x4f   :  { %4302 = vmatmul.mubr.msk.f32.gmra.mxu0 %vm349_vm2, %v346_v29  ;;  %534 = vmatprep.mubr.f32.mxu1 %v5708_v0  ;;  %v143_v4 = vld [vmem:[%s7617_s1 + $0x100] sm:$0xff]  ;;  %v761_v5 = vsel %vm356_vm0, %v759_v62, %v760_v63  ;;  %v763_v7 = vsel %vm356_vm0, %v760_v63, %v762_v6  ;;  %v171_v10 = vld [vmem:[%s7620_s4 + $0x78] sm:$0xff]  ;;  %v170_v11 = vld [vmem:[%s7620_s4 + $0x70] sm:$0xff] }
  0x50   :  { %439 = vmatprep.mubr.f32.mxu0 %v5708_v0  ;;  %588 = vmatpush1.msra.mxu0 %v131_v32  ;;  %v765_v9 = vsel %vm356_vm0, %v762_v6, %v764_v8  ;;  %v169_v12 = vld [vmem:[%s7620_s4 + $0x68] sm:$0xff]  ;;  %v168_v13 = vld [vmem:[%s7620_s4 + $0x60] sm:$0xff]  ;;  %v167_v14 = vld [vmem:[%s7620_s4 + $0x58] sm:$0xff] }
  0x51   :  { %589 = vmatprep.subr.mxu0 %v130_v33  ;;  %696 = vmatprep.subr.mxu1 %v140_v34  ;;  %v166_v15 = vld [vmem:[%s7620_s4 + $0x50] sm:$0xff]  ;;  %v165_v16 = vld [vmem:[%s7620_s4 + $0x48] sm:$0xff]  ;;  %v164_v17 = vld [vmem:[%s7620_s4 + $0x40] sm:$0xff] }
  0x52   :  { %4308 = vmatmul.mubr.msk.f32.gmra.mxu1 %vm349_vm2, %v5877_v21  ;;  %590 = vmatpush1.msra.mxu0 %v129_v38  ;;  %v163_v18 = vld [vmem:[%s7620_s4 + $0x38] sm:$0xff]  ;;  %v162_v19 = vld [vmem:[%s7620_s4 + $0x30] sm:$0xff]  ;;  %v161_v20 = vld [vmem:[%s7620_s4 + $0x28] sm:$0xff] }
  0x53   :  { %4303 = vmatmul.mubr.msk.f32.gmra.mxu0 %vm349_vm2, %v348_v35  ;;  %697 = vmatpush1.msra.mxu1 %v139_v39 }
  0x54   :  { %591 = vmatprep.subr.mxu0 %v128_v40  ;;  %698 = vmatprep.subr.mxu1 %v138_v41 }
  0x55   :  { %592 = vmatpush1.msra.mxu0 %v127_v42  ;;  %625 = vmatprep.mubr.f32.mxu0 %v5708_v0 }
  0x56   :  { %699 = vmatpush1.msra.mxu1 %v137_v45  ;;  %734 = vmatprep.mubr.f32.mxu1 %v5708_v0 }
  0x57   :  { %4311 = vmatmul.mubr.msk.f32.vlgmr.msra.gmra.mxu0 %vm349_vm2, %v544_v46  ;;  %700 = vmatprep.subr.mxu1 %v136_v48 }
  0x58   :  { %701 = vmatpush1.msra.mxu1 %v135_v49  ;;  %631 = vmatprep.mubr.f32.mxu0 %v5708_v0  ;;  %v869_v49 = vshrl.u32 %v868_v43, 7  ;;  %v181_v43 = vld [vmem:[%s7620_s4 + $0xc8] sm:$0xff] }
  0x59   :  { %4316 = vmatmul.mubr.msk.f32.vlgmr.msra.gmra.mxu1 %vm349_vm2, %v653_v50  ;;  %4319 = vmatprep.subr.msk.mxu0 %vm356_vm0, %v150_v51 }
  0x5a   :  { %740 = vmatprep.mubr.f32.mxu1 %v5708_v0  ;;  %4320 = vmatpush1.msk.msra.mxu0 %vm356_vm0, %v149_v55  ;;  %v870_v62 = vsub.s32 0, %v869_v49 }
  0x5b   :  { %4312 = vmatmul.mubr.msk.f32.gmra.mxu0 %vm349_vm2, %v546_v53  ;;  %804 = vmatprep.subr.mxu0 %v148_v56 }
  0x5c   :  { %637 = vmatprep.mubr.f32.mxu0 %v5708_v0  ;;  %805 = vmatpush1.msra.mxu0 %v147_v58 }
  0x5d   :  { %4317 = vmatmul.mubr.msk.f32.gmra.mxu1 %vm349_vm2, %v655_v57  ;;  %806 = vmatprep.subr.mxu0 %v146_v61 }
  0x5e   :  { %746 = vmatprep.mubr.f32.mxu1 %v5708_v0  ;;  %807 = vmatpush1.msra.mxu0 %v145_v1 }
  0x5f   :  { %4313 = vmatmul.mubr.msk.f32.gmra.mxu0 %vm349_vm2, %v548_v60  ;;  %808 = vmatprep.subr.mxu0 %v144_v2 }
  0x60   :  { %842 = vmatprep.mubr.f32.mxu0 %v5708_v0  ;;  %809 = vmatpush1.msra.mxu0 %v143_v4  ;;  %v874_v4 = vsub.s32 1, %v869_v49  ;;  %v177_v49 = vld [vmem:[%s7620_s4 + $0xa8] sm:$0xff] }
  0x61   :  { %4318 = vmatmul.mubr.msk.f32.gmra.mxu1 %vm349_vm2, %v657_v3  ;;  %1068 = vmatprep.subr.mxu0 %v5708_v0  ;;  %v151_v3 = vld [vmem:[%s7618_s2] sm:$0x3] }
  0x62   :  { %961 = vmatprep.mubr.f32.mxu1 %v5708_v0 }
  0x63   :  { %4321 = vmatmul.mubr.msk.f32.vlgmr.msra.gmra.mxu0 %vm349_vm2, %v761_v5 }
  0x64   :  { %848 = vmatprep.mubr.f32.mxu0 %v5708_v0  ;;  %1069 = vmatpush1.msra.mxu0 %v171_v10 }
  0x65   :  { %1070 = vmatprep.subr.mxu0 %v5708_v0 }
  0x66   :  { %1071 = vmatpush1.msra.mxu0 %v170_v11 }
  0x67   :  { %4322 = vmatmul.mubr.msk.f32.gmra.mxu0 %vm349_vm2, %v763_v7  ;;  %1072 = vmatprep.subr.mxu0 %v5708_v0 }
  0x68   :  { %854 = vmatprep.mubr.f32.mxu0 %v5708_v0  ;;  %1073 = vmatpush1.msra.mxu0 %v169_v12  ;;  %v6068_v12 = vrot.slane %v151_v3, %v870_v62 }
  0x69   :  { %1074 = vmatprep.subr.mxu0 %v5708_v0 }
  0x6a   :  { %1075 = vmatpush1.msra.mxu0 %v168_v13 }
  0x6b   :  { %4323 = vmatmul.mubr.msk.f32.gmra.mxu0 %vm349_vm2, %v765_v9  ;;  %1076 = vmatprep.subr.mxu0 %v5708_v0 }
  0x6c   :  { %1077 = vmatpush1.msra.mxu0 %v167_v14 }
  0x6d   :  { %1078 = vmatprep.subr.mxu0 %v5708_v0 }
  0x6e   :  { %1079 = vmatpush1.msra.mxu0 %v166_v15 }
  0x6f   :  { %1080 = vmatprep.subr.mxu0 %v5708_v0 }
  0x70   :  { %1081 = vmatpush1.msra.mxu0 %v165_v16  ;;  %v6070_v16 = vrot.slane %v151_v3, %v874_v4 }
  0x71   :  { %1082 = vmatprep.subr.mxu0 %v5708_v0 }
  0x72   :  { %1083 = vmatpush1.msra.mxu0 %v164_v17 }
  0x73   :  { %1084 = vmatprep.subr.mxu0 %v5708_v0 }
  0x74   :  { %1085 = vmatpush1.msra.mxu0 %v163_v18 }
  0x75   :  { %1086 = vmatprep.subr.mxu0 %v5708_v0 }
  0x76   :  { %1087 = vmatpush1.msra.mxu0 %v162_v19 }
  0x77   :  { %1088 = vmatprep.subr.mxu0 %v5708_v0 }
  0x78   :  { %1089 = vmatpush1.msra.mxu0 %v161_v20 }
  0x79   :  { %1090 = vmatprep.subr.mxu0 %v5708_v0 }
 0x10a   :  { %v524_v22 = vpop.f32.mrf.mxu1 }
 0x10b   :  { %v429_v21 = vpop.f32.mrf.mxu0 }
 0x10c   :  { %v526_v24 = vpop.f32.mrf.mxu1  ;;  %v525_v55 = vadd.f32 %v524_v22, %v429_v21 }
 0x10d   :  { %v431_v23 = vpop.f32.mrf.mxu0 }
 0x10e   :  { %v530_v26 = vpop.f32.mrf.mxu1  ;;  %v527_v51 = vadd.f32 %v526_v24, %v431_v23 }
 0x10f   :  { %v435_v25 = vpop.f32.mrf.mxu0 }
 0x110   :  { %v532_v28 = vpop.f32.mrf.mxu1  ;;  %v531_v47 = vadd.f32 %v530_v26, %v435_v25 }
 0x111   :  { %v437_v27 = vpop.f32.mrf.mxu0 }
 0x112   :  { %v536_v30 = vpop.f32.mrf.mxu1  ;;  %v533_v45 = vadd.f32 %v532_v28, %v437_v27 }
 0x113   :  { %v441_v29 = vpop.f32.mrf.mxu0 }
 0x114   :  { %v538_v33 = vpop.f32.mrf.mxu1  ;;  %v537_v46 = vadd.f32 %v536_v30, %v441_v29 }
 0x115   :  { %v443_v31 = vpop.f32.mrf.mxu0 }
 0x116   :  { %v539_v52 = vadd.f32 %v538_v33, %v443_v31  ;;  %v152_v31 = vld [vmem:[%s7619_s3] sm:$0xff]  ;;  %v154_v33 = vld [vmem:[%s7619_s3 + $0x10] sm:$0xff] }
 0x117   :  { %v627_v32 = vpop.f32.mrf.mxu0 }
 0x118   :  { %v644_v60 = vadd.f32 %v627_v32, %v525_v55  ;;  %v153_v32 = vld [vmem:[%s7619_s3 + $0x8] sm:$0xf]  ;;  %v174_v55 = vld [vmem:[%s7620_s4 + $0x90] sm:$0xff] }
 0x119   :  { %v629_v34 = vpop.f32.mrf.mxu0  ;;  %v736_v35 = vpop.f32.mrf.mxu1 }
 0x11a   :  { %v645_v58 = vadd.f32 %v629_v34, %v527_v51  ;;  %v753_v11 = vadd.f32 %v736_v35, %v644_v60  ;;  %v189_v34 = vld [vmem:[%s7620_s4 + $0x108] sm:$0xff]  ;;  %v188_v35 = vld [vmem:[%s7620_s4 + $0x100] sm:$0xff] }
 0x11b   :  { %v633_v36 = vpop.f32.mrf.mxu0  ;;  %v738_v37 = vpop.f32.mrf.mxu1  ;;  %v176_v51 = vld [vmem:[%s7620_s4 + $0xa0] sm:$0xff] }
 0x11c   :  { %v646_v56 = vadd.f32 %v633_v36, %v531_v47  ;;  %v754_v7 = vadd.f32 %v738_v37, %v645_v58  ;;  %v155_v36 = vld [vmem:[%s7619_s3 + $0x18] sm:$0xf]  ;;  %v178_v47 = vld [vmem:[%s7620_s4 + $0xb0] sm:$0xff]  ;;  %v172_v58 = vld [vmem:[%s7620_s4 + $0x80] sm:$0xff] }
 0x11d   :  { %v635_v38 = vpop.f32.mrf.mxu0  ;;  %v742_v39 = vpop.f32.mrf.mxu1  ;;  %v187_v37 = vld [vmem:[%s7620_s4 + $0xf8] sm:$0xff] }
 0x11e   :  { %v647_v53 = vadd.f32 %v635_v38, %v533_v45  ;;  %v755_v5 = vadd.f32 %v742_v39, %v646_v56  ;;  %v186_v38 = vld [vmem:[%s7620_s4 + $0xf0] sm:$0xff]  ;;  %v185_v39 = vld [vmem:[%s7620_s4 + $0xe8] sm:$0xff]  ;;  %v179_v45 = vld [vmem:[%s7620_s4 + $0xb8] sm:$0xff] }
 0x11f   :  { %v639_v40 = vpop.f32.mrf.mxu0  ;;  %v744_v41 = vpop.f32.mrf.mxu1  ;;  %v173_v56 = vld [vmem:[%s7620_s4 + $0x88] sm:$0xff] }
 0x120   :  { %v648_v54 = vadd.f32 %v639_v40, %v537_v46  ;;  %v756_v1 = vadd.f32 %v744_v41, %v647_v53  ;;  %v184_v40 = vld [vmem:[%s7620_s4 + $0xe0] sm:$0xff]  ;;  %v183_v41 = vld [vmem:[%s7620_s4 + $0xd8] sm:$0xff] }
 0x121   :  { %v641_v42 = vpop.f32.mrf.mxu0  ;;  %v748_v48 = vpop.f32.mrf.mxu1  ;;  %v160_v46 = vld [vmem:[%s7620_s4 + $0x20] sm:$0xff]  ;;  %v175_v53 = vld [vmem:[%s7620_s4 + $0x98] sm:$0xff] }
 0x122   :  { %v649_v59 = vadd.f32 %v641_v42, %v539_v52  ;;  %v757_v2 = vadd.f32 %v748_v48, %v648_v54  ;;  %v182_v42 = vld [vmem:[%s7620_s4 + $0xd0] sm:$0xff]  ;;  %1091 = vmatpush1.msra.mxu0 %v160_v46  ;;  %v159_v48 = vld [vmem:[%s7620_s4 + $0x18] sm:$0xff]  ;;  %v157_v52 = vld [vmem:[%s7620_s4 + $0x8] sm:$0xff] }
 0x123   :  { %v844_v44 = vpop.f32.mrf.mxu0  ;;  %v750_v61 = vpop.f32.mrf.mxu1  ;;  %1092 = vmatprep.subr.mxu0 %v5708_v0  ;;  %v156_v54 = vld [vmem:[%s7620_s4] sm:$0xff] }
 0x124   :  { %v758_v8 = vadd.f32 %v750_v61, %v649_v59  ;;  %v861_v18 = vadd.f32 %v844_v44, %v753_v11  ;;  %v180_v44 = vld [vmem:[%s7620_s4 + $0xc0] sm:$0xff]  ;;  %1093 = vmatpush1.msra.mxu0 %v159_v48  ;;  %v190_v59 = vld [vmem:[%s7620_s4 + $0x110] sm:$0xff]  ;;  %v199_v11 = vld [vmem:[%s7621_s5 + $0x38] sm:$0xff] }
 0x125   :  { %v846_v50 = vpop.f32.mrf.mxu0  ;;  %1094 = vmatprep.subr.mxu0 %v5708_v0  ;;  %v217_v48 = vld [vmem:[%s7621_s5 + $0xc8] sm:$0xff] }
 0x126   :  { %v862_v15 = vadd.f32 %v846_v50, %v754_v7  ;;  %v878_v25 = vadd.f32 %v6068_v12, %v861_v18  ;;  %v158_v50 = vld [vmem:[%s7620_s4 + $0x10] sm:$0xff]  ;;  %v209_v7 = vld [vmem:[%s7621_s5 + $0x88] sm:$0xff] }
 0x127   :  { %v850_v57 = vpop.f32.mrf.mxu0  ;;  %1095 = vmatpush1.msra.mxu0 %v158_v50  ;;  %v206_v18 = vld [vmem:[%s7621_s5 + $0x70] sm:$0xff]  ;;  %v216_v50 = vld [vmem:[%s7621_s5 + $0xc0] sm:$0xff] }
 0x128   :  { %v863_v13 = vadd.f32 %v850_v57, %v755_v5  ;;  %v879_v23 = vadd.f32 %v6070_v16, %v862_v15  ;;  %v884_v30 = vmax.f32 %v878_v25, 0.0  ;;  %1096 = vmatprep.subr.mxu0 %v5708_v0  ;;  %v191_v57 = vld [vmem:[%s7620_s4 + $0x118] sm:$0xff]  ;;  %v204_v25 = vld [vmem:[%s7621_s5 + $0x60] sm:$0xff] }
 0x129   :  { %v852_v63 = vpop.f32.mrf.mxu0  ;;  %1097 = vmatpush1.msra.mxu0 %v157_v52  ;;  %v207_v15 = vld [vmem:[%s7621_s5 + $0x78] sm:$0xff] }
 0x12a   :  { %v864_v9 = vadd.f32 %v852_v63, %v756_v1  ;;  %v880_v22 = vadd.f32 %v6068_v12, %v863_v13  ;;  %v885_v29 = vmax.f32 %v879_v23, 0.0  ;;  %1098 = vmatprep.subr.mxu0 %v5708_v0  ;;  %v208_v13 = vld [vmem:[%s7621_s5 + $0x80] sm:$0xff]  ;;  %v205_v23 = vld [vmem:[%s7621_s5 + $0x68] sm:$0xff]  ;;  %v215_v52 = vld [vmem:[%s7621_s5 + $0xb8] sm:$0xff] }
 0x12b   :  { %v856_v6 = vpop.f32.mrf.mxu0  ;;  %1099 = vmatpush1.msra.mxu0 %v156_v54 }
 0x12c   :  { %v865_v10 = vadd.f32 %v856_v6, %v757_v2  ;;  %v881_v20 = vadd.f32 %v6070_v16, %v864_v9  ;;  %v886_v28 = vmax.f32 %v880_v22, 0.0  ;;  %1128 = vmatprep.subr.mxu0 %v5708_v0  ;;  %v200_v6 = vld [vmem:[%s7621_s5 + $0x40] sm:$0xff]  ;;  %v193_v22 = vld [vmem:[%s7621_s5 + $0x8] sm:$0xff] }
 0x12d   :  { %v858_v14 = vpop.f32.mrf.mxu0  ;;  %1129 = vmatpush2.msra.mxu0 %v173_v56  ;;  %v219_v56 = vld [vmem:[%s7621_s5 + $0xd8] sm:$0xff] }
 0x12e   :  { %v866_v17 = vadd.f32 %v858_v14, %v758_v8  ;;  %v882_v19 = vadd.f32 %v6068_v12, %v865_v10  ;;  %v887_v27 = vmax.f32 %v881_v20, 0.0  ;;  %1130 = vmatprep.subr.mxu0 %v5708_v0  ;;  %v198_v14 = vld [vmem:[%s7621_s5 + $0x30] sm:$0xff]  ;;  %v195_v20 = vld [vmem:[%s7621_s5 + $0x18] sm:$0xff] }
 0x12f   :  { %1131 = vmatpush2.msra.mxu0 %v172_v58 }
 0x130   :  { %v883_v21 = vadd.f32 %v6070_v16, %v866_v17  ;;  %v888_v26 = vmax.f32 %v882_v19, 0.0  ;;  %4702 = vmatprep.subr.mxu0 %v5708_v0  ;;  %v197_v17 = vld [vmem:[%s7621_s5 + $0x28] sm:$0xff]  ;;  %v196_v19 = vld [vmem:[%s7621_s5 + $0x20] sm:$0xff] }
 0x132   :  { %v889_v24 = vmax.f32 %v883_v21, 0.0  ;;  %v194_v21 = vld [vmem:[%s7621_s5 + $0x10] sm:$0xff] }
 0x134   :  { %923 = vmatprep.subr.mxu1 %v889_v24 }
 0x135   :  { %924 = vmatpush1.msra.mxu1 %v888_v26 }
 0x136   :  { %925 = vmatprep.subr.mxu1 %v887_v27 }
 0x137   :  { %926 = vmatpush1.msra.mxu1 %v886_v28 }
 0x138   :  { %927 = vmatprep.subr.mxu1 %v885_v29 }
 0x139   :  { %928 = vmatpush1.msra.mxu1 %v884_v30 }
 0x13a   :  { %4324 = vmatmul.mubr.msk.f32.vlgmr.msra.gmra.mxu1 %vm890_vm5, %v152_v31  ;;  %1006 = vmatprep.subr.mxu1 %v889_v24  ;;  %v192_v24 = vld [vmem:[%s7621_s5] sm:$0xff] }
 0x13b   :  { %1007 = vmatpush1.msra.mxu1 %v888_v26  ;;  %967 = vmatprep.mubr.f32.mxu1 %v5708_v0  ;;  %v203_v26 = vld [vmem:[%s7621_s5 + $0x58] sm:$0xff] }
 0x13c   :  { %1008 = vmatprep.subr.mxu1 %v887_v27  ;;  %v202_v27 = vld [vmem:[%s7621_s5 + $0x50] sm:$0xff] }
 0x13d   :  { %1009 = vmatpush1.msra.mxu1 %v886_v28  ;;  %v201_v28 = vld [vmem:[%s7621_s5 + $0x48] sm:$0xff] }
 0x13e   :  { %4325 = vmatmul.mubr.msk.f32.gmra.mxu1 %vm890_vm5, %v153_v32  ;;  %1010 = vmatprep.subr.mxu1 %v885_v29  ;;  %v227_v32 = vld [vmem:[%s7621_s5 + $0x118] sm:$0xff] }
 0x13f   :  { %1011 = vmatpush1.msra.mxu1 %v884_v30  ;;  %1044 = vmatprep.mubr.f32.mxu1 %v5708_v0 }
 0x140   :  { %1143 = vmatprep.subr.mxu1 %v5708_v0 }
 0x142   :  { %4326 = vmatmul.mubr.msk.f32.vlgmr.msra.gmra.mxu1 %vm890_vm5, %v154_v33 }
 0x143   :  { %1050 = vmatprep.mubr.f32.mxu1 %v5708_v0  ;;  %1144 = vmatpush1.msra.mxu1 %v189_v34 }
 0x144   :  { %1145 = vmatprep.subr.mxu1 %v5708_v0 }
 0x145   :  { %1146 = vmatpush1.msra.mxu1 %v188_v35  ;;  %v226_v35 = vld [vmem:[%s7621_s5 + $0x110] sm:$0xff] }
 0x146   :  { %4327 = vmatmul.mubr.msk.f32.gmra.mxu1 %vm890_vm5, %v155_v36  ;;  %1147 = vmatprep.subr.mxu1 %v5708_v0 }
 0x147   :  { %1148 = vmatpush1.msra.mxu1 %v187_v37 }
 0x148   :  { %1149 = vmatprep.subr.mxu1 %v5708_v0 }
 0x149   :  { %1150 = vmatpush1.msra.mxu1 %v186_v38 }
 0x14a   :  { %1151 = vmatprep.subr.mxu1 %v5708_v0 }
 0x14b   :  { %1152 = vmatpush1.msra.mxu1 %v185_v39  ;;  %v225_v39 = vld [vmem:[%s7621_s5 + $0x108] sm:$0xff] }
 0x14c   :  { %1153 = vmatprep.subr.mxu1 %v5708_v0 }
 0x14d   :  { %1154 = vmatpush1.msra.mxu1 %v184_v40 }
 0x14e   :  { %1155 = vmatprep.subr.mxu1 %v5708_v0 }
 0x14f   :  { %1156 = vmatpush1.msra.mxu1 %v183_v41 }
 0x150   :  { %1157 = vmatprep.subr.mxu1 %v5708_v0 }
 0x151   :  { %1158 = vmatpush1.msra.mxu1 %v182_v42 }
 0x152   :  { %1159 = vmatprep.subr.mxu1 %v5708_v0 }
 0x153   :  { %1160 = vmatpush1.msra.mxu1 %v181_v43  ;;  %v224_v43 = vld [vmem:[%s7621_s5 + $0x100] sm:$0xff] }
 0x154   :  { %1161 = vmatprep.subr.mxu1 %v5708_v0 }
 0x155   :  { %1162 = vmatpush1.msra.mxu1 %v180_v44 }
 0x156   :  { %1163 = vmatprep.subr.mxu1 %v5708_v0 }
 0x157   :  { %1164 = vmatpush1.msra.mxu1 %v179_v45  ;;  %v218_v45 = vld [vmem:[%s7621_s5 + $0xd0] sm:$0xff] }
 0x158   :  { %1165 = vmatprep.subr.mxu1 %v5708_v0 }
 0x159   :  { %1166 = vmatpush1.msra.mxu1 %v178_v47  ;;  %v223_v47 = vld [vmem:[%s7621_s5 + $0xf8] sm:$0xff] }
 0x15a   :  { %1167 = vmatprep.subr.mxu1 %v5708_v0 }
 0x15b   :  { %1168 = vmatpush1.msra.mxu1 %v177_v49  ;;  %v222_v49 = vld [vmem:[%s7621_s5 + $0xf0] sm:$0xff] }
 0x15c   :  { %1169 = vmatprep.subr.mxu1 %v5708_v0 }
 0x15d   :  { %1170 = vmatpush1.msra.mxu1 %v176_v51  ;;  %v221_v51 = vld [vmem:[%s7621_s5 + $0xe8] sm:$0xff] }
 0x15e   :  { %1171 = vmatprep.subr.mxu1 %v5708_v0 }
 0x15f   :  { %1172 = vmatpush1.msra.mxu1 %v175_v53  ;;  %v220_v53 = vld [vmem:[%s7621_s5 + $0xe0] sm:$0xff] }
 0x160   :  { %1173 = vmatprep.subr.mxu1 %v5708_v0 }
 0x161   :  { %1174 = vmatpush1.msra.mxu1 %v174_v55  ;;  %v214_v55 = vld [vmem:[%s7621_s5 + $0xb0] sm:$0xff] }
 0x162   :  { %1203 = vmatprep.subr.mxu1 %v5708_v0 }
 0x163   :  { %1204 = vmatpush2.msra.mxu1 %v191_v57  ;;  %v213_v57 = vld [vmem:[%s7621_s5 + $0xa8] sm:$0xff] }
 0x164   :  { %1205 = vmatprep.subr.mxu1 %v5708_v0 }
 0x165   :  { %1206 = vmatpush2.msra.mxu1 %v190_v59 }
 0x166   :  { %4723 = vmatprep.subr.mxu1 %v5708_v0 }
 0x1fa   :  { %v963_v60 = vpop.f32.mrf.mxu1 }
 0x1fc   :  { %v965_v61 = vpop.f32.mrf.mxu1 }
 0x1fe   :  { %v969_v62 = vpop.f32.mrf.mxu1 }
 0x200   :  { %v971_v63 = vpop.f32.mrf.mxu1 }
 0x202   :  { %v1046_v1 = vpop.f32.mrf.mxu1 }
 0x203   :  { %v1057_v4 = vmax.f32 %v963_v60, %v1046_v1  ;;  %v212_v60 = vld [vmem:[%s7621_s5 + $0xa0] sm:$0xff] }
 0x204   :  { %v1048_v2 = vpop.f32.mrf.mxu1 }
 0x205   :  { %v1058_v3 = vmax.f32 %v965_v61, %v1048_v2  ;;  %v211_v61 = vld [vmem:[%s7621_s5 + $0x98] sm:$0xff]  ;;  %v236_v2 = vld [vmem:[%s7621_s5 + $0x160] sm:$0xff] }
 0x206   :  { %v1052_v5 = vpop.f32.mrf.mxu1 }
 0x207   :  { %4328 = vmatprep.mubr.msk.f32.mxu0 %vm1061_vm6, %v1058_v3  ;;  %4330 = vmatprep.mubr.msk.f32.mxu1 %vm1061_vm6, %v1058_v3  ;;  %v1059_v10 = vmax.f32 %v969_v62, %v1052_v5  ;;  %v234_v5 = vld [vmem:[%s7621_s5 + $0x150] sm:$0xff] }
 0x208   :  { %v1054_v8 = vpop.f32.mrf.mxu1  ;;  %1133 = vmatmul.mubr.f32.vlgmr.msra.gmra.mxu0 %v1057_v4  ;;  %1208 = vmatmul.mubr.f32.vlgmr.msra.gmra.mxu1 %v1057_v4  ;;  %v235_v4 = vld [vmem:[%s7621_s5 + $0x158] sm:$0xff] }
 0x209   :  { %v1060_v9 = vmax.f32 %v971_v63, %v1054_v8  ;;  %4724 = vmatpush3.msra.mxu1 %v200_v6  ;;  %4703 = vmatpush3.msra.mxu0 %v209_v7  ;;  %v210_v63 = vld [vmem:[%s7621_s5 + $0x90] sm:$0xff]  ;;  %v233_v6 = vld [vmem:[%s7621_s5 + $0x148] sm:$0xff]  ;;  %v232_v7 = vld [vmem:[%s7621_s5 + $0x140] sm:$0xff] }
 0x20a   :  { %4725 = vmatprep.subr.mxu1 %v5708_v0  ;;  %4704 = vmatprep.subr.mxu0 %v5708_v0  ;;  %v231_v8 = vld [vmem:[%s7621_s5 + $0x138] sm:$0xff] }
 0x20b   :  { %4329 = vmatprep.mubr.msk.f32.mxu0 %vm1061_vm6, %v1060_v9  ;;  %4331 = vmatprep.mubr.msk.f32.mxu1 %vm1061_vm6, %v1060_v9  ;;  %v230_v9 = vld [vmem:[%s7621_s5 + $0x130] sm:$0xff] }
 0x20c   :  { %1138 = vmatmul.mubr.f32.gmra.mxu0 %v1059_v10  ;;  %1213 = vmatmul.mubr.f32.gmra.mxu1 %v1059_v10  ;;  %v229_v10 = vld [vmem:[%s7621_s5 + $0x128] sm:$0xff] }
 0x20d   :  { %4726 = vmatpush3.msra.mxu1 %v199_v11  ;;  %4705 = vmatpush3.msra.mxu0 %v208_v13  ;;  %v228_v13 = vld [vmem:[%s7621_s5 + $0x120] sm:$0xff] }
 0x20e   :  { %4727 = vmatprep.subr.mxu1 %v5708_v0  ;;  %4706 = vmatprep.subr.mxu0 %v5708_v0 }
 0x20f   :  { %4728 = vmatpush3.msra.mxu1 %v198_v14  ;;  %4707 = vmatpush3.msra.mxu0 %v207_v15 }
 0x210   :  { %4729 = vmatprep.subr.mxu1 %v5708_v0  ;;  %4708 = vmatprep.subr.mxu0 %v5708_v0 }
 0x211   :  { %4730 = vmatpush3.msra.mxu1 %v197_v17  ;;  %4709 = vmatpush3.msra.mxu0 %v206_v18  ;;  %v271_v17 = vld [vmem:[%s7624_s8 + $0xf8] sm:$0xff]  ;;  %v270_v18 = vld [vmem:[%s7624_s8 + $0xf0] sm:$0xff] }
 0x212   :  { %4731 = vmatprep.subr.mxu1 %v5708_v0  ;;  %4710 = vmatprep.subr.mxu0 %v5708_v0 }
 0x213   :  { %4732 = vmatpush3.msra.mxu1 %v196_v19  ;;  %4711 = vmatpush3.msra.mxu0 %v205_v23  ;;  %v269_v19 = vld [vmem:[%s7624_s8 + $0xe8] sm:$0xff] }
 0x214   :  { %4733 = vmatprep.subr.mxu1 %v5708_v0  ;;  %4712 = vmatprep.subr.mxu0 %v5708_v0  ;;  %v265_v23 = vld [vmem:[%s7624_s8 + $0xc8] sm:$0xff] }
 0x215   :  { %4734 = vmatpush3.msra.mxu1 %v195_v20  ;;  %4713 = vmatpush3.msra.mxu0 %v204_v25  ;;  %v268_v20 = vld [vmem:[%s7624_s8 + $0xe0] sm:$0xff]  ;;  %v263_v25 = vld [vmem:[%s7624_s8 + $0xb8] sm:$0xff] }
 0x216   :  { %4735 = vmatprep.subr.mxu1 %v5708_v0  ;;  %4741 = vmatprep.mubr.msk.f32.mxu1 %vm5709_vm7, %v5708_v0 }
 0x217   :  { %4736 = vmatpush3.msra.mxu1 %v194_v21  ;;  %4714 = vmatprep.subr.mxu0 %v5708_v0  ;;  %v267_v21 = vld [vmem:[%s7624_s8 + $0xd8] sm:$0xff] }
 0x218   :  { %4737 = vmatprep.subr.mxu1 %v5708_v0  ;;  %4715 = vmatpush3.msra.mxu0 %v203_v26  ;;  %v262_v26 = vld [vmem:[%s7624_s8 + $0xb0] sm:$0xff] }
 0x219   :  { %4738 = vmatpush3.msra.mxu1 %v193_v22  ;;  %4720 = vmatprep.mubr.msk.f32.mxu0 %vm5709_vm7, %v5708_v0  ;;  %v266_v22 = vld [vmem:[%s7624_s8 + $0xd0] sm:$0xff] }
 0x21a   :  { %4739 = vmatprep.subr.mxu1 %v5708_v0  ;;  %4716 = vmatprep.subr.mxu0 %v5708_v0 }
 0x21b   :  { %4740 = vmatpush3.msra.mxu1 %v192_v24  ;;  %4717 = vmatpush3.msra.mxu0 %v202_v27  ;;  %v264_v24 = vld [vmem:[%s7624_s8 + $0xc0] sm:$0xff]  ;;  %v261_v27 = vld [vmem:[%s7624_s8 + $0xa8] sm:$0xff] }
 0x21c   :  { %4765 = vmatprep.subr.mxu1 %v5708_v0  ;;  %4718 = vmatprep.subr.mxu0 %v5708_v0 }
 0x21d   :  { %4719 = vmatpush3.msra.mxu0 %v201_v28  ;;  %v260_v28 = vld [vmem:[%s7624_s8 + $0xa0] sm:$0xff] }
 0x21e   :  { %4744 = vmatprep.subr.mxu0 %v5708_v0 }
 0x2c8   :  { %v1134_v29 = vpop.f32.mrf.mxu0  ;;  %v1209_v30 = vpop.f32.mrf.mxu1 }
 0x2c9   :  { %v6278_v31 = vmax.f32 %v1134_v29, %v1209_v30 }
 0x2ca   :  { %v1136_v33 = vpop.f32.mrf.mxu0  ;;  %v1211_v34 = vpop.f32.mrf.mxu1 }
 0x2cb   :  { %4742 = vmatmul.mubr.msk.f32.vlgmr.msra.gmra.mxu1 %vm1225_vm8, %v6278_v31  ;;  %v1222_v44 = vrot.slane %v6278_v31, 1  ;;  %v1446_v58 = vrot.slane %v6278_v31, 3  ;;  %v1370_v1 = vrot.slane %v6278_v31, 2  ;;  %v1522_v14 = vrot.slane %v6278_v31, 4 }
 0x2cc   :  { %4766 = vmatpush3.msra.mxu1 %v227_v32  ;;  %v1139_v36 = vpop.f32.mrf.mxu0  ;;  %v1214_v37 = vpop.f32.mrf.mxu1  ;;  %4783 = vmatprep.mubr.msk.f32.mxu1 %vm5709_vm7, %v5708_v0 }
 0x2cd   :  { %v6290_v38 = vmax.f32 %v1139_v36, %v1214_v37  ;;  %4767 = vmatprep.subr.mxu1 %v5708_v0 }
 0x2ce   :  { %4768 = vmatpush3.msra.mxu1 %v226_v35  ;;  %v1141_v40 = vpop.f32.mrf.mxu0  ;;  %v1216_v41 = vpop.f32.mrf.mxu1 }
 0x2cf   :  { %v1223_v42 = vrot.slane %v6290_v38, 1  ;;  %4769 = vmatprep.subr.mxu1 %v5708_v0  ;;  %v1447_v54 = vrot.slane %v6290_v38, 3  ;;  %v1371_v62 = vrot.slane %v6290_v38, 2  ;;  %v1523_v11 = vrot.slane %v6290_v38, 4  ;;  %v4337_v40 = vld [vmem:[#allocation2] ss:$0 sm:$0xff] }
 0x2d0   :  { %4770 = vmatpush3.msra.mxu1 %v225_v39 }
 0x2d1   :  { %4771 = vmatprep.subr.mxu1 %v5708_v0  ;;  %v1224_v46 = vsel %vm341_vm1, %v1222_v44, %v1223_v42  ;;  %v1448_v59 = vsel %vm650_vm4, %v1446_v58, %v1447_v54  ;;  %v1372_v3 = vsel %vm541_vm3, %v1370_v1, %v1371_v62  ;;  %v1524_v15 = vsel %vm356_vm0, %v1522_v14, %v1523_v11  ;;  %v249_v54 = vld [vmem:[%s7624_s8 + $0x48] sm:$0xff]  ;;  %v242_v62 = vld [vmem:[%s7624_s8 + $0x10] sm:$0xff] }
 0x2d2   :  { %4772 = vmatpush3.msra.mxu1 %v224_v43  ;;  %4721 = vmatmul.mubr.msk.f32.vlgmr.msra.gmra.mxu0 %vm1225_vm8, %v1224_v46  ;;  %v238_v46 = vld [vmem:[%s7623_s7] sm:$0xf]  ;;  %v245_v58 = vld [vmem:[%s7624_s8 + $0x28] sm:$0xff]  ;;  %v286_v14 = vld [vmem:[#allocation5 + $0x70] sm:$0xff] }
 0x2d3   :  { %4745 = vmatpush3.msra.mxu0 %v218_v45  ;;  %4773 = vmatprep.subr.mxu1 %v5708_v0  ;;  %v241_v1 = vld [vmem:[%s7624_s8 + $0x8] sm:$0xff] }
 0x2d4   :  { %4746 = vmatprep.subr.mxu0 %v5708_v0  ;;  %4774 = vmatpush3.msra.mxu1 %v223_v47  ;;  %v239_v47 = vld [vmem:[%s7623_s7 + $0x4] sm:$0xf] }
 0x2d5   :  { %4747 = vmatpush3.msra.mxu0 %v217_v48  ;;  %4775 = vmatprep.subr.mxu1 %v5708_v0  ;;  %v255_v48 = vld [vmem:[%s7624_s8 + $0x78] sm:$0xff] }
 0x2d6   :  { %4748 = vmatprep.subr.mxu0 %v5708_v0  ;;  %4776 = vmatpush3.msra.mxu1 %v222_v49  ;;  %v254_v49 = vld [vmem:[%s7624_s8 + $0x70] sm:$0xff] }
 0x2d7   :  { %4749 = vmatpush3.msra.mxu0 %v216_v50  ;;  %4777 = vmatprep.subr.mxu1 %v5708_v0  ;;  %v253_v50 = vld [vmem:[%s7624_s8 + $0x68] sm:$0xff] }
 0x2d8   :  { %4750 = vmatprep.subr.mxu0 %v5708_v0  ;;  %4778 = vmatpush3.msra.mxu1 %v221_v51  ;;  %v252_v51 = vld [vmem:[%s7624_s8 + $0x60] sm:$0xff] }
 0x2d9   :  { %4751 = vmatpush3.msra.mxu0 %v215_v52  ;;  %4779 = vmatprep.subr.mxu1 %v5708_v0  ;;  %v251_v52 = vld [vmem:[%s7624_s8 + $0x58] sm:$0xff] }
 0x2da   :  { %4752 = vmatprep.subr.mxu0 %v5708_v0  ;;  %4780 = vmatpush3.msra.mxu1 %v220_v53  ;;  %v250_v53 = vld [vmem:[%s7624_s8 + $0x50] sm:$0xff] }
 0x2db   :  { %4753 = vmatpush3.msra.mxu0 %v214_v55  ;;  %4781 = vmatprep.subr.mxu1 %v5708_v0  ;;  %v248_v55 = vld [vmem:[%s7624_s8 + $0x40] sm:$0xff] }
 0x2dc   :  { %4754 = vmatprep.subr.mxu0 %v5708_v0  ;;  %4782 = vmatpush3.msra.mxu1 %v219_v56  ;;  %v247_v56 = vld [vmem:[%s7624_s8 + $0x38] sm:$0xff] }
 0x2dd   :  { %4755 = vmatpush3.msra.mxu0 %v213_v57  ;;  %4784 = vmatmul.mubr.msk.f32.vlgmr.msra.gmra.mxu1 %vm1225_vm8, %v1448_v59  ;;  %v246_v57 = vld [vmem:[%s7624_s8 + $0x30] sm:$0xff]  ;;  %v244_v59 = vld [vmem:[%s7624_s8 + $0x20] sm:$0xff] }
 0x2de   :  { %4756 = vmatprep.subr.mxu0 %v5708_v0  ;;  %4762 = vmatprep.mubr.msk.f32.mxu0 %vm5709_vm7, %v5708_v0 }
 0x2df   :  { %4757 = vmatpush3.msra.mxu0 %v212_v60  ;;  %4807 = vmatprep.subr.mxu1 %v5708_v0  ;;  %v243_v60 = vld [vmem:[%s7624_s8 + $0x18] sm:$0xff] }
 0x2e0   :  { %4758 = vmatprep.subr.mxu0 %v5708_v0  ;;  %4809 = vmatprep.mubr.msk.f32.mxu1 %vm5709_vm7, %v5708_v0 }
 0x2e1   :  { %4759 = vmatpush3.msra.mxu0 %v211_v61  ;;  %v259_v61 = vld [vmem:[%s7624_s8 + $0x98] sm:$0xff] }
 0x2e2   :  { %4760 = vmatprep.subr.mxu0 %v5708_v0 }
 0x2e3   :  { %4761 = vmatpush3.msra.mxu0 %v210_v63  ;;  %v258_v63 = vld [vmem:[%s7624_s8 + $0x90] sm:$0xff] }
 0x2e4   :  { %4763 = vmatmul.mubr.msk.f32.vlgmr.msra.gmra.mxu0 %vm1225_vm8, %v1372_v3  ;;  %4786 = vmatprep.subr.mxu0 %v5708_v0  ;;  %v240_v3 = vld [vmem:[%s7624_s8] sm:$0xff] }
 0x2e5   :  { %4787 = vmatpush3.msra.mxu0 %v236_v2  ;;  %4804 = vmatprep.mubr.msk.f32.mxu0 %vm5709_vm7, %v5708_v0  ;;  %v257_v2 = vld [vmem:[%s7624_s8 + $0x88] sm:$0xff] }
 0x2e6   :  { %4788 = vmatprep.subr.mxu0 %v5708_v0 }
 0x2e7   :  { %4789 = vmatpush3.msra.mxu0 %v235_v4  ;;  %v256_v4 = vld [vmem:[%s7624_s8 + $0x80] sm:$0xff] }
 0x2e8   :  { %4790 = vmatprep.subr.mxu0 %v5708_v0 }
 0x2e9   :  { %4791 = vmatpush3.msra.mxu0 %v234_v5 }
 0x2ea   :  { %4792 = vmatprep.subr.mxu0 %v5708_v0 }
 0x2eb   :  { %4793 = vmatpush3.msra.mxu0 %v233_v6 }
 0x2ec   :  { %4794 = vmatprep.subr.mxu0 %v5708_v0 }
 0x2ed   :  { %4795 = vmatpush3.msra.mxu0 %v232_v7 }
 0x2ee   :  { %4796 = vmatprep.subr.mxu0 %v5708_v0 }
 0x2ef   :  { %4797 = vmatpush3.msra.mxu0 %v231_v8 }
 0x2f0   :  { %4798 = vmatprep.subr.mxu0 %v5708_v0 }
 0x2f1   :  { %4799 = vmatpush3.msra.mxu0 %v230_v9  ;;  %v279_v9 = vld [vmem:[#allocation5 + $0x38] sm:$0xff] }
 0x2f2   :  { %4800 = vmatprep.subr.mxu0 %v5708_v0 }
 0x2f3   :  { %4801 = vmatpush3.msra.mxu0 %v229_v10  ;;  %v287_v10 = vld [vmem:[#allocation5 + $0x78] sm:$0xff] }
 0x2f4   :  { %4802 = vmatprep.subr.mxu0 %v5708_v0 }
 0x2f5   :  { %4803 = vmatpush3.msra.mxu0 %v228_v13  ;;  %v278_v13 = vld [vmem:[#allocation5 + $0x30] sm:$0xff] }
 0x2f6   :  { %4805 = vmatmul.mubr.msk.f32.vlgmr.msra.gmra.mxu0 %vm1225_vm8, %v1524_v15  ;;  %4852 = vmatprep.subr.mxu0 %v5708_v0  ;;  %v277_v15 = vld [vmem:[#allocation5 + $0x28] sm:$0xff] }
 0x2f7   :  { %4884 = vmatprep.mubr.msk.f32.mxu0 %vm5709_vm7, %v5708_v0  ;;  %4853 = vmatpush3.msra.mxu0 %v271_v17  ;;  %v285_v17 = vld [vmem:[#allocation5 + $0x68] sm:$0xff] }
 0x2f8   :  { %4854 = vmatprep.subr.mxu0 %v5708_v0 }
 0x2f9   :  { %4855 = vmatpush3.msra.mxu0 %v270_v18  ;;  %v276_v18 = vld [vmem:[#allocation5 + $0x20] sm:$0xff] }
 0x2fa   :  { %4856 = vmatprep.subr.mxu0 %v5708_v0 }
 0x2fb   :  { %4857 = vmatpush3.msra.mxu0 %v269_v19  ;;  %v284_v19 = vld [vmem:[#allocation5 + $0x60] sm:$0xff] }
 0x2fc   :  { %4858 = vmatprep.subr.mxu0 %v5708_v0 }
 0x2fd   :  { %4859 = vmatpush3.msra.mxu0 %v268_v20  ;;  %v275_v20 = vld [vmem:[#allocation5 + $0x18] sm:$0xff] }
 0x2fe   :  { %4860 = vmatprep.subr.mxu0 %v5708_v0 }
 0x2ff   :  { %4861 = vmatpush3.msra.mxu0 %v267_v21  ;;  %v283_v21 = vld [vmem:[#allocation5 + $0x58] sm:$0xff] }
 0x300   :  { %4862 = vmatprep.subr.mxu0 %v5708_v0 }
 0x301   :  { %4863 = vmatpush3.msra.mxu0 %v266_v22  ;;  %v274_v22 = vld [vmem:[#allocation5 + $0x10] sm:$0xff] }
 0x302   :  { %4864 = vmatprep.subr.mxu0 %v5708_v0 }
 0x303   :  { %4865 = vmatpush3.msra.mxu0 %v265_v23  ;;  %v282_v23 = vld [vmem:[#allocation5 + $0x50] sm:$0xff] }
 0x304   :  { %4866 = vmatprep.subr.mxu0 %v5708_v0 }
 0x305   :  { %4867 = vmatpush3.msra.mxu0 %v264_v24  ;;  %v273_v24 = vld [vmem:[#allocation5 + $0x8] sm:$0xff] }
 0x306   :  { %4868 = vmatprep.subr.mxu0 %v5708_v0 }
 0x307   :  { %4869 = vmatpush3.msra.mxu0 %v263_v25  ;;  %v281_v25 = vld [vmem:[#allocation5 + $0x48] sm:$0xff] }
 0x308   :  { %4870 = vmatprep.subr.mxu0 %v5708_v0 }
 0x309   :  { %4871 = vmatpush3.msra.mxu0 %v262_v26  ;;  %v272_v26 = vld [vmem:[#allocation5] sm:$0xff] }
 0x30a   :  { %4872 = vmatprep.subr.mxu0 %v5708_v0 }
 0x30b   :  { %4873 = vmatpush3.msra.mxu0 %v261_v27  ;;  %v280_v27 = vld [vmem:[#allocation5 + $0x40] sm:$0xff] }
 0x30c   :  { %4874 = vmatprep.subr.mxu0 %v5708_v0 }
 0x30d   :  { %4875 = vmatpush3.msra.mxu0 %v260_v28 }
 0x30e   :  { %4876 = vmatprep.subr.mxu0 %v5708_v0 }
 0x30f   :  { %4877 = vmatpush3.msra.mxu0 %v259_v61  ;;  %v310_v61 = vld [vmem:[%s7627_s11 + $0x28] sm:$0xff] }
 0x310   :  { %4878 = vmatprep.subr.mxu0 %v5708_v0 }
 0x311   :  { %4879 = vmatpush3.msra.mxu0 %v258_v63  ;;  %v308_v63 = vld [vmem:[%s7627_s11 + $0x18] sm:$0xff] }
 0x312   :  { %4880 = vmatprep.subr.mxu0 %v5708_v0 }
 0x313   :  { %4881 = vmatpush3.msra.mxu0 %v257_v2  ;;  %v306_v2 = vld [vmem:[%s7627_s11 + $0x8] sm:$0xff] }
 0x314   :  { %4882 = vmatprep.subr.mxu0 %v5708_v0 }
 0x315   :  { %4883 = vmatpush3.msra.mxu0 %v256_v4  ;;  %v331_v4 = vld [vmem:[%s7629_s13 + $0x50] sm:$0xf] }
 0x316   :  { %4906 = vmatprep.subr.mxu0 %v5708_v0 }
 0x38b   :  { %v1366_v29 = vpop.f32.mrf.mxu1 }
 0x38d   :  { %v4743_v30 = vpop.f32.mrf.mxu1 }
 0x392   :  { %v1294_v31 = vpop.f32.mrf.mxu0 }
 0x393   :  { %v1367_v37 = vadd.f32 %v1366_v29, %v1294_v31  ;;  %v303_v31 = vld [vmem:[#allocation5 + $0xf8] sm:$0xff] }
 0x394   :  { %v4722_v32 = vpop.f32.mrf.mxu0 }
 0x39d   :  { %v1517_v33 = vpop.f32.mrf.mxu1 }
 0x39f   :  { %v4785_v34 = vpop.f32.mrf.mxu1 }
 0x3a4   :  { %v1441_v35 = vpop.f32.mrf.mxu0 }
 0x3a5   :  { %v1445_v38 = vadd.f32 %v1441_v35, %v1367_v37  ;;  %v295_v35 = vld [vmem:[#allocation5 + $0xb8] sm:$0xff]  ;;  %v294_v37 = vld [vmem:[#allocation5 + $0xb0] sm:$0xff] }
 0x3a6   :  { %v4764_v36 = vpop.f32.mrf.mxu0 }
 0x3a7   :  { %v1521_v39 = vadd.f32 %v1517_v33, %v1445_v38  ;;  %v302_v36 = vld [vmem:[#allocation5 + $0xf0] sm:$0xff]  ;;  %v301_v38 = vld [vmem:[#allocation5 + $0xe8] sm:$0xff] }
 0x3b6   :  { %v1593_v41 = vpop.f32.mrf.mxu0 }
 0x3b7   :  { %v1597_v42 = vadd.f32 %v1593_v41, %v1521_v39  ;;  %v293_v39 = vld [vmem:[#allocation5 + $0xa8] sm:$0xff]  ;;  %v292_v41 = vld [vmem:[#allocation5 + $0xa0] sm:$0xff] }
 0x3b8   :  { %v4806_v43 = vpop.f32.mrf.mxu0 }
 0x3b9   :  { %v1604_v44 = vadd.f32 %v4337_v40, %v1597_v42  ;;  %v300_v40 = vld [vmem:[#allocation5 + $0xe0] sm:$0xff]  ;;  %v299_v42 = vld [vmem:[#allocation5 + $0xd8] sm:$0xff] }
 0x3ba   :  { %v291_v43 = vld [vmem:[#allocation5 + $0x98] sm:$0xff] }
 0x3bb   :  { %v1605_v45 = vmax.f32 %v1604_v44, 0.0  ;;  %v298_v44 = vld [vmem:[#allocation5 + $0xd0] sm:$0xff] }
 0x3bd   :  { %4808 = vmatpush3.msra.mxu1 %v1605_v45 }
 0x3be   :  { %4810 = vmatmul.mubr.msk.f32.vlgmr.msra.gmra.mxu1 %vm1606_vm9, %v238_v46  ;;  %4812 = vmatprep.subr.mxu1 %v5708_v0  ;;  %v297_v46 = vld [vmem:[#allocation5 + $0xc8] sm:$0xff] }
 0x3bf   :  { %4813 = vmatpush3.msra.mxu1 %v1605_v45  ;;  %4814 = vmatprep.mubr.msk.f32.mxu1 %vm5709_vm7, %v5708_v0  ;;  %v290_v45 = vld [vmem:[#allocation5 + $0x90] sm:$0xff] }
 0x3c0   :  { %4817 = vmatprep.subr.mxu1 %v5708_v0 }
 0x3c2   :  { %4815 = vmatmul.mubr.msk.f32.vlgmr.msra.gmra.mxu1 %vm1606_vm9, %v239_v47  ;;  %v289_v47 = vld [vmem:[#allocation5 + $0x88] sm:$0xff] }
 0x3c3   :  { %4818 = vmatpush3.msra.mxu1 %v255_v48  ;;  %4849 = vmatprep.mubr.msk.f32.mxu1 %vm5709_vm7, %v5708_v0  ;;  %v296_v48 = vld [vmem:[#allocation5 + $0xc0] sm:$0xff] }
 0x3c4   :  { %4819 = vmatprep.subr.mxu1 %v5708_v0 }
 0x3c5   :  { %4820 = vmatpush3.msra.mxu1 %v254_v49 }
 0x3c6   :  { %4821 = vmatprep.subr.mxu1 %v5708_v0 }
 0x3c7   :  { %4822 = vmatpush3.msra.mxu1 %v253_v50  ;;  %v288_v50 = vld [vmem:[#allocation5 + $0x80] sm:$0xff] }
 0x3c8   :  { %4823 = vmatprep.subr.mxu1 %v5708_v0 }
 0x3c9   :  { %4824 = vmatpush3.msra.mxu1 %v252_v51 }
 0x3ca   :  { %4825 = vmatprep.subr.mxu1 %v5708_v0 }
 0x3cb   :  { %4826 = vmatpush3.msra.mxu1 %v251_v52  ;;  %v319_v52 = vld [vmem:[%s7627_s11 + $0x70] sm:$0xff] }
 0x3cc   :  { %4827 = vmatprep.subr.mxu1 %v5708_v0 }
 0x3cd   :  { %4828 = vmatpush3.msra.mxu1 %v250_v53  ;;  %v318_v53 = vld [vmem:[%s7627_s11 + $0x68] sm:$0xff] }
 0x3ce   :  { %4829 = vmatprep.subr.mxu1 %v5708_v0 }
 0x3cf   :  { %4830 = vmatpush3.msra.mxu1 %v249_v54  ;;  %v317_v54 = vld [vmem:[%s7627_s11 + $0x60] sm:$0xff] }
 0x3d0   :  { %4831 = vmatprep.subr.mxu1 %v5708_v0 }
 0x3d1   :  { %4832 = vmatpush3.msra.mxu1 %v248_v55  ;;  %v316_v55 = vld [vmem:[%s7627_s11 + $0x58] sm:$0xff] }
 0x3d2   :  { %4833 = vmatprep.subr.mxu1 %v5708_v0 }
 0x3d3   :  { %4834 = vmatpush3.msra.mxu1 %v247_v56  ;;  %v315_v56 = vld [vmem:[%s7627_s11 + $0x50] sm:$0xff] }
 0x3d4   :  { %4835 = vmatprep.subr.mxu1 %v5708_v0 }
 0x3d5   :  { %4836 = vmatpush3.msra.mxu1 %v246_v57  ;;  %v314_v57 = vld [vmem:[%s7627_s11 + $0x48] sm:$0xff] }
 0x3d6   :  { %4837 = vmatprep.subr.mxu1 %v5708_v0 }
 0x3d7   :  { %4838 = vmatpush3.msra.mxu1 %v245_v58  ;;  %v313_v58 = vld [vmem:[%s7627_s11 + $0x40] sm:$0xff] }
 0x3d8   :  { %4839 = vmatprep.subr.mxu1 %v5708_v0 }
 0x3d9   :  { %4840 = vmatpush3.msra.mxu1 %v244_v59  ;;  %v312_v59 = vld [vmem:[%s7627_s11 + $0x38] sm:$0xff] }
 0x3da   :  { %4841 = vmatprep.subr.mxu1 %v5708_v0 }
 0x3db   :  { %4842 = vmatpush3.msra.mxu1 %v243_v60  ;;  %v311_v60 = vld [vmem:[%s7627_s11 + $0x30] sm:$0xff] }
 0x3dc   :  { %4843 = vmatprep.subr.mxu1 %v5708_v0 }
 0x3dd   :  { %4844 = vmatpush3.msra.mxu1 %v242_v62  ;;  %v309_v62 = vld [vmem:[%s7627_s11 + $0x20] sm:$0xff] }
 0x3de   :  { %4845 = vmatprep.subr.mxu1 %v5708_v0 }
 0x3df   :  { %4846 = vmatpush3.msra.mxu1 %v241_v1  ;;  %v307_v1 = vld [vmem:[%s7627_s11 + $0x10] sm:$0xff] }
 0x3e0   :  { %4847 = vmatprep.subr.mxu1 %v5708_v0 }
 0x3e1   :  { %4848 = vmatpush3.msra.mxu1 %v240_v3  ;;  %v305_v3 = vld [vmem:[%s7627_s11] sm:$0xff] }
 0x3e2   :  { %4887 = vmatprep.subr.mxu1 %v5708_v0 }
 0x47e   :  { %v1676_v5 = vpop.f32.mrf.mxu1 }
 0x480   :  { %v4811_v6 = vpop.f32.mrf.mxu1 }
 0x481   :  { %v5352_v6 = vld [vmem:[%s7617_s1 + $0x38] sm:$0xf] }
 0x482   :  { %v1749_v7 = vpop.f32.mrf.mxu1 }
 0x483   :  { %v1753_v8 = vmax.f32 %v1676_v5, %v1749_v7  ;;  %v330_v5 = vld [vmem:[%s7629_s13 + $0x48] sm:$0xff]  ;;  %v329_v7 = vld [vmem:[%s7629_s13 + $0x40] sm:$0xff] }
 0x484   :  { %v4816_v11 = vpop.f32.mrf.mxu1 }
 0x485   :  { %4850 = vmatmul.mubr.f32.vlgmr.msra.gmra.mxu1 %v1753_v8  ;;  %4885 = vmatmul.mubr.f32.vlgmr.msra.gmra.mxu0 %v1753_v8  ;;  %v328_v8 = vld [vmem:[%s7629_s13 + $0x38] sm:$0xff]  ;;  %v325_v11 = vld [vmem:[%s7629_s13 + $0x20] sm:$0xff] }
 0x486   :  { %4907 = vmatpush3.msra.mxu0 %v279_v9  ;;  %4888 = vmatpush3.msra.mxu1 %v287_v10  ;;  %v327_v9 = vld [vmem:[%s7629_s13 + $0x30] sm:$0xff]  ;;  %v326_v10 = vld [vmem:[%s7629_s13 + $0x28] sm:$0xff] }
 0x487   :  { %4908 = vmatprep.subr.mxu0 %v5708_v0  ;;  %4889 = vmatprep.subr.mxu1 %v5708_v0 }
 0x488   :  { %4909 = vmatpush3.msra.mxu0 %v278_v13  ;;  %4890 = vmatpush3.msra.mxu1 %v286_v14  ;;  %v324_v13 = vld [vmem:[%s7629_s13 + $0x18] sm:$0xff]  ;;  %v323_v14 = vld [vmem:[%s7629_s13 + $0x10] sm:$0xff] }
 0x489   :  { %4910 = vmatprep.subr.mxu0 %v5708_v0  ;;  %4891 = vmatprep.subr.mxu1 %v5708_v0 }
 0x48a   :  { %4911 = vmatpush3.msra.mxu0 %v277_v15  ;;  %4892 = vmatpush3.msra.mxu1 %v285_v17 }
 0x48b   :  { %4912 = vmatprep.subr.mxu0 %v5708_v0  ;;  %4893 = vmatprep.subr.mxu1 %v5708_v0 }
 0x48c   :  { %4913 = vmatpush3.msra.mxu0 %v276_v18  ;;  %4894 = vmatpush3.msra.mxu1 %v284_v19 }
 0x48d   :  { %4914 = vmatprep.subr.mxu0 %v5708_v0  ;;  %4895 = vmatprep.subr.mxu1 %v5708_v0 }
 0x48e   :  { %4915 = vmatpush3.msra.mxu0 %v275_v20  ;;  %4896 = vmatpush3.msra.mxu1 %v283_v21 }
 0x48f   :  { %4916 = vmatprep.subr.mxu0 %v5708_v0  ;;  %4897 = vmatprep.subr.mxu1 %v5708_v0 }
 0x490   :  { %4917 = vmatpush3.msra.mxu0 %v274_v22  ;;  %4898 = vmatpush3.msra.mxu1 %v282_v23 }
 0x491   :  { %4918 = vmatprep.subr.mxu0 %v5708_v0  ;;  %4899 = vmatprep.subr.mxu1 %v5708_v0 }
 0x492   :  { %4919 = vmatpush3.msra.mxu0 %v273_v24  ;;  %4922 = vmatprep.mubr.msk.f32.mxu0 %vm5709_vm7, %v5708_v0 }
 0x493   :  { %4920 = vmatprep.subr.mxu0 %v5708_v0  ;;  %4903 = vmatprep.mubr.msk.f32.mxu1 %vm5709_vm7, %v5708_v0 }
 0x494   :  { %4900 = vmatpush3.msra.mxu1 %v281_v25  ;;  %4921 = vmatpush3.msra.mxu0 %v272_v26  ;;  %v304_v25 = vld [vmem:[#allocation7] sm:$0x1] }
 0x495   :  { %4901 = vmatprep.subr.mxu1 %v5708_v0  ;;  %4944 = vmatprep.subr.mxu0 %v5708_v0 }
 0x496   :  { %4902 = vmatpush3.msra.mxu1 %v280_v27 }
 0x497   :  { %4925 = vmatprep.subr.mxu1 %v5708_v0 }
 0x545   :  { %v1820_v28 = vpop.f32.mrf.mxu1  ;;  %v1890_v29 = vpop.f32.mrf.mxu0 }
 0x546   :  { %v1894_v30 = vmax.f32 %v1820_v28, %v1890_v29 }
 0x547   :  { %v4851_v32 = vpop.f32.mrf.mxu1  ;;  %v4886_v33 = vpop.f32.mrf.mxu0 }
 0x548   :  { %v1896_v34 = vrot.slane %v1894_v30, 1  ;;  %4923 = vmatmul.mubr.msk.f32.vlgmr.msra.gmra.mxu0 %vm1897_vm10, %v1894_v30  ;;  %v2116_v49 = vrot.slane %v1894_v30, 3  ;;  %v2042_v51 = vrot.slane %v1894_v30, 2  ;;  %v5353_v30 = vld [vmem:[%s7617_s1 + $0x30] sm:$0xf]  ;;  %v5355_v32 = vld [vmem:[%s7617_s1 + $0x20] sm:$0xff] }
 0x549   :  { %4945 = vmatpush3.msra.mxu0 %v303_v31  ;;  %4960 = vmatprep.mubr.msk.f32.mxu0 %vm5709_vm7, %v5708_v0  ;;  %v5354_v31 = vld [vmem:[%s7617_s1 + $0x28] sm:$0xff]  ;;  %v5356_v33 = vld [vmem:[%s7617_s1 + $0x18] sm:$0xff] }
 0x54a   :  { %4946 = vmatprep.subr.mxu0 %v5708_v0  ;;  %4904 = vmatmul.mubr.msk.f32.vlgmr.msra.gmra.mxu1 %vm1897_vm10, %v1896_v34  ;;  %v5357_v34 = vld [vmem:[%s7617_s1 + $0x10] sm:$0xff] }
 0x54b   :  { %4926 = vmatpush3.msra.mxu1 %v295_v35  ;;  %4947 = vmatpush3.msra.mxu0 %v302_v36  ;;  %v5358_v35 = vld [vmem:[%s7617_s1 + $0x8] sm:$0xff]  ;;  %v5359_v36 = vld [vmem:[%s7617_s1] sm:$0xff] }
 0x54c   :  { %4927 = vmatprep.subr.mxu1 %v5708_v0  ;;  %4948 = vmatprep.subr.mxu0 %v5708_v0 }
 0x54d   :  { %4928 = vmatpush3.msra.mxu1 %v294_v37  ;;  %4949 = vmatpush3.msra.mxu0 %v301_v38  ;;  %v5360_v37 = vld [vmem:[%s7617_s1 + $0xf8] sm:$0xf]  ;;  %v322_v38 = vld [vmem:[%s7629_s13 + $0x8] sm:$0xff] }
 0x54e   :  { %4929 = vmatprep.subr.mxu1 %v5708_v0  ;;  %4950 = vmatprep.subr.mxu0 %v5708_v0 }
 0x54f   :  { %4930 = vmatpush3.msra.mxu1 %v293_v39  ;;  %4951 = vmatpush3.msra.mxu0 %v300_v40  ;;  %v321_v39 = vld [vmem:[%s7629_s13] sm:$0xff]  ;;  %v5361_v40 = vld [vmem:[%s7617_s1 + $0x78] sm:$0xf] }
 0x550   :  { %4931 = vmatprep.subr.mxu1 %v5708_v0  ;;  %4952 = vmatprep.subr.mxu0 %v5708_v0 }
 0x551   :  { %4932 = vmatpush3.msra.mxu1 %v292_v41  ;;  %4953 = vmatpush3.msra.mxu0 %v299_v42  ;;  %v4347_v41 = vld [vmem:[%s7616_s0 + $0x20] sm:$0xff]  ;;  %v4348_v42 = vld [vmem:[%s7616_s0 + $0x28] sm:$0xff] }
 0x552   :  { %4933 = vmatprep.subr.mxu1 %v5708_v0  ;;  %4954 = vmatprep.subr.mxu0 %v5708_v0 }
 0x553   :  { %4934 = vmatpush3.msra.mxu1 %v291_v43  ;;  %4955 = vmatpush3.msra.mxu0 %v298_v44  ;;  %v2355_v43 = vrot.slane %v4347_v41, 1  ;;  %v2356_v44 = vrot.slane %v4348_v42, 1 }
 0x554   :  { %4935 = vmatprep.subr.mxu1 %v5708_v0  ;;  %4956 = vmatprep.subr.mxu0 %v5708_v0 }
 0x555   :  { %4936 = vmatpush3.msra.mxu1 %v290_v45  ;;  %4957 = vmatpush3.msra.mxu0 %v297_v46  ;;  %v5362_v45 = vld [vmem:[%s7617_s1 + $0xf0] sm:$0xf]  ;;  %v6760_v46 = vsel %vm341_vm1, %v2355_v43, %v2356_v44  ;;  %v5388_v43 = vld [vmem:[%s7617_s1 + $0x118] sm:$0xff] }
 0x556   :  { %4937 = vmatprep.subr.mxu1 %v5708_v0  ;;  %4958 = vmatprep.subr.mxu0 %v5708_v0 }
 0x557   :  { %4938 = vmatpush3.msra.mxu1 %v289_v47  ;;  %4959 = vmatpush3.msra.mxu0 %v296_v48  ;;  %v5363_v47 = vld [vmem:[%s7617_s1 + $0xe8] sm:$0xff]  ;;  %v4349_v48 = vld [vmem:[%s7616_s0 + $0x30] sm:$0xff] }
 0x558   :  { %4939 = vmatprep.subr.mxu1 %v5708_v0  ;;  %4961 = vmatmul.mubr.msk.f32.vlgmr.msra.gmra.mxu0 %vm1897_vm10, %v2116_v49  ;;  %v5364_v49 = vld [vmem:[%s7617_s1 + $0xe0] sm:$0xff] }
 0x559   :  { %4940 = vmatpush3.msra.mxu1 %v288_v50  ;;  %4941 = vmatprep.mubr.msk.f32.mxu1 %vm5709_vm7, %v5708_v0  ;;  %v2358_v50 = vrot.slane %v4349_v48, 1 }
 0x55a   :  { %4942 = vmatmul.mubr.msk.f32.vlgmr.msra.gmra.mxu1 %vm1897_vm10, %v2042_v51  ;;  %4963 = vmatprep.subr.mxu1 %v5708_v0  ;;  %v5365_v51 = vld [vmem:[%s7617_s1 + $0xd8] sm:$0xff] }
 0x55b   :  { %4964 = vmatpush3.msra.mxu1 %v319_v52  ;;  %4993 = vmatprep.mubr.msk.f32.mxu1 %vm5709_vm7, %v5708_v0  ;;  %v5366_v52 = vld [vmem:[%s7617_s1 + $0xd0] sm:$0xff] }
 0x55c   :  { %4965 = vmatprep.subr.mxu1 %v5708_v0  ;;  %4996 = vmatprep.subr.mxu0 %v5708_v0 }
 0x55d   :  { %4966 = vmatpush3.msra.mxu1 %v318_v53  ;;  %5018 = vmatprep.mubr.msk.f32.mxu0 %vm5709_vm7, %v5708_v0  ;;  %v6780_v53 = vsel %vm341_vm1, %v2356_v44, %v2358_v50  ;;  %v5389_v44 = vld [vmem:[%s7617_s1 + $0x110] sm:$0xff] }
 0x55e   :  { %4967 = vmatprep.subr.mxu1 %v5708_v0  ;;  %4997 = vmatpush3.msk.msra.mxu0 %vm356_vm0, %v331_v4  ;;  %v2645_v4 = vrot.slane %v4349_v48, 3 }
 0x55f   :  { %4968 = vmatpush3.msra.mxu1 %v317_v54  ;;  %4998 = vmatprep.subr.mxu0 %v5708_v0  ;;  %v5367_v54 = vld [vmem:[%s7617_s1 + $0xc8] sm:$0xff] }
 0x560   :  { %4969 = vmatprep.subr.mxu1 %v5708_v0  ;;  %4999 = vmatpush3.msra.mxu0 %v330_v5 }
 0x561   :  { %4970 = vmatpush3.msra.mxu1 %v316_v55  ;;  %5000 = vmatprep.subr.mxu0 %v5708_v0  ;;  %v4350_v55 = vld [vmem:[%s7616_s0 + $0x38] sm:$0xf] }
 0x562   :  { %4971 = vmatprep.subr.mxu1 %v5708_v0  ;;  %5001 = vmatpush3.msra.mxu0 %v329_v7 }
 0x563   :  { %4972 = vmatpush3.msra.mxu1 %v315_v56  ;;  %5002 = vmatprep.subr.mxu0 %v5708_v0  ;;  %v5368_v56 = vld [vmem:[%s7617_s1 + $0xc0] sm:$0xff] }
 0x564   :  { %4973 = vmatprep.subr.mxu1 %v5708_v0  ;;  %5003 = vmatpush3.msra.mxu0 %v328_v8  ;;  %v2647_v8 = vrot.slane %v4350_v55, 3 }
 0x565   :  { %4974 = vmatpush3.msra.mxu1 %v314_v57  ;;  %5004 = vmatprep.subr.mxu0 %v5708_v0  ;;  %v2360_v57 = vrot.slane %v4350_v55, 1 }
 0x566   :  { %4975 = vmatprep.subr.mxu1 %v5708_v0  ;;  %5005 = vmatpush3.msra.mxu0 %v327_v9  ;;  %v2648_v9 = vsel %vm650_vm4, %v2645_v4, %v2647_v8 }
 0x567   :  { %4976 = vmatpush3.msra.mxu1 %v313_v58  ;;  %5006 = vmatprep.subr.mxu0 %v5708_v0  ;;  %v6794_v58 = vsel %vm341_vm1, %v2358_v50, %v2360_v57 }
 0x568   :  { %4977 = vmatprep.subr.mxu1 %v5708_v0  ;;  %5007 = vmatpush3.msra.mxu0 %v326_v10  ;;  %v2744_v10 = vrot.slane %v4347_v41, 4 }
 0x569   :  { %4978 = vmatpush3.msra.mxu1 %v312_v59  ;;  %5008 = vmatprep.subr.mxu0 %v5708_v0  ;;  %v2540_v59 = vrot.slane %v4347_v41, 2 }
 0x56a   :  { %4979 = vmatprep.subr.mxu1 %v5708_v0  ;;  %5009 = vmatpush3.msra.mxu0 %v325_v11  ;;  %v2745_v11 = vrot.slane %v4348_v42, 4 }
 0x56b   :  { %4980 = vmatpush3.msra.mxu1 %v311_v60  ;;  %5010 = vmatprep.subr.mxu0 %v5708_v0  ;;  %v2541_v60 = vrot.slane %v4348_v42, 2 }
 0x56c   :  { %4981 = vmatprep.subr.mxu1 %v5708_v0  ;;  %5011 = vmatpush3.msra.mxu0 %v324_v13  ;;  %v6814_v13 = vsel %vm356_vm0, %v2744_v10, %v2745_v11 }
 0x56d   :  { %4982 = vmatpush3.msra.mxu1 %v310_v61  ;;  %5012 = vmatprep.subr.mxu0 %v5708_v0  ;;  %v6797_v61 = vsel %vm541_vm3, %v2540_v59, %v2541_v60 }
 0x56e   :  { %4983 = vmatprep.subr.mxu1 %v5708_v0  ;;  %5013 = vmatpush3.msra.mxu0 %v323_v14  ;;  %v2747_v14 = vrot.slane %v4349_v48, 4 }
 0x56f   :  { %4984 = vmatpush3.msra.mxu1 %v309_v62  ;;  %5014 = vmatprep.subr.mxu0 %v5708_v0  ;;  %v2642_v62 = vrot.slane %v4347_v41, 3 }
 0x570   :  { %4985 = vmatprep.subr.mxu1 %v5708_v0  ;;  %5015 = vmatpush3.msra.mxu0 %v322_v38  ;;  %v5383_v38 = vld [vmem:[%s7617_s1 + $0x80] sm:$0xff] }
 0x571   :  { %4986 = vmatpush3.msra.mxu1 %v308_v63  ;;  %5016 = vmatprep.subr.mxu0 %v5708_v0  ;;  %v2643_v63 = vrot.slane %v4348_v42, 3 }
 0x572   :  { %4987 = vmatprep.subr.mxu1 %v5708_v0  ;;  %5017 = vmatpush3.msra.mxu0 %v321_v39  ;;  %v5384_v39 = vld [vmem:[%s7617_s1 + $0x138] sm:$0xf] }
 0x573   :  { %4988 = vmatpush3.msra.mxu1 %v307_v1  ;;  %4351 = vmatprep.subr.msk.mxu0 %vm356_vm0, %v5361_v40  ;;  %v2644_v1 = vsel %vm650_vm4, %v2642_v62, %v2643_v63  ;;  %v2646_v5 = vsel %vm650_vm4, %v2643_v63, %v2645_v4  ;;  %v5385_v40 = vld [vmem:[%s7617_s1 + $0x130] sm:$0xf] }
 0x574   :  { %4989 = vmatprep.subr.mxu1 %v5708_v0 }
 0x575   :  { %4990 = vmatpush3.msra.mxu1 %v306_v2  ;;  %v2543_v2 = vrot.slane %v4349_v48, 2 }
 0x576   :  { %4991 = vmatprep.subr.mxu1 %v5708_v0 }
 0x577   :  { %4992 = vmatpush3.msra.mxu1 %v305_v3  ;;  %v6802_v3 = vsel %vm541_vm3, %v2541_v60, %v2543_v2 }
 0x578   :  { %4356 = vmatprep.subr.msk.mxu1 %vm356_vm0, %v5352_v6  ;;  %v2545_v6 = vrot.slane %v4350_v55, 2 }
 0x57a   :  { %v6808_v7 = vsel %vm541_vm3, %v2543_v2, %v2545_v6 }
 0x608   :  { %v2038_v15 = vpop.f32.mrf.mxu0 }
 0x60a   :  { %v1966_v17 = vpop.f32.mrf.mxu1  ;;  %v4924_v18 = vpop.f32.mrf.mxu0 }
 0x60b   :  { %v2039_v21 = vadd.f32 %v2038_v15, %v1966_v17  ;;  %v6818_v15 = vsel %vm356_vm0, %v2745_v11, %v2747_v14  ;;  %v2749_v17 = vrot.slane %v4350_v55, 4 }
 0x60c   :  { %v4905_v19 = vpop.f32.mrf.mxu1 }
 0x60d   :  { %v6821_v18 = vsel %vm356_vm0, %v2747_v14, %v2749_v17  ;;  %v320_v19 = vld [vmem:[#allocation8] sm:$0x1] }
 0x618   :  { %v2185_v20 = vpop.f32.mrf.mxu0 }
 0x61a   :  { %v2111_v22 = vpop.f32.mrf.mxu1  ;;  %v4962_v23 = vpop.f32.mrf.mxu0 }
 0x61b   :  { %v2115_v24 = vadd.f32 %v2111_v22, %v2039_v21 }
 0x61c   :  { %v4943_v26 = vpop.f32.mrf.mxu1 }
 0x61d   :  { %v2189_v27 = vadd.f32 %v2185_v20, %v2115_v24  ;;  %v5369_v24 = vld [vmem:[%s7617_s1 + $0x70] sm:$0xf]  ;;  %v5371_v26 = vld [vmem:[%s7617_s1 + $0x60] sm:$0xff] }
 0x61f   :  { %v2190_v28 = vadd.f32 %v2189_v27, %v304_v25  ;;  %v5370_v25 = vld [vmem:[%s7617_s1 + $0x68] sm:$0xff]  ;;  %v5372_v27 = vld [vmem:[%s7617_s1 + $0x58] sm:$0xff] }
 0x621   :  { %v2191_v29 = vmax.f32 %v2190_v28, 0.0  ;;  %v5373_v28 = vld [vmem:[%s7617_s1 + $0x50] sm:$0xff] }
 0x623   :  { %4994 = vmatmul.mubr.msk.f32.vlgmr.msra.gmra.mxu1 %vm2192_vm11, %v2191_v29  ;;  %v5374_v29 = vld [vmem:[%s7617_s1 + $0x48] sm:$0xff] }
 0x624   :  { %4357 = vmatpush1.msk.msra.mxu1 %vm356_vm0, %v5353_v30  ;;  %2521 = vmatprep.mubr.f32.mxu1 %v5708_v0  ;;  %v5375_v30 = vld [vmem:[%s7617_s1 + $0x40] sm:$0xff] }
 0x625   :  { %2483 = vmatprep.subr.mxu1 %v5354_v31  ;;  %v5376_v31 = vld [vmem:[%s7617_s1 + $0xb8] sm:$0xf] }
 0x626   :  { %2484 = vmatpush1.msra.mxu1 %v5355_v32  ;;  %v5377_v32 = vld [vmem:[%s7617_s1 + $0xb0] sm:$0xf] }
 0x627   :  { %2485 = vmatprep.subr.mxu1 %v5356_v33  ;;  %v5378_v33 = vld [vmem:[%s7617_s1 + $0xa8] sm:$0xff] }
 0x628   :  { %2486 = vmatpush1.msra.mxu1 %v5357_v34  ;;  %v5379_v34 = vld [vmem:[%s7617_s1 + $0xa0] sm:$0xff] }
 0x629   :  { %2487 = vmatprep.subr.mxu1 %v5358_v35  ;;  %v5380_v35 = vld [vmem:[%s7617_s1 + $0x98] sm:$0xff] }
 0x62a   :  { %2488 = vmatpush1.msra.mxu1 %v5359_v36  ;;  %v5381_v36 = vld [vmem:[%s7617_s1 + $0x90] sm:$0xff] }
 0x62b   :  { %4366 = vmatprep.subr.msk.mxu1 %vm356_vm0, %v5360_v37  ;;  %4358 = vmatmul.mubr.msk.f32.vlgmr.msra.gmra.mxu1 %vm349_vm2, %v4347_v41  ;;  %v5382_v37 = vld [vmem:[%s7617_s1 + $0x88] sm:$0xff] }
 0x62c   :  { %2527 = vmatprep.mubr.f32.mxu1 %v5708_v0  ;;  %4367 = vmatpush1.msk.msra.mxu1 %vm356_vm0, %v5362_v45  ;;  %v5386_v41 = vld [vmem:[%s7617_s1 + $0x128] sm:$0xff] }
 0x62d   :  { %2681 = vmatprep.subr.mxu1 %v5363_v47  ;;  %v5390_v45 = vld [vmem:[%s7617_s1 + $0x108] sm:$0xff] }
 0x62e   :  { %2682 = vmatpush1.msra.mxu1 %v5364_v49 }
 0x62f   :  { %4359 = vmatmul.mubr.msk.f32.gmra.mxu1 %vm349_vm2, %v4348_v42  ;;  %2683 = vmatprep.subr.mxu1 %v5365_v51  ;;  %v5387_v42 = vld [vmem:[%s7617_s1 + $0x120] sm:$0xff] }
 0x630   :  { %2533 = vmatprep.mubr.f32.mxu1 %v5708_v0  ;;  %2684 = vmatpush1.msra.mxu1 %v5366_v52 }
 0x631   :  { %2685 = vmatprep.subr.mxu1 %v5367_v54 }
 0x632   :  { %2686 = vmatpush1.msra.mxu1 %v5368_v56 }
 0x633   :  { %4360 = vmatmul.mubr.msk.f32.gmra.mxu1 %vm349_vm2, %v4349_v48  ;;  %v332_v48 = vld [vmem:[#allocation10] sm:$0x1] }
 0x634   :  { %2719 = vmatprep.mubr.f32.mxu1 %v5708_v0 }
 0x637   :  { %4368 = vmatmul.mubr.msk.f32.vlgmr.msra.gmra.mxu1 %vm349_vm2, %v2644_v1 }
 0x638   :  { %2725 = vmatprep.mubr.f32.mxu1 %v5708_v0 }
 0x63b   :  { %4369 = vmatmul.mubr.msk.f32.gmra.mxu1 %vm349_vm2, %v2646_v5 }
 0x63c   :  { %2731 = vmatprep.mubr.f32.mxu1 %v5708_v0 }
 0x63f   :  { %4370 = vmatmul.mubr.msk.f32.gmra.mxu1 %vm349_vm2, %v2648_v9 }
 0x640   :  { %2922 = vmatprep.mubr.f32.mxu1 %v5708_v0 }
 0x6e3   :  { %v2262_v20 = vpop.f32.mrf.mxu1 }
 0x6e4   :  { %v2263_v21 = vadd.f32 %v2262_v20, %v320_v19 }
 0x6e5   :  { %v4995_v22 = vpop.f32.mrf.mxu1 }
 0x6e6   :  { %v2266_v23 = vmax.f32 %v2263_v21, 0.0 }
 0x6e8   :  { %5019 = vmatmul.mubr.msk.f32.vlgmr.msra.gmra.mxu0 %vm2267_vm12, %v2266_v23 }
 0x6e9   :  { %4352 = vmatpush1.msk.msra.mxu0 %vm356_vm0, %v5369_v24  ;;  %2432 = vmatprep.mubr.f32.mxu0 %v5708_v0 }
 0x6ea   :  { %2394 = vmatprep.subr.mxu0 %v5370_v25 }
 0x6eb   :  { %2395 = vmatpush1.msra.mxu0 %v5371_v26  ;;  %v2523_v47 = vpop.f32.mrf.mxu1 }
 0x6ec   :  { %2396 = vmatprep.subr.mxu0 %v5372_v27 }
 0x6ed   :  { %2397 = vmatpush1.msra.mxu0 %v5373_v28  ;;  %v2525_v50 = vpop.f32.mrf.mxu1 }
 0x6ee   :  { %2398 = vmatprep.subr.mxu0 %v5374_v29 }
 0x6ef   :  { %2399 = vmatpush1.msra.mxu0 %v5375_v30 }
 0x6f0   :  { %4353 = vmatmul.mubr.msk.f32.vlgmr.msra.gmra.mxu0 %vm349_vm2, %v6760_v46  ;;  %4361 = vmatprep.subr.msk.mxu0 %vm356_vm0, %v5376_v31  ;;  %v5391_v46 = vld [vmem:[%s7617_s1 + $0x100] sm:$0xff] }
 0x6f1   :  { %2438 = vmatprep.mubr.f32.mxu0 %v5708_v0  ;;  %4362 = vmatpush1.msk.msra.mxu0 %vm356_vm0, %v5377_v32 }
 0x6f2   :  { %2579 = vmatprep.subr.mxu0 %v5378_v33 }
 0x6f3   :  { %2580 = vmatpush1.msra.mxu0 %v5379_v34 }
 0x6f4   :  { %4354 = vmatmul.mubr.msk.f32.gmra.mxu0 %vm349_vm2, %v6780_v53  ;;  %2581 = vmatprep.subr.mxu0 %v5380_v35  ;;  %v2529_v53 = vpop.f32.mrf.mxu1 }
 0x6f5   :  { %2444 = vmatprep.mubr.f32.mxu0 %v5708_v0  ;;  %2582 = vmatpush1.msra.mxu0 %v5381_v36 }
 0x6f6   :  { %2583 = vmatprep.subr.mxu0 %v5382_v37  ;;  %v2531_v55 = vpop.f32.mrf.mxu1 }
 0x6f7   :  { %2584 = vmatpush1.msra.mxu0 %v5383_v38 }
 0x6f8   :  { %4355 = vmatmul.mubr.msk.f32.gmra.mxu0 %vm349_vm2, %v6794_v58  ;;  %4371 = vmatprep.subr.msk.mxu0 %vm356_vm0, %v5384_v39  ;;  %v2535_v58 = vpop.f32.mrf.mxu1 }
 0x6f9   :  { %2617 = vmatprep.mubr.f32.mxu0 %v5708_v0 }
 0x6fc   :  { %4363 = vmatmul.mubr.msk.f32.vlgmr.msra.gmra.mxu0 %vm349_vm2, %v6797_v61  ;;  %v2537_v61 = vpop.f32.mrf.mxu1 }
 0x6fd   :  { %2623 = vmatprep.mubr.f32.mxu0 %v5708_v0  ;;  %4372 = vmatpush1.msk.msra.mxu0 %vm356_vm0, %v5385_v40 }
 0x6fe   :  { %2783 = vmatprep.subr.mxu0 %v5386_v41  ;;  %v2721_v63 = vpop.f32.mrf.mxu1 }
 0x6ff   :  { %2784 = vmatpush1.msra.mxu0 %v5387_v42 }
 0x700   :  { %4364 = vmatmul.mubr.msk.f32.gmra.mxu0 %vm349_vm2, %v6802_v3  ;;  %2785 = vmatprep.subr.mxu0 %v5388_v43  ;;  %v2723_v3 = vpop.f32.mrf.mxu1 }
 0x701   :  { %2629 = vmatprep.mubr.f32.mxu0 %v5708_v0  ;;  %2786 = vmatpush1.msra.mxu0 %v5389_v44 }
 0x702   :  { %2787 = vmatprep.subr.mxu0 %v5390_v45  ;;  %v2727_v6 = vpop.f32.mrf.mxu1 }
 0x703   :  { %2788 = vmatpush1.msra.mxu0 %v5391_v46 }
 0x704   :  { %4365 = vmatmul.mubr.msk.f32.gmra.mxu0 %vm349_vm2, %v6808_v7  ;;  %v2729_v8 = vpop.f32.mrf.mxu1 }
 0x705   :  { %2821 = vmatprep.mubr.f32.mxu0 %v5708_v0 }
 0x708   :  { %4373 = vmatmul.mubr.msk.f32.vlgmr.msra.gmra.mxu0 %vm349_vm2, %v6814_v13 }
 0x709   :  { %2827 = vmatprep.mubr.f32.mxu0 %v5708_v0 }
 0x70c   :  { %4374 = vmatmul.mubr.msk.f32.gmra.mxu0 %vm349_vm2, %v6818_v15  ;;  %v2733_v15 = vpop.f32.mrf.mxu1 }
 0x70d   :  { %2833 = vmatprep.mubr.f32.mxu0 %v5708_v0 }
 0x70e   :  { %v2735_v28 = vpop.f32.mrf.mxu1 }
 0x710   :  { %4375 = vmatmul.mubr.msk.f32.gmra.mxu0 %vm349_vm2, %v6821_v18 }
 0x711   :  { %2999 = vmatprep.mubr.f32.mxu0 %v5708_v0 }
 0x7a8   :  { %v2340_v49 = vpop.f32.mrf.mxu0 }
 0x7a9   :  { %v2341_v51 = vadd.f32 %v2340_v49, %v332_v48 }
 0x7aa   :  { %v5020_v52 = vpop.f32.mrf.mxu0 }
 0x7ab   :  { %2345 = vst.msk [vmem:[#allocation11] sm:$0x1] %vm2344_vm13, %v2341_v51 }
 0x7b0   :  { %v2434_v54 = vpop.f32.mrf.mxu0 }
 0x7b1   :  { %v2524_v22 = vadd.f32 %v2523_v47, %v2434_v54 }
 0x7b2   :  { %v2436_v56 = vpop.f32.mrf.mxu0 }
 0x7b3   :  { %v2526_v18 = vadd.f32 %v2525_v50, %v2436_v56  ;;  %v5394_v56 = vld [vmem:[%s7620_s4 + $0x78] sm:$0xff] }
 0x7b4   :  { %v2440_v57 = vpop.f32.mrf.mxu0 }
 0x7b5   :  { %v2530_v14 = vadd.f32 %v2529_v53, %v2440_v57  ;;  %v5395_v57 = vld [vmem:[%s7620_s4 + $0x108] sm:$0xff] }
 0x7b6   :  { %v2442_v59 = vpop.f32.mrf.mxu0 }
 0x7b7   :  { %v2532_v11 = vadd.f32 %v2531_v55, %v2442_v59  ;;  %v5397_v59 = vld [vmem:[%s7619_s3 + $0x18] sm:$0xf] }
 0x7b8   :  { %v2446_v60 = vpop.f32.mrf.mxu0 }
 0x7b9   :  { %v2536_v13 = vadd.f32 %v2535_v58, %v2446_v60  ;;  %v5396_v58 = vld [vmem:[%s7619_s3 + $0x8] sm:$0xf]  ;;  %v5398_v60 = vld [vmem:[%s7620_s4 + $0x70] sm:$0xff] }
 0x7ba   :  { %v2448_v62 = vpop.f32.mrf.mxu0 }
 0x7bb   :  { %v2538_v19 = vadd.f32 %v2537_v61, %v2448_v62  ;;  %v5399_v61 = vld [vmem:[%s7620_s4 + $0x100] sm:$0xff]  ;;  %v5400_v62 = vld [vmem:[%s7620_s4 + $0x68] sm:$0xff] }
 0x7bc   :  { %v2619_v1 = vpop.f32.mrf.mxu0 }
 0x7bd   :  { %v2636_v27 = vadd.f32 %v2619_v1, %v2524_v22  ;;  %v5402_v1 = vld [vmem:[%s7620_s4 + $0x60] sm:$0xff]  ;;  %v5421_v22 = vld [vmem:[%s7620_s4 + $0xa8] sm:$0xff] }
 0x7be   :  { %v2621_v2 = vpop.f32.mrf.mxu0 }
 0x7bf   :  { %v2637_v25 = vadd.f32 %v2621_v2, %v2526_v18  ;;  %v2738_v38 = vadd.f32 %v2721_v63, %v2636_v27  ;;  %v5401_v63 = vld [vmem:[%s7620_s4 + $0xf8] sm:$0xff]  ;;  %v5403_v2 = vld [vmem:[%s7620_s4 + $0xf0] sm:$0xff]  ;;  %v5426_v27 = vld [vmem:[%s7620_s4] sm:$0xff] }
 0x7c0   :  { %v2625_v4 = vpop.f32.mrf.mxu0  ;;  %v5417_v18 = vld [vmem:[%s7620_s4 + $0xb8] sm:$0xff] }
 0x7c1   :  { %v2638_v23 = vadd.f32 %v2625_v4, %v2530_v14  ;;  %v2739_v34 = vadd.f32 %v2723_v3, %v2637_v25  ;;  %v5404_v3 = vld [vmem:[%s7620_s4 + $0x58] sm:$0xff]  ;;  %v5405_v4 = vld [vmem:[%s7620_s4 + $0xe8] sm:$0xff]  ;;  %v5414_v14 = vld [vmem:[%s7620_s4 + $0x30] sm:$0xff] }
 0x7c2   :  { %v2627_v5 = vpop.f32.mrf.mxu0  ;;  %v5424_v25 = vld [vmem:[%s7620_s4 + $0x8] sm:$0xff] }
 0x7c3   :  { %v2639_v20 = vadd.f32 %v2627_v5, %v2532_v11  ;;  %v2740_v32 = vadd.f32 %v2727_v6, %v2638_v23  ;;  %v5406_v5 = vld [vmem:[%s7620_s4 + $0x50] sm:$0xff]  ;;  %v5407_v6 = vld [vmem:[%s7620_s4 + $0xe0] sm:$0xff]  ;;  %v5412_v11 = vld [vmem:[%s7620_s4 + $0x38] sm:$0xff] }
 0x7c4   :  { %v2631_v7 = vpop.f32.mrf.mxu0  ;;  %v5422_v23 = vld [vmem:[%s7620_s4 + $0x10] sm:$0xff] }
 0x7c5   :  { %v2640_v21 = vadd.f32 %v2631_v7, %v2536_v13  ;;  %v2741_v30 = vadd.f32 %v2729_v8, %v2639_v20  ;;  %v5408_v7 = vld [vmem:[%s7620_s4 + $0x48] sm:$0xff]  ;;  %v5409_v8 = vld [vmem:[%s7620_s4 + $0xd8] sm:$0xff]  ;;  %v5419_v20 = vld [vmem:[%s7620_s4 + $0xb0] sm:$0xff] }
 0x7c6   :  { %v2633_v9 = vpop.f32.mrf.mxu0  ;;  %v5413_v13 = vld [vmem:[%s7620_s4 + $0xc8] sm:$0xff] }
 0x7c7   :  { %v2641_v26 = vadd.f32 %v2633_v9, %v2538_v19  ;;  %v2742_v31 = vadd.f32 %v2733_v15, %v2640_v21  ;;  %v5410_v9 = vld [vmem:[%s7620_s4 + $0x40] sm:$0xff]  ;;  %v5420_v21 = vld [vmem:[%s7620_s4 + $0x18] sm:$0xff] }
 0x7c8   :  { %v2823_v10 = vpop.f32.mrf.mxu0  ;;  %v5415_v15 = vld [vmem:[%s7620_s4 + $0xc0] sm:$0xff] }
 0x7c9   :  { %v2743_v35 = vadd.f32 %v2735_v28, %v2641_v26  ;;  %v2840_v43 = vadd.f32 %v2823_v10, %v2738_v38  ;;  %v5411_v10 = vld [vmem:[%s7620_s4 + $0xd0] sm:$0xff]  ;;  %v5418_v19 = vld [vmem:[%s7620_s4 + $0x20] sm:$0xff]  ;;  %v5425_v26 = vld [vmem:[%s7620_s4 + $0x98] sm:$0xff] }
 0x7ca   :  { %v2825_v17 = vpop.f32.mrf.mxu0  ;;  %v5427_v28 = vld [vmem:[%s7620_s4 + $0x90] sm:$0xff] }
 0x7cb   :  { %v2841_v41 = vadd.f32 %v2825_v17, %v2739_v34  ;;  %v2846_v50 = vadd.f32 %v2840_v43, %v6068_v12  ;;  %v5416_v17 = vld [vmem:[%s7620_s4 + $0x28] sm:$0xff] }
 0x7cc   :  { %v2829_v24 = vpop.f32.mrf.mxu0 }
 0x7cd   :  { %v2842_v39 = vadd.f32 %v2829_v24, %v2740_v32  ;;  %v2847_v48 = vadd.f32 %v2841_v41, %v6070_v16  ;;  %v2852_v55 = vmax.f32 %v2846_v50, 0.0  ;;  %v5423_v24 = vld [vmem:[%s7620_s4 + $0xa0] sm:$0xff]  ;;  %v5431_v32 = vld [vmem:[%s7620_s4 + $0x110] sm:$0xff]  ;;  %v5437_v50 = vld [vmem:[%s7621_s5 + $0x78] sm:$0xff] }
 0x7ce   :  { %v2831_v29 = vpop.f32.mrf.mxu0 }
 0x7cf   :  { %v2843_v36 = vadd.f32 %v2831_v29, %v2741_v30  ;;  %v2848_v47 = vadd.f32 %v2842_v39, %v6068_v12  ;;  %v2853_v54 = vmax.f32 %v2847_v48, 0.0  ;;  %v5428_v29 = vld [vmem:[%s7620_s4 + $0x88] sm:$0xff]  ;;  %v5429_v30 = vld [vmem:[%s7620_s4 + $0x118] sm:$0xff]  ;;  %v5435_v48 = vld [vmem:[%s7621_s5 + $0x80] sm:$0xff] }
 0x7d0   :  { %v2835_v33 = vpop.f32.mrf.mxu0 }
 0x7d1   :  { %v2844_v37 = vadd.f32 %v2835_v33, %v2742_v31  ;;  %v2849_v45 = vadd.f32 %v2843_v36, %v6070_v16  ;;  %v2854_v53 = vmax.f32 %v2848_v47, 0.0  ;;  %v5430_v31 = vld [vmem:[%s7620_s4 + $0x80] sm:$0xff]  ;;  %v5434_v47 = vld [vmem:[%s7621_s5 + $0x38] sm:$0xff] }
 0x7d2   :  { %v2837_v40 = vpop.f32.mrf.mxu0 }
 0x7d3   :  { %v2845_v42 = vadd.f32 %v2837_v40, %v2743_v35  ;;  %v2850_v44 = vadd.f32 %v2844_v37, %v6068_v12  ;;  %v2855_v52 = vmax.f32 %v2849_v45, 0.0  ;;  %v5392_v12 = vld [vmem:[%s7619_s3] sm:$0xff]  ;;  %v5433_v45 = vld [vmem:[%s7621_s5 + $0x88] sm:$0xff] }
 0x7d5   :  { %v2851_v46 = vadd.f32 %v2845_v42, %v6070_v16  ;;  %v2856_v51 = vmax.f32 %v2850_v44, 0.0  ;;  %v5393_v16 = vld [vmem:[%s7619_s3 + $0x10] sm:$0xff]  ;;  %v5432_v44 = vld [vmem:[%s7621_s5 + $0x40] sm:$0xff] }
 0x7d7   :  { %v2857_v49 = vmax.f32 %v2851_v46, 0.0 }
 0x7d9   :  { %2884 = vmatprep.subr.mxu1 %v2857_v49  ;;  %2961 = vmatprep.subr.mxu0 %v2857_v49  ;;  %v5436_v49 = vld [vmem:[%s7621_s5 + $0x30] sm:$0xff] }
 0x7da   :  { %2885 = vmatpush1.msra.mxu1 %v2856_v51  ;;  %2962 = vmatpush1.msra.mxu0 %v2856_v51  ;;  %v5438_v51 = vld [vmem:[%s7621_s5 + $0x28] sm:$0xff] }
 0x7db   :  { %2886 = vmatprep.subr.mxu1 %v2855_v52  ;;  %2963 = vmatprep.subr.mxu0 %v2855_v52  ;;  %v5439_v52 = vld [vmem:[%s7621_s5 + $0x70] sm:$0xff] }
 0x7dc   :  { %2887 = vmatpush1.msra.mxu1 %v2854_v53  ;;  %2964 = vmatpush1.msra.mxu0 %v2854_v53  ;;  %v5440_v53 = vld [vmem:[%s7621_s5 + $0x20] sm:$0xff] }
 0x7dd   :  { %2888 = vmatprep.subr.mxu1 %v2853_v54  ;;  %2965 = vmatprep.subr.mxu0 %v2853_v54  ;;  %v5441_v54 = vld [vmem:[%s7621_s5 + $0x68] sm:$0xff] }
 0x7de   :  { %2889 = vmatpush1.msra.mxu1 %v2852_v55  ;;  %2966 = vmatpush1.msra.mxu0 %v2852_v55  ;;  %v5442_v55 = vld [vmem:[%s7621_s5 + $0x18] sm:$0xff] }
 0x7df   :  { %4376 = vmatmul.mubr.msk.f32.vlgmr.msra.gmra.mxu1 %vm890_vm5, %v5392_v12  ;;  %4378 = vmatmul.mubr.msk.f32.vlgmr.msra.gmra.mxu0 %vm890_vm5, %v5393_v16  ;;  %v5443_v12 = vld [vmem:[%s7621_s5 + $0x60] sm:$0xff]  ;;  %v5444_v16 = vld [vmem:[%s7621_s5 + $0x10] sm:$0xff] }
 0x7e0   :  { %2928 = vmatprep.mubr.f32.mxu1 %v5708_v0  ;;  %3005 = vmatprep.mubr.f32.mxu0 %v5708_v0 }
 0x7e1   :  { %3022 = vmatprep.subr.mxu1 %v5708_v0  ;;  %3097 = vmatprep.subr.mxu0 %v5708_v0 }
 0x7e2   :  { %3023 = vmatpush1.msra.mxu1 %v5394_v56  ;;  %3098 = vmatpush1.msra.mxu0 %v5395_v57  ;;  %v5445_v56 = vld [vmem:[%s7621_s5 + $0x58] sm:$0xff]  ;;  %v5446_v57 = vld [vmem:[%s7621_s5 + $0x8] sm:$0xff] }
 0x7e3   :  { %4377 = vmatmul.mubr.msk.f32.gmra.mxu1 %vm890_vm5, %v5396_v58  ;;  %4379 = vmatmul.mubr.msk.f32.gmra.mxu0 %vm890_vm5, %v5397_v59  ;;  %v5447_v58 = vld [vmem:[%s7621_s5 + $0x50] sm:$0xff]  ;;  %v5448_v59 = vld [vmem:[%s7621_s5] sm:$0xff] }
 0x7e4   :  { %3024 = vmatprep.subr.mxu1 %v5708_v0  ;;  %3099 = vmatprep.subr.mxu0 %v5708_v0 }
 0x7e5   :  { %3025 = vmatpush1.msra.mxu1 %v5398_v60  ;;  %3100 = vmatpush1.msra.mxu0 %v5399_v61  ;;  %v5449_v60 = vld [vmem:[%s7621_s5 + $0x48] sm:$0xff] }
 0x7e6   :  { %3026 = vmatprep.subr.mxu1 %v5708_v0  ;;  %3101 = vmatprep.subr.mxu0 %v5708_v0 }
 0x7e7   :  { %3027 = vmatpush1.msra.mxu1 %v5400_v62  ;;  %3102 = vmatpush1.msra.mxu0 %v5401_v63 }
 0x7e8   :  { %3028 = vmatprep.subr.mxu1 %v5708_v0  ;;  %3103 = vmatprep.subr.mxu0 %v5708_v0 }
 0x7e9   :  { %3029 = vmatpush1.msra.mxu1 %v5402_v1  ;;  %3104 = vmatpush1.msra.mxu0 %v5403_v2 }
 0x7ea   :  { %3030 = vmatprep.subr.mxu1 %v5708_v0  ;;  %3105 = vmatprep.subr.mxu0 %v5708_v0 }
 0x7eb   :  { %3031 = vmatpush1.msra.mxu1 %v5404_v3  ;;  %3106 = vmatpush1.msra.mxu0 %v5405_v4  ;;  %v5450_v3 = vld [vmem:[%s7621_s5 + $0x118] sm:$0xff] }
 0x7ec   :  { %3032 = vmatprep.subr.mxu1 %v5708_v0  ;;  %3107 = vmatprep.subr.mxu0 %v5708_v0 }
 0x7ed   :  { %3033 = vmatpush1.msra.mxu1 %v5406_v5  ;;  %3108 = vmatpush1.msra.mxu0 %v5407_v6 }
 0x7ee   :  { %3034 = vmatprep.subr.mxu1 %v5708_v0  ;;  %3109 = vmatprep.subr.mxu0 %v5708_v0 }
 0x7ef   :  { %3035 = vmatpush1.msra.mxu1 %v5408_v7  ;;  %3110 = vmatpush1.msra.mxu0 %v5409_v8  ;;  %v5451_v7 = vld [vmem:[%s7621_s5 + $0x110] sm:$0xff] }
 0x7f0   :  { %3036 = vmatprep.subr.mxu1 %v5708_v0  ;;  %3111 = vmatprep.subr.mxu0 %v5708_v0 }
 0x7f1   :  { %3037 = vmatpush1.msra.mxu1 %v5410_v9  ;;  %3112 = vmatpush1.msra.mxu0 %v5411_v10 }
 0x7f2   :  { %3038 = vmatprep.subr.mxu1 %v5708_v0  ;;  %3113 = vmatprep.subr.mxu0 %v5708_v0 }
 0x7f3   :  { %3039 = vmatpush1.msra.mxu1 %v5412_v11  ;;  %3114 = vmatpush1.msra.mxu0 %v5413_v13  ;;  %v5452_v13 = vld [vmem:[%s7621_s5 + $0x108] sm:$0xff] }
 0x7f4   :  { %3040 = vmatprep.subr.mxu1 %v5708_v0  ;;  %3115 = vmatprep.subr.mxu0 %v5708_v0 }
 0x7f5   :  { %3041 = vmatpush1.msra.mxu1 %v5414_v14  ;;  %3116 = vmatpush1.msra.mxu0 %v5415_v15  ;;  %v5453_v15 = vld [vmem:[%s7621_s5 + $0x100] sm:$0xff] }
 0x7f6   :  { %3042 = vmatprep.subr.mxu1 %v5708_v0  ;;  %3117 = vmatprep.subr.mxu0 %v5708_v0 }
 0x7f7   :  { %3043 = vmatpush1.msra.mxu1 %v5416_v17  ;;  %3118 = vmatpush1.msra.mxu0 %v5417_v18  ;;  %v5454_v17 = vld [vmem:[%s7621_s5 + $0xd0] sm:$0xff]  ;;  %v5455_v18 = vld [vmem:[%s7621_s5 + $0xf8] sm:$0xff] }
 0x7f8   :  { %3044 = vmatprep.subr.mxu1 %v5708_v0  ;;  %3119 = vmatprep.subr.mxu0 %v5708_v0 }
 0x7f9   :  { %3045 = vmatpush1.msra.mxu1 %v5418_v19  ;;  %3120 = vmatpush1.msra.mxu0 %v5419_v20  ;;  %v5456_v19 = vld [vmem:[%s7621_s5 + $0xc8] sm:$0xff]  ;;  %v5457_v20 = vld [vmem:[%s7621_s5 + $0xf0] sm:$0xff] }
 0x7fa   :  { %3046 = vmatprep.subr.mxu1 %v5708_v0  ;;  %3121 = vmatprep.subr.mxu0 %v5708_v0 }
 0x7fb   :  { %3047 = vmatpush1.msra.mxu1 %v5420_v21  ;;  %3122 = vmatpush1.msra.mxu0 %v5421_v22  ;;  %v5458_v21 = vld [vmem:[%s7621_s5 + $0xc0] sm:$0xff] }
 0x7fc   :  { %3048 = vmatprep.subr.mxu1 %v5708_v0  ;;  %3123 = vmatprep.subr.mxu0 %v5708_v0 }
 0x7fd   :  { %3049 = vmatpush1.msra.mxu1 %v5422_v23  ;;  %3124 = vmatpush1.msra.mxu0 %v5423_v24  ;;  %v5459_v23 = vld [vmem:[%s7621_s5 + $0xe8] sm:$0xff]  ;;  %v5460_v24 = vld [vmem:[%s7621_s5 + $0xb8] sm:$0xff] }
 0x7fe   :  { %3050 = vmatprep.subr.mxu1 %v5708_v0  ;;  %3125 = vmatprep.subr.mxu0 %v5708_v0 }
 0x7ff   :  { %3051 = vmatpush1.msra.mxu1 %v5424_v25  ;;  %3126 = vmatpush1.msra.mxu0 %v5425_v26  ;;  %v5461_v25 = vld [vmem:[%s7621_s5 + $0xe0] sm:$0xff] }
 0x800   :  { %3052 = vmatprep.subr.mxu1 %v5708_v0  ;;  %3127 = vmatprep.subr.mxu0 %v5708_v0 }
 0x801   :  { %3053 = vmatpush1.msra.mxu1 %v5426_v27  ;;  %3128 = vmatpush1.msra.mxu0 %v5427_v28  ;;  %v5462_v27 = vld [vmem:[%s7621_s5 + $0xb0] sm:$0xff]  ;;  %v5463_v28 = vld [vmem:[%s7621_s5 + $0xd8] sm:$0xff] }
 0x802   :  { %3082 = vmatprep.subr.mxu1 %v5708_v0  ;;  %3157 = vmatprep.subr.mxu0 %v5708_v0 }
 0x803   :  { %3083 = vmatpush2.msra.mxu1 %v5428_v29  ;;  %3158 = vmatpush2.msra.mxu0 %v5429_v30  ;;  %v5464_v30 = vld [vmem:[%s7621_s5 + $0xa8] sm:$0xff] }
 0x804   :  { %3084 = vmatprep.subr.mxu1 %v5708_v0  ;;  %3159 = vmatprep.subr.mxu0 %v5708_v0 }
 0x805   :  { %3085 = vmatpush2.msra.mxu1 %v5430_v31  ;;  %3160 = vmatpush2.msra.mxu0 %v5431_v32  ;;  %v5465_v32 = vld [vmem:[%s7621_s5 + $0xa0] sm:$0xff] }
 0x806   :  { %5042 = vmatprep.subr.mxu0 %v5708_v0  ;;  %5021 = vmatprep.subr.mxu1 %v5708_v0 }
 0x89f   :  { %v2924_v33 = vpop.f32.mrf.mxu1  ;;  %v3001_v34 = vpop.f32.mrf.mxu0 }
 0x8a0   :  { %v3012_v38 = vmax.f32 %v2924_v33, %v3001_v34  ;;  %v5466_v33 = vld [vmem:[%s7621_s5 + $0x98] sm:$0xff] }
 0x8a1   :  { %v2926_v35 = vpop.f32.mrf.mxu1  ;;  %v3003_v36 = vpop.f32.mrf.mxu0 }
 0x8a2   :  { %v3013_v37 = vmax.f32 %v2926_v35, %v3003_v36  ;;  %v5467_v35 = vld [vmem:[%s7621_s5 + $0x90] sm:$0xff] }
 0x8a3   :  { %v2930_v39 = vpop.f32.mrf.mxu1  ;;  %v3007_v40 = vpop.f32.mrf.mxu0 }
 0x8a4   :  { %4380 = vmatprep.mubr.msk.f32.mxu1 %vm1061_vm6, %v3013_v37  ;;  %4382 = vmatprep.mubr.msk.f32.mxu0 %vm1061_vm6, %v3013_v37  ;;  %v3014_v46 = vmax.f32 %v2930_v39, %v3007_v40  ;;  %v5468_v37 = vld [vmem:[%s7621_s5 + $0x160] sm:$0xff]  ;;  %v5470_v39 = vld [vmem:[%s7621_s5 + $0x150] sm:$0xff]  ;;  %v5471_v40 = vld [vmem:[%s7621_s5 + $0x148] sm:$0xff] }
 0x8a5   :  { %v2932_v41 = vpop.f32.mrf.mxu1  ;;  %v3009_v42 = vpop.f32.mrf.mxu0  ;;  %3087 = vmatmul.mubr.f32.vlgmr.msra.gmra.mxu1 %v3012_v38  ;;  %3162 = vmatmul.mubr.f32.vlgmr.msra.gmra.mxu0 %v3012_v38  ;;  %v5469_v38 = vld [vmem:[%s7621_s5 + $0x158] sm:$0xff] }
 0x8a6   :  { %v3015_v43 = vmax.f32 %v2932_v41, %v3009_v42  ;;  %5043 = vmatpush3.msra.mxu0 %v5432_v44  ;;  %5022 = vmatpush3.msra.mxu1 %v5433_v45  ;;  %v5472_v41 = vld [vmem:[%s7621_s5 + $0x140] sm:$0xff]  ;;  %v5473_v42 = vld [vmem:[%s7621_s5 + $0x138] sm:$0xff]  ;;  %v5474_v44 = vld [vmem:[%s7621_s5 + $0x130] sm:$0xff] }
 0x8a7   :  { %5044 = vmatprep.subr.mxu0 %v5708_v0  ;;  %5023 = vmatprep.subr.mxu1 %v5708_v0  ;;  %v5475_v45 = vld [vmem:[%s7621_s5 + $0x128] sm:$0xff] }
 0x8a8   :  { %4381 = vmatprep.mubr.msk.f32.mxu1 %vm1061_vm6, %v3015_v43  ;;  %4383 = vmatprep.mubr.msk.f32.mxu0 %vm1061_vm6, %v3015_v43 }
 0x8a9   :  { %3092 = vmatmul.mubr.f32.gmra.mxu1 %v3014_v46  ;;  %3167 = vmatmul.mubr.f32.gmra.mxu0 %v3014_v46 }
 0x8aa   :  { %5045 = vmatpush3.msra.mxu0 %v5434_v47  ;;  %5024 = vmatpush3.msra.mxu1 %v5435_v48  ;;  %v5476_v47 = vld [vmem:[%s7621_s5 + $0x120] sm:$0xff] }
 0x8ab   :  { %5046 = vmatprep.subr.mxu0 %v5708_v0  ;;  %5025 = vmatprep.subr.mxu1 %v5708_v0 }
 0x8ac   :  { %5047 = vmatpush3.msra.mxu0 %v5436_v49  ;;  %5026 = vmatpush3.msra.mxu1 %v5437_v50  ;;  %v5477_v49 = vld [vmem:[%s7624_s8 + $0xf8] sm:$0xff]  ;;  %v5478_v50 = vld [vmem:[%s7624_s8 + $0xf0] sm:$0xff] }
 0x8ad   :  { %5048 = vmatprep.subr.mxu0 %v5708_v0  ;;  %5027 = vmatprep.subr.mxu1 %v5708_v0 }
 0x8ae   :  { %5049 = vmatpush3.msra.mxu0 %v5438_v51  ;;  %5028 = vmatpush3.msra.mxu1 %v5439_v52  ;;  %v5479_v51 = vld [vmem:[%s7624_s8 + $0xe8] sm:$0xff]  ;;  %v5480_v52 = vld [vmem:[%s7624_s8 + $0xe0] sm:$0xff] }
 0x8af   :  { %5050 = vmatprep.subr.mxu0 %v5708_v0  ;;  %5029 = vmatprep.subr.mxu1 %v5708_v0 }
 0x8b0   :  { %5051 = vmatpush3.msra.mxu0 %v5440_v53  ;;  %5030 = vmatpush3.msra.mxu1 %v5441_v54  ;;  %v5481_v53 = vld [vmem:[%s7624_s8 + $0xd8] sm:$0xff]  ;;  %v5482_v54 = vld [vmem:[%s7624_s8 + $0xd0] sm:$0xff] }
 0x8b1   :  { %5052 = vmatprep.subr.mxu0 %v5708_v0  ;;  %5031 = vmatprep.subr.mxu1 %v5708_v0 }
 0x8b2   :  { %5053 = vmatpush3.msra.mxu0 %v5442_v55  ;;  %5032 = vmatpush3.msra.mxu1 %v5443_v12  ;;  %v5483_v55 = vld [vmem:[%s7624_s8 + $0xc8] sm:$0xff]  ;;  %v5484_v12 = vld [vmem:[%s7624_s8 + $0xc0] sm:$0xff] }
 0x8b3   :  { %5054 = vmatprep.subr.mxu0 %v5708_v0  ;;  %5060 = vmatprep.mubr.msk.f32.mxu0 %vm5709_vm7, %v5708_v0 }
 0x8b4   :  { %5055 = vmatpush3.msra.mxu0 %v5444_v16  ;;  %5033 = vmatprep.subr.mxu1 %v5708_v0  ;;  %v5485_v16 = vld [vmem:[%s7624_s8 + $0xb8] sm:$0xff] }
 0x8b5   :  { %5056 = vmatprep.subr.mxu0 %v5708_v0  ;;  %5034 = vmatpush3.msra.mxu1 %v5445_v56  ;;  %v5486_v56 = vld [vmem:[%s7624_s8 + $0xb0] sm:$0xff] }
 0x8b6   :  { %5057 = vmatpush3.msra.mxu0 %v5446_v57  ;;  %5035 = vmatprep.subr.mxu1 %v5708_v0  ;;  %v5487_v57 = vld [vmem:[%s7624_s8 + $0xa8] sm:$0xff] }
 0x8b7   :  { %5058 = vmatprep.subr.mxu0 %v5708_v0  ;;  %5036 = vmatpush3.msra.mxu1 %v5447_v58  ;;  %v5488_v58 = vld [vmem:[%s7624_s8 + $0xa0] sm:$0xff] }
 0x8b8   :  { %5059 = vmatpush3.msra.mxu0 %v5448_v59  ;;  %5037 = vmatprep.subr.mxu1 %v5708_v0  ;;  %v5489_v59 = vld [vmem:[%s7624_s8 + $0x98] sm:$0xff] }
 0x8b9   :  { %5084 = vmatprep.subr.mxu0 %v5708_v0  ;;  %5038 = vmatpush3.msra.mxu1 %v5449_v60  ;;  %v5490_v60 = vld [vmem:[%s7624_s8 + $0x90] sm:$0xff] }
 0x8ba   :  { %5039 = vmatprep.mubr.msk.f32.mxu1 %vm5709_vm7, %v5708_v0  ;;  %5063 = vmatprep.subr.mxu1 %v5708_v0 }
 0x965   :  { %v3088_v61 = vpop.f32.mrf.mxu1  ;;  %v3163_v62 = vpop.f32.mrf.mxu0 }
 0x966   :  { %v7177_v63 = vmax.f32 %v3088_v61, %v3163_v62  ;;  %v5491_v61 = vld [vmem:[%s7624_s8 + $0x88] sm:$0xff]  ;;  %v5492_v62 = vld [vmem:[%s7624_s8 + $0x80] sm:$0xff] }
 0x967   :  { %v3090_v1 = vpop.f32.mrf.mxu1  ;;  %v3165_v2 = vpop.f32.mrf.mxu0 }
 0x968   :  { %5061 = vmatmul.mubr.msk.f32.vlgmr.msra.gmra.mxu0 %vm1225_vm8, %v7177_v63  ;;  %v3176_v11 = vrot.slane %v7177_v63, 1  ;;  %v3399_v26 = vrot.slane %v7177_v63, 3  ;;  %v3323_v34 = vrot.slane %v7177_v63, 2  ;;  %v3475_v46 = vrot.slane %v7177_v63, 4 }
 0x969   :  { %5085 = vmatpush3.msra.mxu0 %v5450_v3  ;;  %v3093_v4 = vpop.f32.mrf.mxu1  ;;  %v3168_v5 = vpop.f32.mrf.mxu0  ;;  %5102 = vmatprep.mubr.msk.f32.mxu0 %vm5709_vm7, %v5708_v0 }
 0x96a   :  { %v7186_v6 = vmax.f32 %v3093_v4, %v3168_v5  ;;  %5086 = vmatprep.subr.mxu0 %v5708_v0 }
 0x96b   :  { %5087 = vmatpush3.msra.mxu0 %v5451_v7  ;;  %v3095_v8 = vpop.f32.mrf.mxu1  ;;  %v3170_v9 = vpop.f32.mrf.mxu0 }
 0x96c   :  { %v3177_v10 = vrot.slane %v7186_v6, 1  ;;  %5088 = vmatprep.subr.mxu0 %v5708_v0  ;;  %v3400_v22 = vrot.slane %v7186_v6, 3  ;;  %v3324_v31 = vrot.slane %v7186_v6, 2  ;;  %v3476_v43 = vrot.slane %v7186_v6, 4 }
 0x96d   :  { %5089 = vmatpush3.msra.mxu0 %v5452_v13 }
 0x96e   :  { %5090 = vmatprep.subr.mxu0 %v5708_v0  ;;  %v3178_v14 = vsel %vm341_vm1, %v3176_v11, %v3177_v10  ;;  %v3401_v29 = vsel %vm650_vm4, %v3399_v26, %v3400_v22  ;;  %v3325_v36 = vsel %vm541_vm3, %v3323_v34, %v3324_v31  ;;  %v3477_v48 = vsel %vm356_vm0, %v3475_v46, %v3476_v43  ;;  %v5497_v22 = vld [vmem:[%s7624_s8 + $0x70] sm:$0xff]  ;;  %v5506_v31 = vld [vmem:[%s7624_s8 + $0x28] sm:$0xff]  ;;  %v5513_v43 = vld [vmem:[#allocation5 + $0x78] sm:$0xff] }
 0x96f   :  { %5091 = vmatpush3.msra.mxu0 %v5453_v15  ;;  %5040 = vmatmul.mubr.msk.f32.vlgmr.msra.gmra.mxu1 %vm1225_vm8, %v3178_v14  ;;  %v5493_v15 = vld [vmem:[#allocation2] ss:$0 sm:$0xff]  ;;  %v5501_v26 = vld [vmem:[%s7624_s8 + $0x50] sm:$0xff] }
 0x970   :  { %5064 = vmatpush3.msra.mxu1 %v5454_v17  ;;  %5092 = vmatprep.subr.mxu0 %v5708_v0  ;;  %v5509_v34 = vld [vmem:[%s7624_s8 + $0x10] sm:$0xff] }
 0x971   :  { %5065 = vmatprep.subr.mxu1 %v5708_v0  ;;  %5093 = vmatpush3.msra.mxu0 %v5455_v18  ;;  %v5516_v46 = vld [vmem:[#allocation5 + $0x28] sm:$0xff] }
 0x972   :  { %5066 = vmatpush3.msra.mxu1 %v5456_v19  ;;  %5094 = vmatprep.subr.mxu0 %v5708_v0  ;;  %v5494_v19 = vld [vmem:[%s7623_s7] sm:$0xf] }
 0x973   :  { %5067 = vmatprep.subr.mxu1 %v5708_v0  ;;  %5095 = vmatpush3.msra.mxu0 %v5457_v20  ;;  %v5495_v20 = vld [vmem:[%s7623_s7 + $0x4] sm:$0xf] }
 0x974   :  { %5068 = vmatpush3.msra.mxu1 %v5458_v21  ;;  %5096 = vmatprep.subr.mxu0 %v5708_v0  ;;  %v5496_v21 = vld [vmem:[%s7624_s8 + $0x78] sm:$0xff] }
 0x975   :  { %5069 = vmatprep.subr.mxu1 %v5708_v0  ;;  %5097 = vmatpush3.msra.mxu0 %v5459_v23  ;;  %v5498_v23 = vld [vmem:[%s7624_s8 + $0x68] sm:$0xff] }
 0x976   :  { %5070 = vmatpush3.msra.mxu1 %v5460_v24  ;;  %5098 = vmatprep.subr.mxu0 %v5708_v0  ;;  %v5499_v24 = vld [vmem:[%s7624_s8 + $0x60] sm:$0xff] }
 0x977   :  { %5071 = vmatprep.subr.mxu1 %v5708_v0  ;;  %5099 = vmatpush3.msra.mxu0 %v5461_v25  ;;  %v5500_v25 = vld [vmem:[%s7624_s8 + $0x58] sm:$0xff] }
 0x978   :  { %5072 = vmatpush3.msra.mxu1 %v5462_v27  ;;  %5100 = vmatprep.subr.mxu0 %v5708_v0  ;;  %v5502_v27 = vld [vmem:[%s7624_s8 + $0x48] sm:$0xff] }
 0x979   :  { %5073 = vmatprep.subr.mxu1 %v5708_v0  ;;  %5101 = vmatpush3.msra.mxu0 %v5463_v28  ;;  %v5503_v28 = vld [vmem:[%s7624_s8 + $0x40] sm:$0xff] }
 0x97a   :  { %5074 = vmatpush3.msra.mxu1 %v5464_v30  ;;  %5103 = vmatmul.mubr.msk.f32.vlgmr.msra.gmra.mxu0 %vm1225_vm8, %v3401_v29  ;;  %v5504_v29 = vld [vmem:[%s7624_s8 + $0x38] sm:$0xff]  ;;  %v5505_v30 = vld [vmem:[%s7624_s8 + $0x30] sm:$0xff] }
 0x97b   :  { %5075 = vmatprep.subr.mxu1 %v5708_v0  ;;  %5081 = vmatprep.mubr.msk.f32.mxu1 %vm5709_vm7, %v5708_v0 }
 0x97c   :  { %5076 = vmatpush3.msra.mxu1 %v5465_v32  ;;  %5126 = vmatprep.subr.mxu0 %v5708_v0  ;;  %v5507_v32 = vld [vmem:[%s7624_s8 + $0x20] sm:$0xff] }
 0x97d   :  { %5077 = vmatprep.subr.mxu1 %v5708_v0  ;;  %5128 = vmatprep.mubr.msk.f32.mxu0 %vm5709_vm7, %v5708_v0 }
 0x97e   :  { %5078 = vmatpush3.msra.mxu1 %v5466_v33  ;;  %v5508_v33 = vld [vmem:[%s7624_s8 + $0x18] sm:$0xff] }
 0x97f   :  { %5079 = vmatprep.subr.mxu1 %v5708_v0 }
 0x980   :  { %5080 = vmatpush3.msra.mxu1 %v5467_v35  ;;  %v5510_v35 = vld [vmem:[%s7624_s8 + $0x8] sm:$0xff] }
 0x981   :  { %5082 = vmatmul.mubr.msk.f32.vlgmr.msra.gmra.mxu1 %vm1225_vm8, %v3325_v36  ;;  %5105 = vmatprep.subr.mxu1 %v5708_v0  ;;  %v5511_v36 = vld [vmem:[%s7624_s8] sm:$0xff] }
 0x982   :  { %5106 = vmatpush3.msra.mxu1 %v5468_v37  ;;  %5123 = vmatprep.mubr.msk.f32.mxu1 %vm5709_vm7, %v5708_v0 }
 0x983   :  { %5107 = vmatprep.subr.mxu1 %v5708_v0 }
 0x984   :  { %5108 = vmatpush3.msra.mxu1 %v5469_v38 }
 0x985   :  { %5109 = vmatprep.subr.mxu1 %v5708_v0 }
 0x986   :  { %5110 = vmatpush3.msra.mxu1 %v5470_v39 }
 0x987   :  { %5111 = vmatprep.subr.mxu1 %v5708_v0 }
 0x988   :  { %5112 = vmatpush3.msra.mxu1 %v5471_v40 }
 0x989   :  { %5113 = vmatprep.subr.mxu1 %v5708_v0 }
 0x98a   :  { %5114 = vmatpush3.msra.mxu1 %v5472_v41 }
 0x98b   :  { %5115 = vmatprep.subr.mxu1 %v5708_v0 }
 0x98c   :  { %5116 = vmatpush3.msra.mxu1 %v5473_v42  ;;  %v5512_v42 = vld [vmem:[#allocation5 + $0x38] sm:$0xff] }
 0x98d   :  { %5117 = vmatprep.subr.mxu1 %v5708_v0 }
 0x98e   :  { %5118 = vmatpush3.msra.mxu1 %v5474_v44  ;;  %v5514_v44 = vld [vmem:[#allocation5 + $0x30] sm:$0xff] }
 0x98f   :  { %5119 = vmatprep.subr.mxu1 %v5708_v0 }
 0x990   :  { %5120 = vmatpush3.msra.mxu1 %v5475_v45  ;;  %v5515_v45 = vld [vmem:[#allocation5 + $0x70] sm:$0xff] }
 0x991   :  { %5121 = vmatprep.subr.mxu1 %v5708_v0 }
 0x992   :  { %5122 = vmatpush3.msra.mxu1 %v5476_v47  ;;  %v5517_v47 = vld [vmem:[#allocation5 + $0x68] sm:$0xff] }
 0x993   :  { %5124 = vmatmul.mubr.msk.f32.vlgmr.msra.gmra.mxu1 %vm1225_vm8, %v3477_v48  ;;  %5171 = vmatprep.subr.mxu1 %v5708_v0  ;;  %v5518_v48 = vld [vmem:[#allocation5 + $0x20] sm:$0xff] }
 0x994   :  { %5172 = vmatpush3.msra.mxu1 %v5477_v49  ;;  %5203 = vmatprep.mubr.msk.f32.mxu1 %vm5709_vm7, %v5708_v0  ;;  %v5519_v49 = vld [vmem:[#allocation5 + $0x60] sm:$0xff] }
 0x995   :  { %5173 = vmatprep.subr.mxu1 %v5708_v0 }
 0x996   :  { %5174 = vmatpush3.msra.mxu1 %v5478_v50  ;;  %v5520_v50 = vld [vmem:[#allocation5 + $0x18] sm:$0xff] }
 0x997   :  { %5175 = vmatprep.subr.mxu1 %v5708_v0 }
 0x998   :  { %5176 = vmatpush3.msra.mxu1 %v5479_v51  ;;  %v5521_v51 = vld [vmem:[#allocation5 + $0x58] sm:$0xff] }
 0x999   :  { %5177 = vmatprep.subr.mxu1 %v5708_v0 }
 0x99a   :  { %5178 = vmatpush3.msra.mxu1 %v5480_v52  ;;  %v5522_v52 = vld [vmem:[#allocation5 + $0x10] sm:$0xff] }
 0x99b   :  { %5179 = vmatprep.subr.mxu1 %v5708_v0 }
 0x99c   :  { %5180 = vmatpush3.msra.mxu1 %v5481_v53  ;;  %v5523_v53 = vld [vmem:[#allocation5 + $0x50] sm:$0xff] }
 0x99d   :  { %5181 = vmatprep.subr.mxu1 %v5708_v0 }
 0x99e   :  { %5182 = vmatpush3.msra.mxu1 %v5482_v54  ;;  %v5524_v54 = vld [vmem:[#allocation5 + $0x8] sm:$0xff] }
 0x99f   :  { %5183 = vmatprep.subr.mxu1 %v5708_v0 }
 0x9a0   :  { %5184 = vmatpush3.msra.mxu1 %v5483_v55  ;;  %v5525_v55 = vld [vmem:[#allocation5 + $0x48] sm:$0xff] }
 0x9a1   :  { %5185 = vmatprep.subr.mxu1 %v5708_v0 }
 0x9a2   :  { %5186 = vmatpush3.msra.mxu1 %v5484_v12  ;;  %v5526_v12 = vld [vmem:[#allocation5] sm:$0xff] }
 0x9a3   :  { %5187 = vmatprep.subr.mxu1 %v5708_v0 }
 0x9a4   :  { %5188 = vmatpush3.msra.mxu1 %v5485_v16  ;;  %v5527_v16 = vld [vmem:[#allocation5 + $0x40] sm:$0xff] }
 0x9a5   :  { %5189 = vmatprep.subr.mxu1 %v5708_v0 }
 0x9a6   :  { %5190 = vmatpush3.msra.mxu1 %v5486_v56 }
 0x9a7   :  { %5191 = vmatprep.subr.mxu1 %v5708_v0 }
 0x9a8   :  { %5192 = vmatpush3.msra.mxu1 %v5487_v57 }
 0x9a9   :  { %5193 = vmatprep.subr.mxu1 %v5708_v0 }
 0x9aa   :  { %5194 = vmatpush3.msra.mxu1 %v5488_v58 }
 0x9ab   :  { %5195 = vmatprep.subr.mxu1 %v5708_v0 }
 0x9ac   :  { %5196 = vmatpush3.msra.mxu1 %v5489_v59 }
 0x9ad   :  { %5197 = vmatprep.subr.mxu1 %v5708_v0 }
 0x9ae   :  { %5198 = vmatpush3.msra.mxu1 %v5490_v60 }
 0x9af   :  { %5199 = vmatprep.subr.mxu1 %v5708_v0 }
 0x9b0   :  { %5200 = vmatpush3.msra.mxu1 %v5491_v61 }
 0x9b1   :  { %5201 = vmatprep.subr.mxu1 %v5708_v0 }
 0x9b2   :  { %5202 = vmatpush3.msra.mxu1 %v5492_v62  ;;  %v5528_v62 = vld [vmem:[#allocation5 + $0xf8] sm:$0xff] }
 0x9b3   :  { %5225 = vmatprep.subr.mxu1 %v5708_v0 }
 0xa28   :  { %v3319_v63 = vpop.f32.mrf.mxu0 }
 0xa2a   :  { %v5062_v1 = vpop.f32.mrf.mxu0 }
 0xa2b   :  { %v5530_v1 = vld [vmem:[#allocation5 + $0xf0] sm:$0xff] }
 0xa2f   :  { %v3247_v2 = vpop.f32.mrf.mxu1 }
 0xa30   :  { %v3320_v8 = vadd.f32 %v3319_v63, %v3247_v2  ;;  %v5529_v63 = vld [vmem:[#allocation5 + $0xb8] sm:$0xff]  ;;  %v5531_v2 = vld [vmem:[#allocation5 + $0xb0] sm:$0xff] }
 0xa31   :  { %v5041_v3 = vpop.f32.mrf.mxu1 }
 0xa32   :  { %v5532_v3 = vld [vmem:[#allocation5 + $0xe8] sm:$0xff] }
 0xa3a   :  { %v3470_v4 = vpop.f32.mrf.mxu0 }
 0xa3c   :  { %v5104_v5 = vpop.f32.mrf.mxu0 }
 0xa3d   :  { %v5534_v5 = vld [vmem:[#allocation5 + $0xe0] sm:$0xff] }
 0xa41   :  { %v3394_v6 = vpop.f32.mrf.mxu1 }
 0xa42   :  { %v3398_v9 = vadd.f32 %v3394_v6, %v3320_v8  ;;  %v5535_v6 = vld [vmem:[#allocation5 + $0xa0] sm:$0xff]  ;;  %v5537_v8 = vld [vmem:[#allocation5 + $0x98] sm:$0xff] }
 0xa43   :  { %v5083_v7 = vpop.f32.mrf.mxu1 }
 0xa44   :  { %v3474_v10 = vadd.f32 %v3470_v4, %v3398_v9  ;;  %v5533_v4 = vld [vmem:[#allocation5 + $0xa8] sm:$0xff]  ;;  %v5536_v7 = vld [vmem:[#allocation5 + $0xd8] sm:$0xff]  ;;  %v5538_v9 = vld [vmem:[#allocation5 + $0xd0] sm:$0xff] }
 0xa53   :  { %v3546_v11 = vpop.f32.mrf.mxu1 }
 0xa54   :  { %v3550_v13 = vadd.f32 %v3546_v11, %v3474_v10  ;;  %v5539_v10 = vld [vmem:[#allocation5 + $0x90] sm:$0xff]  ;;  %v5540_v11 = vld [vmem:[#allocation5 + $0xc8] sm:$0xff] }
 0xa55   :  { %v5125_v14 = vpop.f32.mrf.mxu1 }
 0xa56   :  { %v3551_v17 = vadd.f32 %v5493_v15, %v3550_v13  ;;  %v5541_v14 = vld [vmem:[#allocation5 + $0x88] sm:$0xff]  ;;  %v5542_v15 = vld [vmem:[#allocation5 + $0xc0] sm:$0xff] }
 0xa58   :  { %v3552_v18 = vmax.f32 %v3551_v17, 0.0 }
 0xa5a   :  { %5127 = vmatpush3.msra.mxu0 %v3552_v18 }
 0xa5b   :  { %5129 = vmatmul.mubr.msk.f32.vlgmr.msra.gmra.mxu0 %vm1606_vm9, %v5494_v19  ;;  %5131 = vmatprep.subr.mxu0 %v5708_v0  ;;  %v5544_v19 = vld [vmem:[%s7627_s11 + $0x70] sm:$0xff] }
 0xa5c   :  { %5132 = vmatpush3.msra.mxu0 %v3552_v18  ;;  %5133 = vmatprep.mubr.msk.f32.mxu0 %vm5709_vm7, %v5708_v0  ;;  %v5543_v18 = vld [vmem:[#allocation5 + $0x80] sm:$0xff] }
 0xa5d   :  { %5136 = vmatprep.subr.mxu0 %v5708_v0 }
 0xa5f   :  { %5134 = vmatmul.mubr.msk.f32.vlgmr.msra.gmra.mxu0 %vm1606_vm9, %v5495_v20  ;;  %v5545_v20 = vld [vmem:[%s7627_s11 + $0x68] sm:$0xff] }
 0xa60   :  { %5137 = vmatpush3.msra.mxu0 %v5496_v21  ;;  %5168 = vmatprep.mubr.msk.f32.mxu0 %vm5709_vm7, %v5708_v0  ;;  %v5546_v21 = vld [vmem:[%s7629_s13 + $0x50] sm:$0xf] }
 0xa61   :  { %5138 = vmatprep.subr.mxu0 %v5708_v0 }
 0xa62   :  { %5139 = vmatpush3.msra.mxu0 %v5497_v22  ;;  %v5547_v22 = vld [vmem:[%s7627_s11 + $0x60] sm:$0xff] }
 0xa63   :  { %5140 = vmatprep.subr.mxu0 %v5708_v0 }
 0xa64   :  { %5141 = vmatpush3.msra.mxu0 %v5498_v23  ;;  %v5548_v23 = vld [vmem:[%s7629_s13 + $0x48] sm:$0xff] }
 0xa65   :  { %5142 = vmatprep.subr.mxu0 %v5708_v0 }
 0xa66   :  { %5143 = vmatpush3.msra.mxu0 %v5499_v24  ;;  %v5549_v24 = vld [vmem:[%s7627_s11 + $0x58] sm:$0xff] }
 0xa67   :  { %5144 = vmatprep.subr.mxu0 %v5708_v0 }
 0xa68   :  { %5145 = vmatpush3.msra.mxu0 %v5500_v25  ;;  %v5550_v25 = vld [vmem:[%s7629_s13 + $0x40] sm:$0xff] }
 0xa69   :  { %5146 = vmatprep.subr.mxu0 %v5708_v0 }
 0xa6a   :  { %5147 = vmatpush3.msra.mxu0 %v5501_v26  ;;  %v5551_v26 = vld [vmem:[%s7627_s11 + $0x50] sm:$0xff] }
 0xa6b   :  { %5148 = vmatprep.subr.mxu0 %v5708_v0 }
 0xa6c   :  { %5149 = vmatpush3.msra.mxu0 %v5502_v27  ;;  %v5552_v27 = vld [vmem:[%s7629_s13 + $0x38] sm:$0xff] }
 0xa6d   :  { %5150 = vmatprep.subr.mxu0 %v5708_v0 }
 0xa6e   :  { %5151 = vmatpush3.msra.mxu0 %v5503_v28  ;;  %v5553_v28 = vld [vmem:[%s7627_s11 + $0x48] sm:$0xff] }
 0xa6f   :  { %5152 = vmatprep.subr.mxu0 %v5708_v0 }
 0xa70   :  { %5153 = vmatpush3.msra.mxu0 %v5504_v29  ;;  %v5554_v29 = vld [vmem:[%s7629_s13 + $0x30] sm:$0xff] }
 0xa71   :  { %5154 = vmatprep.subr.mxu0 %v5708_v0 }
 0xa72   :  { %5155 = vmatpush3.msra.mxu0 %v5505_v30  ;;  %v5555_v30 = vld [vmem:[%s7627_s11 + $0x40] sm:$0xff] }
 0xa73   :  { %5156 = vmatprep.subr.mxu0 %v5708_v0 }
 0xa74   :  { %5157 = vmatpush3.msra.mxu0 %v5506_v31  ;;  %v5556_v31 = vld [vmem:[%s7629_s13 + $0x28] sm:$0xff] }
 0xa75   :  { %5158 = vmatprep.subr.mxu0 %v5708_v0 }
 0xa76   :  { %5159 = vmatpush3.msra.mxu0 %v5507_v32  ;;  %v5557_v32 = vld [vmem:[%s7627_s11 + $0x38] sm:$0xff] }
 0xa77   :  { %5160 = vmatprep.subr.mxu0 %v5708_v0 }
 0xa78   :  { %5161 = vmatpush3.msra.mxu0 %v5508_v33  ;;  %v5558_v33 = vld [vmem:[%s7629_s13 + $0x20] sm:$0xff] }
 0xa79   :  { %5162 = vmatprep.subr.mxu0 %v5708_v0 }
 0xa7a   :  { %5163 = vmatpush3.msra.mxu0 %v5509_v34  ;;  %v5559_v34 = vld [vmem:[%s7627_s11 + $0x30] sm:$0xff] }
 0xa7b   :  { %5164 = vmatprep.subr.mxu0 %v5708_v0 }
 0xa7c   :  { %5165 = vmatpush3.msra.mxu0 %v5510_v35  ;;  %v5560_v35 = vld [vmem:[%s7629_s13 + $0x18] sm:$0xff] }
 0xa7d   :  { %5166 = vmatprep.subr.mxu0 %v5708_v0 }
 0xa7e   :  { %5167 = vmatpush3.msra.mxu0 %v5511_v36  ;;  %v5561_v36 = vld [vmem:[%s7627_s11 + $0x28] sm:$0xff] }
 0xa7f   :  { %5206 = vmatprep.subr.mxu0 %v5708_v0 }
 0xb1b   :  { %v3619_v37 = vpop.f32.mrf.mxu0 }
 0xb1d   :  { %v5130_v38 = vpop.f32.mrf.mxu0 }
 0xb1e   :  { %v5563_v38 = vld [vmem:[%s7627_s11 + $0x20] sm:$0xff] }
 0xb1f   :  { %v3689_v39 = vpop.f32.mrf.mxu0 }
 0xb20   :  { %v3693_v40 = vmax.f32 %v3619_v37, %v3689_v39  ;;  %v5562_v37 = vld [vmem:[%s7629_s13 + $0x10] sm:$0xff]  ;;  %v5564_v39 = vld [vmem:[%s7629_s13 + $0x8] sm:$0xff] }
 0xb21   :  { %v5135_v41 = vpop.f32.mrf.mxu0 }
 0xb22   :  { %5169 = vmatmul.mubr.f32.vlgmr.msra.gmra.mxu0 %v3693_v40  ;;  %5204 = vmatmul.mubr.f32.vlgmr.msra.gmra.mxu1 %v3693_v40  ;;  %v5565_v40 = vld [vmem:[%s7627_s11 + $0x18] sm:$0xff]  ;;  %v5566_v41 = vld [vmem:[%s7629_s13] sm:$0xff] }
 0xb23   :  { %5226 = vmatpush3.msra.mxu1 %v5512_v42  ;;  %5207 = vmatpush3.msra.mxu0 %v5513_v43  ;;  %v5567_v42 = vld [vmem:[%s7627_s11 + $0x10] sm:$0xff]  ;;  %v5568_v43 = vld [vmem:[%s7627_s11 + $0x8] sm:$0xff] }
 0xb24   :  { %5227 = vmatprep.subr.mxu1 %v5708_v0  ;;  %5208 = vmatprep.subr.mxu0 %v5708_v0 }
 0xb25   :  { %5228 = vmatpush3.msra.mxu1 %v5514_v44  ;;  %5209 = vmatpush3.msra.mxu0 %v5515_v45  ;;  %v5569_v44 = vld [vmem:[%s7627_s11] sm:$0xff]  ;;  %s5710_s11 = smov [#allocation11]  }
 0xb26   :  { %5229 = vmatprep.subr.mxu1 %v5708_v0  ;;  %5210 = vmatprep.subr.mxu0 %v5708_v0  ;;  %s4285_s12 = sshll.u32 %s5710_s11, 4  ;;  %s4286_s12 = int_to_ptr.vmem [resolvable:$true] %s4285_s12 }
 0xb27   :  { %5230 = vmatpush3.msra.mxu1 %v5516_v46  ;;  %5211 = vmatpush3.msra.mxu0 %v5517_v47  ;;  %s5673_s4 = scalar_lea.vmem %s4286_s12, 32  ;;  %p5678_p12 = scmp.lt.s32.totalorder %s4286_s12, %s4286_s12 }
 0xb28   :  { %5231 = vmatprep.subr.mxu1 %v5708_v0  ;;  %5212 = vmatprep.subr.mxu0 %v5708_v0  ;;  %p5674_p11 = scmp.ne.s32.totalorder %s4286_s12, %s5673_s4  ;;  %p5679_p13 = scmp.lt.s32.totalorder %s5673_s4, %s5673_s4 }
 0xb29   :  { %5232 = vmatpush3.msra.mxu1 %v5518_v48  ;;  %5213 = vmatpush3.msra.mxu0 %v5519_v49 }
 0xb2a   :  { %5233 = vmatprep.subr.mxu1 %v5708_v0  ;;  %5214 = vmatprep.subr.mxu0 %v5708_v0  ;;  %p5680_p0 = por %p5679_p13, %p5678_p12 }
 0xb2b   :  { %5234 = vmatpush3.msra.mxu1 %v5520_v50  ;;  %5215 = vmatpush3.msra.mxu0 %v5521_v51 }
 0xb2c   :  { %5235 = vmatprep.subr.mxu1 %v5708_v0  ;;  %5216 = vmatprep.subr.mxu0 %v5708_v0  ;;  %p5681_p1 = pnand %p5680_p0, %p5674_p11 }
 0xb2d   :  { %5236 = vmatpush3.msra.mxu1 %v5522_v52  ;;  %5217 = vmatpush3.msra.mxu0 %v5523_v53 }
 0xb2e   :  { %5237 = vmatprep.subr.mxu1 %v5708_v0  ;;  %5218 = vmatprep.subr.mxu0 %v5708_v0 }
 0xb2f   :  { %5238 = vmatpush3.msra.mxu1 %v5524_v54  ;;  %5219 = vmatpush3.msra.mxu0 %v5525_v55 }
 0xb30   :  { %5239 = vmatprep.subr.mxu1 %v5708_v0  ;;  %5220 = vmatprep.subr.mxu0 %v5708_v0 }
 0xb31   :  { %5240 = vmatpush3.msra.mxu1 %v5526_v12  ;;  %5241 = vmatprep.mubr.msk.f32.mxu1 %vm5709_vm7, %v5708_v0  ;;  %v5570_v12 = vld [vmem:[#allocation7] sm:$0x1] }
 0xb32   :  { %5263 = vmatprep.subr.mxu1 %v5708_v0  ;;  %5221 = vmatpush3.msra.mxu0 %v5527_v16 }
 0xb33   :  { %5222 = vmatprep.mubr.msk.f32.mxu0 %vm5709_vm7, %v5708_v0  ;;  %5244 = vmatprep.subr.mxu0 %v5708_v0 }
 0xbe2   :  { %v3760_v56 = vpop.f32.mrf.mxu0  ;;  %v3830_v57 = vpop.f32.mrf.mxu1 }
 0xbe3   :  { %v3834_v58 = vmax.f32 %v3760_v56, %v3830_v57  ;;  %v5571_v57 = vld [vmem:[#allocation8] sm:$0x1] }
 0xbe4   :  { %v5170_v59 = vpop.f32.mrf.mxu0  ;;  %v5205_v60 = vpop.f32.mrf.mxu1 }
 0xbe5   :  { %v3836_v61 = vrot.slane %v3834_v58, 1  ;;  %5242 = vmatmul.mubr.msk.f32.vlgmr.msra.gmra.mxu1 %vm1897_vm10, %v3834_v58  ;;  %v4055_v13 = vrot.slane %v3834_v58, 3  ;;  %v3981_v17 = vrot.slane %v3834_v58, 2 }
 0xbe6   :  { %5264 = vmatpush3.msra.mxu1 %v5528_v62  ;;  %5279 = vmatprep.mubr.msk.f32.mxu1 %vm5709_vm7, %v5708_v0  ;;  %v5572_v62 = vld [vmem:[#allocation10] sm:$0x1] }
 0xbe7   :  { %5265 = vmatprep.subr.mxu1 %v5708_v0  ;;  %5223 = vmatmul.mubr.msk.f32.vlgmr.msra.gmra.mxu0 %vm1897_vm10, %v3836_v61 }
 0xbe8   :  { %5245 = vmatpush3.msra.mxu0 %v5529_v63  ;;  %5266 = vmatpush3.msra.mxu1 %v5530_v1 }
 0xbe9   :  { %5246 = vmatprep.subr.mxu0 %v5708_v0  ;;  %5267 = vmatprep.subr.mxu1 %v5708_v0 }
 0xbea   :  { %5247 = vmatpush3.msra.mxu0 %v5531_v2  ;;  %5268 = vmatpush3.msra.mxu1 %v5532_v3 }
 0xbeb   :  { %5248 = vmatprep.subr.mxu0 %v5708_v0  ;;  %5269 = vmatprep.subr.mxu1 %v5708_v0 }
 0xbec   :  { %5249 = vmatpush3.msra.mxu0 %v5533_v4  ;;  %5270 = vmatpush3.msra.mxu1 %v5534_v5 }
 0xbed   :  { %5250 = vmatprep.subr.mxu0 %v5708_v0  ;;  %5271 = vmatprep.subr.mxu1 %v5708_v0 }
 0xbee   :  { %5251 = vmatpush3.msra.mxu0 %v5535_v6  ;;  %5272 = vmatpush3.msra.mxu1 %v5536_v7 }
 0xbef   :  { %5252 = vmatprep.subr.mxu0 %v5708_v0  ;;  %5273 = vmatprep.subr.mxu1 %v5708_v0 }
 0xbf0   :  { %5253 = vmatpush3.msra.mxu0 %v5537_v8  ;;  %5274 = vmatpush3.msra.mxu1 %v5538_v9 }
 0xbf1   :  { %5254 = vmatprep.subr.mxu0 %v5708_v0  ;;  %5275 = vmatprep.subr.mxu1 %v5708_v0 }
 0xbf2   :  { %5255 = vmatpush3.msra.mxu0 %v5539_v10  ;;  %5276 = vmatpush3.msra.mxu1 %v5540_v11 }
 0xbf3   :  { %5256 = vmatprep.subr.mxu0 %v5708_v0  ;;  %5277 = vmatprep.subr.mxu1 %v5708_v0 }
 0xbf4   :  { %5257 = vmatpush3.msra.mxu0 %v5541_v14  ;;  %5278 = vmatpush3.msra.mxu1 %v5542_v15 }
 0xbf5   :  { %5258 = vmatprep.subr.mxu0 %v5708_v0  ;;  %5280 = vmatmul.mubr.msk.f32.vlgmr.msra.gmra.mxu1 %vm1897_vm10, %v4055_v13 }
 0xbf6   :  { %5259 = vmatpush3.msra.mxu0 %v5543_v18  ;;  %5260 = vmatprep.mubr.msk.f32.mxu0 %vm5709_vm7, %v5708_v0 }
 0xbf7   :  { %5261 = vmatmul.mubr.msk.f32.vlgmr.msra.gmra.mxu0 %vm1897_vm10, %v3981_v17  ;;  %5282 = vmatprep.subr.mxu0 %v5708_v0 }
 0xbf8   :  { %5283 = vmatpush3.msra.mxu0 %v5544_v19  ;;  %5312 = vmatprep.mubr.msk.f32.mxu0 %vm5709_vm7, %v5708_v0 }
 0xbf9   :  { %5284 = vmatprep.subr.mxu0 %v5708_v0  ;;  %5315 = vmatprep.subr.mxu1 %v5708_v0 }
 0xbfa   :  { %5285 = vmatpush3.msra.mxu0 %v5545_v20  ;;  %5316 = vmatpush3.msk.msra.mxu1 %vm356_vm0, %v5546_v21 }
 0xbfb   :  { %5286 = vmatprep.subr.mxu0 %v5708_v0  ;;  %5317 = vmatprep.subr.mxu1 %v5708_v0 }
 0xbfc   :  { %5287 = vmatpush3.msra.mxu0 %v5547_v22  ;;  %5318 = vmatpush3.msra.mxu1 %v5548_v23 }
 0xbfd   :  { %5288 = vmatprep.subr.mxu0 %v5708_v0  ;;  %5319 = vmatprep.subr.mxu1 %v5708_v0 }
 0xbfe   :  { %5289 = vmatpush3.msra.mxu0 %v5549_v24  ;;  %5320 = vmatpush3.msra.mxu1 %v5550_v25 }
 0xbff   :  { %5290 = vmatprep.subr.mxu0 %v5708_v0  ;;  %5321 = vmatprep.subr.mxu1 %v5708_v0 }
 0xc00   :  { %5291 = vmatpush3.msra.mxu0 %v5551_v26  ;;  %5322 = vmatpush3.msra.mxu1 %v5552_v27 }
 0xc01   :  { %5292 = vmatprep.subr.mxu0 %v5708_v0  ;;  %5323 = vmatprep.subr.mxu1 %v5708_v0 }
 0xc02   :  { %5293 = vmatpush3.msra.mxu0 %v5553_v28  ;;  %5324 = vmatpush3.msra.mxu1 %v5554_v29 }
 0xc03   :  { %5294 = vmatprep.subr.mxu0 %v5708_v0  ;;  %5325 = vmatprep.subr.mxu1 %v5708_v0 }
 0xc04   :  { %5295 = vmatpush3.msra.mxu0 %v5555_v30  ;;  %5326 = vmatpush3.msra.mxu1 %v5556_v31 }
 0xc05   :  { %5296 = vmatprep.subr.mxu0 %v5708_v0  ;;  %5327 = vmatprep.subr.mxu1 %v5708_v0 }
 0xc06   :  { %5297 = vmatpush3.msra.mxu0 %v5557_v32  ;;  %5328 = vmatpush3.msra.mxu1 %v5558_v33 }
 0xc07   :  { %5298 = vmatprep.subr.mxu0 %v5708_v0  ;;  %5329 = vmatprep.subr.mxu1 %v5708_v0 }
 0xc08   :  { %5299 = vmatpush3.msra.mxu0 %v5559_v34  ;;  %5330 = vmatpush3.msra.mxu1 %v5560_v35 }
 0xc09   :  { %5300 = vmatprep.subr.mxu0 %v5708_v0  ;;  %5331 = vmatprep.subr.mxu1 %v5708_v0 }
 0xc0a   :  { %5301 = vmatpush3.msra.mxu0 %v5561_v36  ;;  %5332 = vmatpush3.msra.mxu1 %v5562_v37 }
 0xc0b   :  { %5302 = vmatprep.subr.mxu0 %v5708_v0  ;;  %5333 = vmatprep.subr.mxu1 %v5708_v0 }
 0xc0c   :  { %5303 = vmatpush3.msra.mxu0 %v5563_v38  ;;  %5334 = vmatpush3.msra.mxu1 %v5564_v39 }
 0xc0d   :  { %5304 = vmatprep.subr.mxu0 %v5708_v0  ;;  %5335 = vmatprep.subr.mxu1 %v5708_v0 }
 0xc0e   :  { %5305 = vmatpush3.msra.mxu0 %v5565_v40  ;;  %5336 = vmatpush3.msra.mxu1 %v5566_v41 }
 0xc0f   :  { %5306 = vmatprep.subr.mxu0 %v5708_v0  ;;  %5337 = vmatprep.mubr.msk.f32.mxu1 %vm5709_vm7, %v5708_v0 }
 0xc10   :  { %5307 = vmatpush3.msra.mxu0 %v5567_v42 }
 0xc11   :  { %5308 = vmatprep.subr.mxu0 %v5708_v0 }
 0xc12   :  { %5309 = vmatpush3.msra.mxu0 %v5568_v43 }
 0xc13   :  { %5310 = vmatprep.subr.mxu0 %v5708_v0 }
 0xc14   :  { %5311 = vmatpush3.msra.mxu0 %v5569_v44 }
 0xca5   :  { %v3977_v45 = vpop.f32.mrf.mxu1 }
 0xca7   :  { %v3905_v46 = vpop.f32.mrf.mxu0  ;;  %v5243_v47 = vpop.f32.mrf.mxu1 }
 0xca8   :  { %v3978_v50 = vadd.f32 %v3977_v45, %v3905_v46 }
 0xca9   :  { %v5224_v48 = vpop.f32.mrf.mxu0 }
 0xcb5   :  { %v4124_v49 = vpop.f32.mrf.mxu1 }
 0xcb7   :  { %v4050_v51 = vpop.f32.mrf.mxu0  ;;  %v5281_v52 = vpop.f32.mrf.mxu1 }
 0xcb8   :  { %v4054_v53 = vadd.f32 %v4050_v51, %v3978_v50 }
 0xcb9   :  { %v5262_v54 = vpop.f32.mrf.mxu0 }
 0xcba   :  { %v4128_v55 = vadd.f32 %v4124_v49, %v4054_v53 }
 0xcbc   :  { %v4129_v16 = vadd.f32 %v5570_v12, %v4128_v55 }
 0xcbe   :  { %v4130_v56 = vmax.f32 %v4129_v16, 0.0 }
 0xcc0   :  { %5313 = vmatmul.mubr.msk.f32.vlgmr.msra.gmra.mxu0 %vm2192_vm11, %v4130_v56 }
 0xd80   :  { %v4200_v0 = vpop.f32.mrf.mxu0 }
 0xd81   :  { %v4201_v58 = vadd.f32 %v5571_v57, %v4200_v0 }
 0xd82   :  { %v5314_v59 = vpop.f32.mrf.mxu0 }
 0xd83   :  { %v4204_v60 = vmax.f32 %v4201_v58, 0.0 }
 0xd85   :  { %5338 = vmatmul.mubr.msk.f32.vlgmr.msra.gmra.mxu1 %vm2267_vm12, %v4204_v60 }
 0xe45   :  { %v4274_v61 = vpop.f32.mrf.mxu1 }
 0xe46   :  { %v4275_v63 = vadd.f32 %v5572_v62, %v4274_v61 }
 0xe47   :  { %v5339_v1 = vpop.f32.mrf.mxu1 }
 0xe48   :  { %4279 = vst.msk [vmem:[#allocation11 + $0x1] sm:$0x1] %vm2344_vm13, %v4275_v63 }
 0xe49   :  { %5684 = shalt.err (!%p5681_p1)
}
 0xe4a   :  { %s5711_s26 = smov 16   ;;  %s5712_s27 = smov 1  }
 0xe4b   :  { %4291 = dma.vmem_to_hbm [thread:$0]  %s4286_s12, 32, %s7631_s15, [#allocation4], %s5711_s26, %s5711_s26, %s5712_s27  }
 0xe4c   :  { %5699 = dma.done.wait [#allocation4], 32  }
 0xe4d   :  { %5700 = vsyncadd [#allocation4], 4294967264 }
 0xe4e   :  { %4295 = vsyncpa [#allocation3], 1 }
 0xe4f   :  { %4296 = vsyncpa [#allocation6], 1 }
 0xe50   :  { %4297 = vsyncpa [#allocation9], 1 }
 0xe51   :  { %4298 = vsyncpa [#allocation4], 1 }

</bundles_post_ra>
